<compile_context>
chip_gen: v7x
topology: tpu7x:2x2x1
jax: 0.10.0
libtpu: 0.0.40
codegen_flags: <defaults>
</compile_context>

<pallas_src>
import jax
import jax.numpy as jnp
from jax.experimental import pallas as pl
from jax.experimental.pallas import tpu as pltpu

BN_EPS = 1e-5


# --------------------------------------------------------------------------- kernels

def _fill_padded(xp_ref, img):
    """Copy `img` (H, W, C) into the (H+2, W, C) scratch, zeroing only the halo rows."""
    H, W, C = img.shape
    zrow = jnp.zeros((1, W, C), jnp.float32)
    xp_ref[0:1, :, :] = zrow                 # top halo row
    xp_ref[H + 1:H + 2, :, :] = zrow         # bottom halo row
    xp_ref[1:H + 1, :, :] = img              # interior (leading-dim slice: no relayout)


def _conv3x3(xp_ref, w_ref):
    """3x3 'same' conv of the H-padded slab with K-fused bf16 MXU dots.

    The W-direction taps come from a single aligned load + pltpu.roll(+/-1 along the
    flattened row axis) with edge masking folded into the bf16 cast; they are
    concatenated along the contraction dim so each kh is ONE dot with K = 3*Cin.
    w_ref is the host-reshaped (3, 3*Cin, Cout) bf16 weight.  Accumulation is f32.
    """
    Hp, W, Cin = xp_ref.shape
    H = Hp - 2
    n = Hp * W
    hw = H * W

    xflat = xp_ref[...].reshape(n, Cin)                              # f32
    col = jax.lax.broadcasted_iota(jnp.int32, (n, 1), 0) % W         # (n, 1) column idx

    x0 = xflat.astype(jnp.bfloat16)                                               # kw = 1
    # kw=0 needs column c-1: roll rows down by 1, zero column 0 of every row.
    x_m1 = jnp.where(col == 0, 0, pltpu.roll(xflat, 1, 0).astype(jnp.bfloat16))   # kw = 0
    # kw=2 needs column c+1: roll rows up by 1 (shift = n-1), zero column W-1.
    x_p1 = jnp.where(col == W - 1, 0,
                     pltpu.roll(xflat, n - 1, 0).astype(jnp.bfloat16))            # kw = 2

    # (n, 3*Cin) bf16: column order [kw=0 | kw=1 | kw=2] matches the weight reshape.
    x_cat = jnp.concatenate([x_m1, x0, x_p1], axis=-1)

    # Aligned row-band slices (W % 8 == 0) of the padded slab, one per kh.
    acc = jnp.dot(x_cat[0:hw], w_ref[0], preferred_element_type=jnp.float32)
    acc = acc + jnp.dot(x_cat[W:W + hw], w_ref[1], preferred_element_type=jnp.float32)
    acc = acc + jnp.dot(x_cat[2 * W:2 * W + hw], w_ref[2],
                        preferred_element_type=jnp.float32)
    return acc                               # (H*W, Cout) f32


def _strip_stats(acc):
    """Per-image two-pass stats: channel sum and *centered* sum of squares."""
    m = acc.shape[0]
    s = jnp.sum(acc, axis=0, keepdims=True)                  # (1, C)
    mu = s / m
    m2 = jnp.sum((acc - mu) ** 2, axis=0, keepdims=True)     # (1, C)
    return s, m2


def conv1_kernel(x_ref, w_ref, y_ref, stats_ref, xp_scr):
    _, H, W, _ = x_ref.shape
    Cout = y_ref.shape[-1]
    # TODO(synk): DMA the HBM image straight into xp_scr (memory_space=pl.ANY) to skip
    # this VMEM->VMEM interior copy.
    _fill_padded(xp_scr, x_ref[0])
    acc = _conv3x3(xp_scr, w_ref)
    y_ref[...] = acc.reshape(1, H, W, Cout).astype(y_ref.dtype)      # bf16 store
    s, m2 = _strip_stats(acc)                                        # stats from f32 acc
    stats_ref[0, 0:1, :] = s
    stats_ref[0, 1:2, :] = m2


def conv2_kernel(y1_ref, scale_ref, shift_ref, w_ref, y2_ref, stats_ref, xp_scr):
    _, H, W, C = y1_ref.shape
    # BN1 (folded scale/shift) + ReLU, in f32 (y1 stored as bf16)
    h = jnp.maximum(
        y1_ref[0].astype(jnp.float32).reshape(H * W, C) * scale_ref[...] + shift_ref[...],
        0.0)
    _fill_padded(xp_scr, h.reshape(H, W, C))
    acc = _conv3x3(xp_scr, w_ref)
    y2_ref[...] = acc.reshape(1, H, W, C).astype(y2_ref.dtype)       # bf16 store
    s, m2 = _strip_stats(acc)
    stats_ref[0, 0:1, :] = s
    stats_ref[0, 1:2, :] = m2


def bn_add_relu_kernel(y2_ref, x_ref, scale_ref, shift_ref, out_ref):
    # BN2 apply + residual + ReLU, all f32 (y2 stored as bf16)
    out_ref[...] = jnp.maximum(
        y2_ref[...].astype(jnp.float32) * scale_ref[...] + shift_ref[...] + x_ref[...],
        0.0)


# ---------------------------------------------------------------------- JAX wrapper

def _combine_stats(stats, m_per_strip):
    """Exact (Chan et al.) combination of per-image (sum, M2) -> global mean, biased var."""
    s = stats[:, 0, :].astype(jnp.float32)       # (S, C)
    m2 = stats[:, 1, :].astype(jnp.float32)
    n_strips = stats.shape[0]
    total = m_per_strip * n_strips
    strip_mean = s / m_per_strip
    mean = jnp.sum(s, axis=0) / total
    m2_tot = jnp.sum(m2, axis=0) + m_per_strip * jnp.sum((strip_mean - mean) ** 2, axis=0)
    return mean, m2_tot / total


def _bn_scale_shift(gamma, beta, mean, var):
    scale = gamma.astype(jnp.float32) * jax.lax.rsqrt(var + BN_EPS)
    shift = beta.astype(jnp.float32) - mean * scale
    c = scale.shape[0]
    return scale.reshape(1, c), shift.reshape(1, c)


def _vmem_limit_bytes(H, W, Cin, Cout):
    """Shape-derived scoped-VMEM budget (replaces the fixed 48 MiB constant)."""
    f32, bf16 = 4, 2
    hp, hw = H + 2, H * W
    scratch = hp * W * Cin * f32                                   # padded slab
    prep = hp * W * Cin * (2 * f32 + 3 * bf16) + hp * W * 4        # rolled temps + bf16 taps/concat + col idx
    acc = hw * Cout * f32
    blocks = 2 * (hw * Cin * f32                                   # double-buffered image in
                  + hw * Cout * bf16                               # double-buffered image out
                  + 9 * Cin * Cout * bf16                          # weights
                  + 2 * Cout * f32)                                # stats
    est = scratch + prep + acc + blocks
    # 2x headroom for compiler temporaries, clamped so it stays inside every chip's
    # VMEM (v7x has only 64 MiB per TensorCore).
    return int(min(max(2 * est, 16 * 1024 * 1024), 50 * 1024 * 1024))


def basic_block_forward(x_nchw, w1, g1, b1, w2, g2, b2):
    N, Cin, H, W = x_nchw.shape
    Cout = w1.shape[-1]
    assert Cin == Cout, "downsample=None path requires inplanes == planes"
    assert W % 8 == 0, "aligned row-band slices need W % 8 == 0"
    # TODO(synk): pad W (or the flattened row pitch) up to a multiple of 8/16 for
    # ResNet's 28/14/7 feature maps instead of asserting.
    # TODO(synk): stride>1 / downsample branch of BasicBlock (non-default config) not implemented.
    # TODO(synk): nn.BatchNorm2d running_mean/var in-place updates are module state, not reproduced here.
    # TODO(synk): for stem-like resolutions, add a second "parallel" grid axis over H row-strips
    # (halo via manual DMA) to fit v7x's 64 MiB VMEM and feed both TensorCores at small N.
    # TODO(synk): keep the surrounding model NHWC end-to-end to drop the two wrapper transposes.

    x = jnp.transpose(x_nchw, (0, 2, 3, 1)).astype(jnp.float32)        # NHWC f32
    # K-fused bf16 weights: (3, 3, Cin, Cout) -> (3, 3*Cin, Cout), row order kw-major
    # then Cin (matches the tap concatenation order in _conv3x3).
    w1b = w1.astype(jnp.bfloat16).reshape(3, 3 * Cin, Cout)
    w2b = w2.astype(jnp.bfloat16).reshape(3, 3 * Cout, Cout)

    cparams = pltpu.CompilerParams(
        dimension_semantics=("parallel",),
        vmem_limit_bytes=_vmem_limit_bytes(H, W, Cin, Cout))

    img_in = pl.BlockSpec((1, H, W, Cin), lambda n: (n, 0, 0, 0))
    img_out = pl.BlockSpec((1, H, W, Cout), lambda n: (n, 0, 0, 0))
    w_spec1 = pl.BlockSpec((3, 3 * Cin, Cout), lambda n: (0, 0, 0))
    w_spec2 = pl.BlockSpec((3, 3 * Cout, Cout), lambda n: (0, 0, 0))
    vec = pl.BlockSpec((1, Cout), lambda n: (0, 0))
    stats_spec = pl.BlockSpec((1, 2, Cout), lambda n: (n, 0, 0))

    # pass 1: conv1 + per-image BN1 partial stats (y1 stored bf16)
    y1, st1 = pl.pallas_call(
        conv1_kernel,
        grid=(N,),
        in_specs=[img_in, w_spec1],
        out_specs=(img_out, stats_spec),
        out_shape=(jax.ShapeDtypeStruct((N, H, W, Cout), jnp.bfloat16),
                   jax.ShapeDtypeStruct((N, 2, Cout), jnp.float32)),
        scratch_shapes=[pltpu.VMEM((H + 2, W, Cin), jnp.float32)],
        compiler_params=cparams,
    )(x, w1b)

    mean1, var1 = _combine_stats(st1, H * W)
    scale1, shift1 = _bn_scale_shift(g1, b1, mean1, var1)

    # pass 2: BN1-apply + ReLU + conv2 + per-image BN2 partial stats (y2 stored bf16)
    y2, st2 = pl.pallas_call(
        conv2_kernel,
        grid=(N,),
        in_specs=[img_out, vec, vec, w_spec2],
        out_specs=(img_out, stats_spec),
        out_shape=(jax.ShapeDtypeStruct((N, H, W, Cout), jnp.bfloat16),
                   jax.ShapeDtypeStruct((N, 2, Cout), jnp.float32)),
        scratch_shapes=[pltpu.VMEM((H + 2, W, Cout), jnp.float32)],
        compiler_params=cparams,
    )(y1, scale1, shift1, w2b)

    mean2, var2 = _combine_stats(st2, H * W)
    scale2, shift2 = _bn_scale_shift(g2, b2, mean2, var2)

    # pass 3: BN2-apply + residual add + ReLU
    out = pl.pallas_call(
        bn_add_relu_kernel,
        grid=(N,),
        in_specs=[img_out, img_in, vec, vec],
        out_specs=img_out,
        out_shape=jax.ShapeDtypeStruct((N, H, W, Cout), jnp.float32),
        compiler_params=cparams,
    )(y2, x, scale2, shift2)

    return jnp.transpose(out, (0, 3, 1, 2))                            # back to NCHW


# ------------------------------------------------------------------------ reference

def reference_forward(x_nchw, w1, g1, b1, w2, g2, b2):
    """Plain-JAX (f32) reference of the same forward pass."""
    x = jnp.transpose(x_nchw, (0, 2, 3, 1)).astype(jnp.float32)

    def conv(z, w):
        return jax.lax.conv_general_dilated(
            z, w.astype(jnp.float32), window_strides=(1, 1), padding=((1, 1), (1, 1)),
            dimension_numbers=("NHWC", "HWIO", "NHWC"))

    def bn(z, g, b):
        mean = jnp.mean(z, axis=(0, 1, 2), keepdims=True)
        var = jnp.mean((z - mean) ** 2, axis=(0, 1, 2), keepdims=True)
        return (z - mean) * jax.lax.rsqrt(var + BN_EPS) * g + b

    h = jax.nn.relu(bn(conv(x, w1), g1, b1))
    h2 = bn(conv(h, w2), g2, b2)
    out = jax.nn.relu(h2 + x)
    return jnp.transpose(out, (0, 3, 1, 2))


if __name__ == "__main__":
    N, C, H, W = 2, 4, 16, 16           # inplanes = planes = 4 (downsample=None)
    key = jax.random.PRNGKey(0)
    keys = jax.random.split(key, 7)

    x = jax.random.normal(keys[0], (N, C, H, W), jnp.float32)
    # conv weights in HWIO (3, 3, Cin, Cout); BN affine params per channel.
    w1 = 0.1 * jax.random.normal(keys[1], (3, 3, C, C), jnp.float32)
    w2 = 0.1 * jax.random.normal(keys[2], (3, 3, C, C), jnp.float32)
    g1 = 1.0 + 0.1 * jax.random.normal(keys[3], (C,), jnp.float32)
    b1 = 0.1 * jax.random.normal(keys[4], (C,), jnp.float32)
    g2 = 1.0 + 0.1 * jax.random.normal(keys[5], (C,), jnp.float32)
    b2 = 0.1 * jax.random.normal(keys[6], (C,), jnp.float32)

    fwd = jax.jit(basic_block_forward)
    out = jax.block_until_ready(fwd(x, w1, g1, b1, w2, g2, b2))
    ref = jax.block_until_ready(reference_forward(x, w1, g1, b1, w2, g2, b2))

    assert out.shape == (N, C, H, W), out.shape
    assert bool(jnp.all(jnp.isfinite(out)))
    # Kernel uses bf16 MXU operands AND bf16-stored y1/y2 intermediates (f32
    # accumulation / BN / residual math), so tolerance vs the pure-f32 reference is
    # correspondingly looser than a pure-f32 kernel would need.
    max_diff = float(jnp.max(jnp.abs(out - ref)))
    assert max_diff < 1e-1, f"kernel/reference mismatch: {max_diff}"

    print("KERNEL_OK")
</pallas_src>

<mosaic_0001>
module attributes {stable_mosaic.version = 11 : i64} {
  func.func @bn_add_relu_kernel(%arg0: i32, %arg1: memref<1x16x16x4xbf16, #tpu.memory_space<vmem>>, %arg2: memref<1x16x16x4xf32, #tpu.memory_space<vmem>>, %arg3: memref<1x4xf32, #tpu.memory_space<vmem>>, %arg4: memref<1x4xf32, #tpu.memory_space<vmem>>, %arg5: memref<1x16x16x4xf32, #tpu.memory_space<vmem>>) attributes {dimension_semantics = [#tpu.dimension_semantics<parallel>], iteration_bounds = array<i64: 2>, scalar_prefetch = 0 : i64, scratch_operands = 0 : i64, tpu.core_type = #tpu.core_type<tc>, window_params = [{transform_indices = @transform_0, window_bounds = array<i64: 1, 16, 16, 4>}, {transform_indices = @transform_1, window_bounds = array<i64: 1, 16, 16, 4>}, {pipeline_mode = #tpu.pipeline_mode<synchronous>, transform_indices = @transform_2, window_bounds = array<i64: 1, 4>}, {pipeline_mode = #tpu.pipeline_mode<synchronous>, transform_indices = @transform_3, window_bounds = array<i64: 1, 4>}, {transform_indices = @transform_4, window_bounds = array<i64: 1, 16, 16, 4>}]} {
    %c0 = arith.constant 0 : index
    %c0_0 = arith.constant 0 : index
    %c0_1 = arith.constant 0 : index
    %c0_2 = arith.constant 0 : index
    %0 = vector.load %arg1[%c0, %c0_0, %c0_1, %c0_2] : memref<1x16x16x4xbf16, #tpu.memory_space<vmem>>, vector<1x16x16x4xbf16>
    %1 = arith.extf %0 : vector<1x16x16x4xbf16> to vector<1x16x16x4xf32>
    %c0_3 = arith.constant 0 : index
    %c0_4 = arith.constant 0 : index
    %2 = vector.load %arg3[%c0_3, %c0_4] : memref<1x4xf32, #tpu.memory_space<vmem>>, vector<1x4xf32>
    %3 = vector.shape_cast %2 : vector<1x4xf32> to vector<1x1x1x4xf32>
    %4 = vector.broadcast %3 : vector<1x1x1x4xf32> to vector<1x16x16x4xf32>
    %5 = arith.mulf %1, %4 : vector<1x16x16x4xf32>
    %c0_5 = arith.constant 0 : index
    %c0_6 = arith.constant 0 : index
    %6 = vector.load %arg4[%c0_5, %c0_6] : memref<1x4xf32, #tpu.memory_space<vmem>>, vector<1x4xf32>
    %7 = vector.shape_cast %6 : vector<1x4xf32> to vector<1x1x1x4xf32>
    %8 = vector.broadcast %7 : vector<1x1x1x4xf32> to vector<1x16x16x4xf32>
    %9 = arith.addf %5, %8 : vector<1x16x16x4xf32>
    %c0_7 = arith.constant 0 : index
    %c0_8 = arith.constant 0 : index
    %c0_9 = arith.constant 0 : index
    %c0_10 = arith.constant 0 : index
    %10 = vector.load %arg2[%c0_7, %c0_8, %c0_9, %c0_10] : memref<1x16x16x4xf32, #tpu.memory_space<vmem>>, vector<1x16x16x4xf32>
    %11 = arith.addf %9, %10 : vector<1x16x16x4xf32>
    %cst = arith.constant 0.000000e+00 : f32
    %12 = vector.broadcast %cst : f32 to vector<1x16x16x4xf32>
    %13 = arith.maximumf %11, %12 : vector<1x16x16x4xf32>
    %c0_11 = arith.constant 0 : index
    %c0_12 = arith.constant 0 : index
    %c0_13 = arith.constant 0 : index
    %c0_14 = arith.constant 0 : index
    %14 = vector.load %arg5[%c0_11, %c0_12, %c0_13, %c0_14] : memref<1x16x16x4xf32, #tpu.memory_space<vmem>>, vector<1x16x16x4xf32>
    tpu.vector_store %arg5[%c0_11, %c0_12, %c0_13, %c0_14], %13 {strides = array<i32>} : memref<1x16x16x4xf32, #tpu.memory_space<vmem>>, vector<1x16x16x4xf32>,
    return
  }
  func.func @transform_0(%arg0: i32) -> (i32, i32, i32, i32) {
    %c0_i32 = arith.constant 0 : i32
    %c0_i32_0 = arith.constant 0 : i32
    %c0_i32_1 = arith.constant 0 : i32
    %c0_i32_2 = arith.constant 0 : i32
    return %arg0, %c0_i32, %c0_i32_0, %c0_i32_1 : i32, i32, i32, i32
  }
  func.func @transform_1(%arg0: i32) -> (i32, i32, i32, i32) {
    %c0_i32 = arith.constant 0 : i32
    %c0_i32_0 = arith.constant 0 : i32
    %c0_i32_1 = arith.constant 0 : i32
    %c0_i32_2 = arith.constant 0 : i32
    return %arg0, %c0_i32, %c0_i32_0, %c0_i32_1 : i32, i32, i32, i32
  }
  func.func @transform_2(%arg0: i32) -> (i32, i32) {
    %c0_i32 = arith.constant 0 : i32
    %c0_i32_0 = arith.constant 0 : i32
    %c0_i32_1 = arith.constant 0 : i32
    return %c0_i32, %c0_i32_0 : i32, i32
  }
  func.func @transform_3(%arg0: i32) -> (i32, i32) {
    %c0_i32 = arith.constant 0 : i32
    %c0_i32_0 = arith.constant 0 : i32
    %c0_i32_1 = arith.constant 0 : i32
    return %c0_i32, %c0_i32_0 : i32, i32
  }
  func.func @transform_4(%arg0: i32) -> (i32, i32, i32, i32) {
    %c0_i32 = arith.constant 0 : i32
    %c0_i32_0 = arith.constant 0 : i32
    %c0_i32_1 = arith.constant 0 : i32
    %c0_i32_2 = arith.constant 0 : i32
    return %arg0, %c0_i32, %c0_i32_0, %c0_i32_1 : i32, i32, i32, i32
  }
}

module attributes {stable_mosaic.version = 11 : i64} {
  func.func @conv1_kernel(%arg0: i32, %arg1: memref<1x16x16x4xf32, #tpu.memory_space<vmem>>, %arg2: memref<3x12x4xbf16, #tpu.memory_space<vmem>>, %arg3: memref<1x16x16x4xbf16, #tpu.memory_space<vmem>>, %arg4: memref<1x2x4xf32, #tpu.memory_space<vmem>>, %arg5: memref<18x16x4xf32, #tpu.memory_space<vmem>>) attributes {dimension_semantics = [#tpu.dimension_semantics<parallel>], iteration_bounds = array<i64: 2>, scalar_prefetch = 0 : i64, scratch_operands = 1 : i64, tpu.core_type = #tpu.core_type<tc>, window_params = [{transform_indices = @transform_0, window_bounds = array<i64: 1, 16, 16, 4>}, {pipeline_mode = #tpu.pipeline_mode<synchronous>, transform_indices = @transform_1, window_bounds = array<i64: 3, 12, 4>}, {transform_indices = @transform_2, window_bounds = array<i64: 1, 16, 16, 4>}, {transform_indices = @transform_3, window_bounds = array<i64: 1, 2, 4>}]} {
    %c0 = arith.constant 0 : index
    %c0_0 = arith.constant 0 : index
    %c0_1 = arith.constant 0 : index
    %c0_2 = arith.constant 0 : index
    %0 = vector.load %arg1[%c0, %c0_0, %c0_1, %c0_2] : memref<1x16x16x4xf32, #tpu.memory_space<vmem>>, vector<1x16x16x4xf32>
    %1 = vector.shape_cast %0 : vector<1x16x16x4xf32> to vector<16x16x4xf32>
    %cst = arith.constant 0.000000e+00 : f32
    %2 = vector.broadcast %cst : f32 to vector<1x16x4xf32>
    %c0_3 = arith.constant 0 : index
    %c0_4 = arith.constant 0 : index
    %c0_5 = arith.constant 0 : index
    %3 = vector.load %arg5[%c0_3, %c0_4, %c0_5] : memref<18x16x4xf32, #tpu.memory_space<vmem>>, vector<1x16x4xf32>
    tpu.vector_store %arg5[%c0_3, %c0_4, %c0_5], %2 {strides = array<i32>} : memref<18x16x4xf32, #tpu.memory_space<vmem>>, vector<1x16x4xf32>,
    %c17 = arith.constant 17 : index
    %c0_6 = arith.constant 0 : index
    %c0_7 = arith.constant 0 : index
    %4 = vector.load %arg5[%c17, %c0_6, %c0_7] : memref<18x16x4xf32, #tpu.memory_space<vmem>>, vector<1x16x4xf32>
    tpu.vector_store %arg5[%c17, %c0_6, %c0_7], %2 {strides = array<i32>} : memref<18x16x4xf32, #tpu.memory_space<vmem>>, vector<1x16x4xf32>,
    %c1 = arith.constant 1 : index
    %c0_8 = arith.constant 0 : index
    %c0_9 = arith.constant 0 : index
    %5 = vector.load %arg5[%c1, %c0_8, %c0_9] : memref<18x16x4xf32, #tpu.memory_space<vmem>>, vector<16x16x4xf32>
    tpu.vector_store %arg5[%c1, %c0_8, %c0_9], %1 {strides = array<i32>} : memref<18x16x4xf32, #tpu.memory_space<vmem>>, vector<16x16x4xf32>,
    %c0_10 = arith.constant 0 : index
    %c0_11 = arith.constant 0 : index
    %c0_12 = arith.constant 0 : index
    %6 = vector.load %arg5[%c0_10, %c0_11, %c0_12] : memref<18x16x4xf32, #tpu.memory_space<vmem>>, vector<18x16x4xf32>
    %7 = vector.shape_cast %6 : vector<18x16x4xf32> to vector<288x4xf32>
    %8 = tpu.iota {dimensions = array<i32: 0>} : vector<288x1xi32>
    %c16_i32 = arith.constant 16 : i32
    %c0_i32 = arith.constant 0 : i32
    %9 = arith.cmpi eq, %c16_i32, %c0_i32 : i32
    %c1_i32 = arith.constant 1 : i32
    %10 = arith.select %9, %c1_i32, %c16_i32 : i32
    %11 = vector.broadcast %10 : i32 to vector<288x1xi32>
    %12 = arith.remsi %8, %11 : vector<288x1xi32>
    %c0_i32_13 = arith.constant 0 : i32
    %13 = vector.broadcast %c0_i32_13 : i32 to vector<288x1xi32>
    %14 = arith.cmpi ne, %12, %13 : vector<288x1xi32>
    %c0_i32_14 = arith.constant 0 : i32
    %15 = vector.broadcast %c0_i32_14 : i32 to vector<288x1xi32>
    %16 = arith.cmpi slt, %12, %15 : vector<288x1xi32>
    %c0_i32_15 = arith.constant 0 : i32
    %17 = arith.cmpi slt, %10, %c0_i32_15 : i32
    %18 = vector.broadcast %17 : i1 to vector<288x1xi1>
    %19 = vector.broadcast %18 : vector<288x1xi1> to vector<288x1xi1>
    %20 = arith.xori %16, %19 : vector<288x1xi1>
    %21 = arith.andi %20, %14 : vector<288x1xi1>
    %22 = vector.broadcast %10 : i32 to vector<288x1xi32>
    %23 = arith.addi %12, %22 : vector<288x1xi32>
    %24 = arith.select %21, %23, %12 : vector<288x1xi1>, vector<288x1xi32>
    %25 = arith.truncf %7 : vector<288x4xf32> to vector<288x4xbf16>
    %c0_i32_16 = arith.constant 0 : i32
    %26 = vector.broadcast %c0_i32_16 : i32 to vector<288x1xi32>
    %27 = arith.cmpi eq, %24, %26 : vector<288x1xi32>
    %c1_i32_17 = arith.constant 1 : i32
    %28 = tpu.dynamic_rotate %7 by %c1_i32_17 dim 0 : vector<288x4xf32>, i32 -> vector<288x4xf32>
    %29 = arith.truncf %28 : vector<288x4xf32> to vector<288x4xbf16>
    %c0_i32_18 = arith.constant 0 : i32
    %30 = arith.sitofp %c0_i32_18 : i32 to bf16
    %31 = vector.shape_cast %27 : vector<288x1xi1> to vector<288x1xi1>
    %32 = vector.broadcast %31 : vector<288x1xi1> to vector<288x4xi1>
    %33 = vector.broadcast %30 : bf16 to vector<288x4xbf16>
    %34 = arith.select %32, %33, %29 : vector<288x4xi1>, vector<288x4xbf16>
    %c15_i32 = arith.constant 15 : i32
    %35 = vector.broadcast %c15_i32 : i32 to vector<288x1xi32>
    %36 = arith.cmpi eq, %24, %35 : vector<288x1xi32>
    %c287_i32 = arith.constant 287 : i32
    %37 = tpu.dynamic_rotate %7 by %c287_i32 dim 0 : vector<288x4xf32>, i32 -> vector<288x4xf32>
    %38 = arith.truncf %37 : vector<288x4xf32> to vector<288x4xbf16>
    %c0_i32_19 = arith.constant 0 : i32
    %39 = arith.sitofp %c0_i32_19 : i32 to bf16
    %40 = vector.shape_cast %36 : vector<288x1xi1> to vector<288x1xi1>
    %41 = vector.broadcast %40 : vector<288x1xi1> to vector<288x4xi1>
    %42 = vector.broadcast %39 : bf16 to vector<288x4xbf16>
    %43 = arith.select %41, %42, %38 : vector<288x4xi1>, vector<288x4xbf16>
    %44 = tpu.concatenate %34, %25, %43 in 1 : vector<288x4xbf16>, vector<288x4xbf16>, vector<288x4xbf16> -> vector<288x12xbf16>
    %45 = vector.extract_strided_slice %44 {offsets = [0, 0], sizes = [256, 12], strides = [1, 1]} : vector<288x12xbf16> to vector<256x12xbf16>
    %c0_20 = arith.constant 0 : index
    %c0_21 = arith.constant 0 : index
    %c0_22 = arith.constant 0 : index
    %46 = vector.load %arg2[%c0_20, %c0_21, %c0_22] : memref<3x12x4xbf16, #tpu.memory_space<vmem>>, vector<1x12x4xbf16>
    %47 = vector.shape_cast %46 : vector<1x12x4xbf16> to vector<12x4xbf16>
    %cst_23 = arith.constant dense<0.000000e+00> : vector<256x4xf32>
    %48 = tpu.matmul %45, %47, %cst_23 {dimension_numbers = #tpu.dot_dimension_numbers<[1], [0], [0], [1], [0, 0, 1, 1], [], []>} : vector<256x12xbf16>, vector<12x4xbf16>, vector<256x4xf32> -> vector<256x4xf32>
    %49 = vector.extract_strided_slice %44 {offsets = [16, 0], sizes = [256, 12], strides = [1, 1]} : vector<288x12xbf16> to vector<256x12xbf16>
    %c1_24 = arith.constant 1 : index
    %c0_25 = arith.constant 0 : index
    %c0_26 = arith.constant 0 : index
    %50 = vector.load %arg2[%c1_24, %c0_25, %c0_26] : memref<3x12x4xbf16, #tpu.memory_space<vmem>>, vector<1x12x4xbf16>
    %51 = vector.shape_cast %50 : vector<1x12x4xbf16> to vector<12x4xbf16>
    %cst_27 = arith.constant dense<0.000000e+00> : vector<256x4xf32>
    %52 = tpu.matmul %49, %51, %cst_27 {dimension_numbers = #tpu.dot_dimension_numbers<[1], [0], [0], [1], [0, 0, 1, 1], [], []>} : vector<256x12xbf16>, vector<12x4xbf16>, vector<256x4xf32> -> vector<256x4xf32>
    %53 = arith.addf %48, %52 : vector<256x4xf32>
    %54 = vector.extract_strided_slice %44 {offsets = [32, 0], sizes = [256, 12], strides = [1, 1]} : vector<288x12xbf16> to vector<256x12xbf16>
    %c2 = arith.constant 2 : index
    %c0_28 = arith.constant 0 : index
    %c0_29 = arith.constant 0 : index
    %55 = vector.load %arg2[%c2, %c0_28, %c0_29] : memref<3x12x4xbf16, #tpu.memory_space<vmem>>, vector<1x12x4xbf16>
    %56 = vector.shape_cast %55 : vector<1x12x4xbf16> to vector<12x4xbf16>
    %cst_30 = arith.constant dense<0.000000e+00> : vector<256x4xf32>
    %57 = tpu.matmul %54, %56, %cst_30 {dimension_numbers = #tpu.dot_dimension_numbers<[1], [0], [0], [1], [0, 0, 1, 1], [], []>} : vector<256x12xbf16>, vector<12x4xbf16>, vector<256x4xf32> -> vector<256x4xf32>
    %58 = arith.addf %53, %57 : vector<256x4xf32>
    %59 = vector.shape_cast %58 : vector<256x4xf32> to vector<1x16x16x4xf32>
    %60 = arith.truncf %59 : vector<1x16x16x4xf32> to vector<1x16x16x4xbf16>
    %c0_31 = arith.constant 0 : index
    %c0_32 = arith.constant 0 : index
    %c0_33 = arith.constant 0 : index
    %c0_34 = arith.constant 0 : index
    %61 = vector.load %arg3[%c0_31, %c0_32, %c0_33, %c0_34] : memref<1x16x16x4xbf16, #tpu.memory_space<vmem>>, vector<1x16x16x4xbf16>
    tpu.vector_store %arg3[%c0_31, %c0_32, %c0_33, %c0_34], %60 {strides = array<i32>} : memref<1x16x16x4xbf16, #tpu.memory_space<vmem>>, vector<1x16x16x4xbf16>,
    %cst_35 = arith.constant dense<0.000000e+00> : vector<4xf32>
    %62 = vector.multi_reduction <add>, %58, %cst_35 [0] : vector<256x4xf32> to vector<4xf32>
    %63 = vector.shape_cast %62 : vector<4xf32> to vector<1x4xf32>
    %cst_36 = arith.constant 2.560000e+02 : f32
    %64 = vector.broadcast %cst_36 : f32 to vector<1x4xf32>
    %65 = arith.divf %63, %64 : vector<1x4xf32>
    %66 = vector.broadcast %65 : vector<1x4xf32> to vector<256x4xf32>
    %67 = arith.subf %58, %66 : vector<256x4xf32>
    %68 = arith.mulf %67, %67 : vector<256x4xf32>
    %cst_37 = arith.constant dense<0.000000e+00> : vector<4xf32>
    %69 = vector.multi_reduction <add>, %68, %cst_37 [0] : vector<256x4xf32> to vector<4xf32>
    %70 = vector.shape_cast %69 : vector<4xf32> to vector<1x4xf32>
    %c0_38 = arith.constant 0 : index
    %c0_39 = arith.constant 0 : index
    %c0_40 = arith.constant 0 : index
    %71 = vector.load %arg4[%c0_38, %c0_39, %c0_40] : memref<1x2x4xf32, #tpu.memory_space<vmem>>, vector<1x1x4xf32>
    %72 = vector.shape_cast %71 : vector<1x1x4xf32> to vector<1x4xf32>
    %73 = vector.shape_cast %63 : vector<1x4xf32> to vector<1x1x4xf32>
    tpu.vector_store %arg4[%c0_38, %c0_39, %c0_40], %73 {strides = array<i32>} : memref<1x2x4xf32, #tpu.memory_space<vmem>>, vector<1x1x4xf32>,
    %c0_41 = arith.constant 0 : index
    %c1_42 = arith.constant 1 : index
    %c0_43 = arith.constant 0 : index
    %74 = vector.load %arg4[%c0_41, %c1_42, %c0_43] : memref<1x2x4xf32, #tpu.memory_space<vmem>>, vector<1x1x4xf32>
    %75 = vector.shape_cast %74 : vector<1x1x4xf32> to vector<1x4xf32>
    %76 = vector.shape_cast %70 : vector<1x4xf32> to vector<1x1x4xf32>
    tpu.vector_store %arg4[%c0_41, %c1_42, %c0_43], %76 {strides = array<i32>} : memref<1x2x4xf32, #tpu.memory_space<vmem>>, vector<1x1x4xf32>,
    return
  }
  func.func @transform_0(%arg0: i32) -> (i32, i32, i32, i32) {
    %c0_i32 = arith.constant 0 : i32
    %c0_i32_0 = arith.constant 0 : i32
    %c0_i32_1 = arith.constant 0 : i32
    %c0_i32_2 = arith.constant 0 : i32
    return %arg0, %c0_i32, %c0_i32_0, %c0_i32_1 : i32, i32, i32, i32
  }
  func.func @transform_1(%arg0: i32) -> (i32, i32, i32) {
    %c0_i32 = arith.constant 0 : i32
    %c0_i32_0 = arith.constant 0 : i32
    %c0_i32_1 = arith.constant 0 : i32
    %c0_i32_2 = arith.constant 0 : i32
    return %c0_i32, %c0_i32_0, %c0_i32_1 : i32, i32, i32
  }
  func.func @transform_2(%arg0: i32) -> (i32, i32, i32, i32) {
    %c0_i32 = arith.constant 0 : i32
    %c0_i32_0 = arith.constant 0 : i32
    %c0_i32_1 = arith.constant 0 : i32
    %c0_i32_2 = arith.constant 0 : i32
    return %arg0, %c0_i32, %c0_i32_0, %c0_i32_1 : i32, i32, i32, i32
  }
  func.func @transform_3(%arg0: i32) -> (i32, i32, i32) {
    %c0_i32 = arith.constant 0 : i32
    %c0_i32_0 = arith.constant 0 : i32
    %c0_i32_1 = arith.constant 0 : i32
    return %arg0, %c0_i32, %c0_i32_0 : i32, i32, i32
  }
}

module attributes {stable_mosaic.version = 11 : i64} {
  func.func @conv2_kernel(%arg0: i32, %arg1: memref<1x16x16x4xbf16, #tpu.memory_space<vmem>>, %arg2: memref<1x4xf32, #tpu.memory_space<vmem>>, %arg3: memref<1x4xf32, #tpu.memory_space<vmem>>, %arg4: memref<3x12x4xbf16, #tpu.memory_space<vmem>>, %arg5: memref<1x16x16x4xbf16, #tpu.memory_space<vmem>>, %arg6: memref<1x2x4xf32, #tpu.memory_space<vmem>>, %arg7: memref<18x16x4xf32, #tpu.memory_space<vmem>>) attributes {dimension_semantics = [#tpu.dimension_semantics<parallel>], iteration_bounds = array<i64: 2>, scalar_prefetch = 0 : i64, scratch_operands = 1 : i64, tpu.core_type = #tpu.core_type<tc>, window_params = [{transform_indices = @transform_0, window_bounds = array<i64: 1, 16, 16, 4>}, {pipeline_mode = #tpu.pipeline_mode<synchronous>, transform_indices = @transform_1, window_bounds = array<i64: 1, 4>}, {pipeline_mode = #tpu.pipeline_mode<synchronous>, transform_indices = @transform_2, window_bounds = array<i64: 1, 4>}, {pipeline_mode = #tpu.pipeline_mode<synchronous>, transform_indices = @transform_3, window_bounds = array<i64: 3, 12, 4>}, {transform_indices = @transform_4, window_bounds = array<i64: 1, 16, 16, 4>}, {transform_indices = @transform_5, window_bounds = array<i64: 1, 2, 4>}]} {
    %c0 = arith.constant 0 : index
    %c0_0 = arith.constant 0 : index
    %c0_1 = arith.constant 0 : index
    %c0_2 = arith.constant 0 : index
    %0 = vector.load %arg1[%c0, %c0_0, %c0_1, %c0_2] : memref<1x16x16x4xbf16, #tpu.memory_space<vmem>>, vector<1x16x16x4xbf16>
    %1 = vector.shape_cast %0 : vector<1x16x16x4xbf16> to vector<16x16x4xbf16>
    %2 = arith.extf %1 : vector<16x16x4xbf16> to vector<16x16x4xf32>
    %3 = vector.shape_cast %2 : vector<16x16x4xf32> to vector<256x4xf32>
    %c0_3 = arith.constant 0 : index
    %c0_4 = arith.constant 0 : index
    %4 = vector.load %arg2[%c0_3, %c0_4] : memref<1x4xf32, #tpu.memory_space<vmem>>, vector<1x4xf32>
    %5 = vector.broadcast %4 : vector<1x4xf32> to vector<256x4xf32>
    %6 = arith.mulf %3, %5 : vector<256x4xf32>
    %c0_5 = arith.constant 0 : index
    %c0_6 = arith.constant 0 : index
    %7 = vector.load %arg3[%c0_5, %c0_6] : memref<1x4xf32, #tpu.memory_space<vmem>>, vector<1x4xf32>
    %8 = vector.broadcast %7 : vector<1x4xf32> to vector<256x4xf32>
    %9 = arith.addf %6, %8 : vector<256x4xf32>
    %cst = arith.constant 0.000000e+00 : f32
    %10 = vector.broadcast %cst : f32 to vector<256x4xf32>
    %11 = arith.maximumf %9, %10 : vector<256x4xf32>
    %12 = vector.shape_cast %11 : vector<256x4xf32> to vector<16x16x4xf32>
    %cst_7 = arith.constant 0.000000e+00 : f32
    %13 = vector.broadcast %cst_7 : f32 to vector<1x16x4xf32>
    %c0_8 = arith.constant 0 : index
    %c0_9 = arith.constant 0 : index
    %c0_10 = arith.constant 0 : index
    %14 = vector.load %arg7[%c0_8, %c0_9, %c0_10] : memref<18x16x4xf32, #tpu.memory_space<vmem>>, vector<1x16x4xf32>
    tpu.vector_store %arg7[%c0_8, %c0_9, %c0_10], %13 {strides = array<i32>} : memref<18x16x4xf32, #tpu.memory_space<vmem>>, vector<1x16x4xf32>,
    %c17 = arith.constant 17 : index
    %c0_11 = arith.constant 0 : index
    %c0_12 = arith.constant 0 : index
    %15 = vector.load %arg7[%c17, %c0_11, %c0_12] : memref<18x16x4xf32, #tpu.memory_space<vmem>>, vector<1x16x4xf32>
    tpu.vector_store %arg7[%c17, %c0_11, %c0_12], %13 {strides = array<i32>} : memref<18x16x4xf32, #tpu.memory_space<vmem>>, vector<1x16x4xf32>,
    %c1 = arith.constant 1 : index
    %c0_13 = arith.constant 0 : index
    %c0_14 = arith.constant 0 : index
    %16 = vector.load %arg7[%c1, %c0_13, %c0_14] : memref<18x16x4xf32, #tpu.memory_space<vmem>>, vector<16x16x4xf32>
    tpu.vector_store %arg7[%c1, %c0_13, %c0_14], %12 {strides = array<i32>} : memref<18x16x4xf32, #tpu.memory_space<vmem>>, vector<16x16x4xf32>,
    %c0_15 = arith.constant 0 : index
    %c0_16 = arith.constant 0 : index
    %c0_17 = arith.constant 0 : index
    %17 = vector.load %arg7[%c0_15, %c0_16, %c0_17] : memref<18x16x4xf32, #tpu.memory_space<vmem>>, vector<18x16x4xf32>
    %18 = vector.shape_cast %17 : vector<18x16x4xf32> to vector<288x4xf32>
    %19 = tpu.iota {dimensions = array<i32: 0>} : vector<288x1xi32>
    %c16_i32 = arith.constant 16 : i32
    %c0_i32 = arith.constant 0 : i32
    %20 = arith.cmpi eq, %c16_i32, %c0_i32 : i32
    %c1_i32 = arith.constant 1 : i32
    %21 = arith.select %20, %c1_i32, %c16_i32 : i32
    %22 = vector.broadcast %21 : i32 to vector<288x1xi32>
    %23 = arith.remsi %19, %22 : vector<288x1xi32>
    %c0_i32_18 = arith.constant 0 : i32
    %24 = vector.broadcast %c0_i32_18 : i32 to vector<288x1xi32>
    %25 = arith.cmpi ne, %23, %24 : vector<288x1xi32>
    %c0_i32_19 = arith.constant 0 : i32
    %26 = vector.broadcast %c0_i32_19 : i32 to vector<288x1xi32>
    %27 = arith.cmpi slt, %23, %26 : vector<288x1xi32>
    %c0_i32_20 = arith.constant 0 : i32
    %28 = arith.cmpi slt, %21, %c0_i32_20 : i32
    %29 = vector.broadcast %28 : i1 to vector<288x1xi1>
    %30 = vector.broadcast %29 : vector<288x1xi1> to vector<288x1xi1>
    %31 = arith.xori %27, %30 : vector<288x1xi1>
    %32 = arith.andi %31, %25 : vector<288x1xi1>
    %33 = vector.broadcast %21 : i32 to vector<288x1xi32>
    %34 = arith.addi %23, %33 : vector<288x1xi32>
    %35 = arith.select %32, %34, %23 : vector<288x1xi1>, vector<288x1xi32>
    %36 = arith.truncf %18 : vector<288x4xf32> to vector<288x4xbf16>
    %c0_i32_21 = arith.constant 0 : i32
    %37 = vector.broadcast %c0_i32_21 : i32 to vector<288x1xi32>
    %38 = arith.cmpi eq, %35, %37 : vector<288x1xi32>
    %c1_i32_22 = arith.constant 1 : i32
    %39 = tpu.dynamic_rotate %18 by %c1_i32_22 dim 0 : vector<288x4xf32>, i32 -> vector<288x4xf32>
    %40 = arith.truncf %39 : vector<288x4xf32> to vector<288x4xbf16>
    %c0_i32_23 = arith.constant 0 : i32
    %41 = arith.sitofp %c0_i32_23 : i32 to bf16
    %42 = vector.shape_cast %38 : vector<288x1xi1> to vector<288x1xi1>
    %43 = vector.broadcast %42 : vector<288x1xi1> to vector<288x4xi1>
    %44 = vector.broadcast %41 : bf16 to vector<288x4xbf16>
    %45 = arith.select %43, %44, %40 : vector<288x4xi1>, vector<288x4xbf16>
    %c15_i32 = arith.constant 15 : i32
    %46 = vector.broadcast %c15_i32 : i32 to vector<288x1xi32>
    %47 = arith.cmpi eq, %35, %46 : vector<288x1xi32>
    %c287_i32 = arith.constant 287 : i32
    %48 = tpu.dynamic_rotate %18 by %c287_i32 dim 0 : vector<288x4xf32>, i32 -> vector<288x4xf32>
    %49 = arith.truncf %48 : vector<288x4xf32> to vector<288x4xbf16>
    %c0_i32_24 = arith.constant 0 : i32
    %50 = arith.sitofp %c0_i32_24 : i32 to bf16
    %51 = vector.shape_cast %47 : vector<288x1xi1> to vector<288x1xi1>
    %52 = vector.broadcast %51 : vector<288x1xi1> to vector<288x4xi1>
    %53 = vector.broadcast %50 : bf16 to vector<288x4xbf16>
    %54 = arith.select %52, %53, %49 : vector<288x4xi1>, vector<288x4xbf16>
    %55 = tpu.concatenate %45, %36, %54 in 1 : vector<288x4xbf16>, vector<288x4xbf16>, vector<288x4xbf16> -> vector<288x12xbf16>
    %56 = vector.extract_strided_slice %55 {offsets = [0, 0], sizes = [256, 12], strides = [1, 1]} : vector<288x12xbf16> to vector<256x12xbf16>
    %c0_25 = arith.constant 0 : index
    %c0_26 = arith.constant 0 : index
    %c0_27 = arith.constant 0 : index
    %57 = vector.load %arg4[%c0_25, %c0_26, %c0_27] : memref<3x12x4xbf16, #tpu.memory_space<vmem>>, vector<1x12x4xbf16>
    %58 = vector.shape_cast %57 : vector<1x12x4xbf16> to vector<12x4xbf16>
    %cst_28 = arith.constant dense<0.000000e+00> : vector<256x4xf32>
    %59 = tpu.matmul %56, %58, %cst_28 {dimension_numbers = #tpu.dot_dimension_numbers<[1], [0], [0], [1], [0, 0, 1, 1], [], []>} : vector<256x12xbf16>, vector<12x4xbf16>, vector<256x4xf32> -> vector<256x4xf32>
    %60 = vector.extract_strided_slice %55 {offsets = [16, 0], sizes = [256, 12], strides = [1, 1]} : vector<288x12xbf16> to vector<256x12xbf16>
    %c1_29 = arith.constant 1 : index
    %c0_30 = arith.constant 0 : index
    %c0_31 = arith.constant 0 : index
    %61 = vector.load %arg4[%c1_29, %c0_30, %c0_31] : memref<3x12x4xbf16, #tpu.memory_space<vmem>>, vector<1x12x4xbf16>
    %62 = vector.shape_cast %61 : vector<1x12x4xbf16> to vector<12x4xbf16>
    %cst_32 = arith.constant dense<0.000000e+00> : vector<256x4xf32>
    %63 = tpu.matmul %60, %62, %cst_32 {dimension_numbers = #tpu.dot_dimension_numbers<[1], [0], [0], [1], [0, 0, 1, 1], [], []>} : vector<256x12xbf16>, vector<12x4xbf16>, vector<256x4xf32> -> vector<256x4xf32>
    %64 = arith.addf %59, %63 : vector<256x4xf32>
    %65 = vector.extract_strided_slice %55 {offsets = [32, 0], sizes = [256, 12], strides = [1, 1]} : vector<288x12xbf16> to vector<256x12xbf16>
    %c2 = arith.constant 2 : index
    %c0_33 = arith.constant 0 : index
    %c0_34 = arith.constant 0 : index
    %66 = vector.load %arg4[%c2, %c0_33, %c0_34] : memref<3x12x4xbf16, #tpu.memory_space<vmem>>, vector<1x12x4xbf16>
    %67 = vector.shape_cast %66 : vector<1x12x4xbf16> to vector<12x4xbf16>
    %cst_35 = arith.constant dense<0.000000e+00> : vector<256x4xf32>
    %68 = tpu.matmul %65, %67, %cst_35 {dimension_numbers = #tpu.dot_dimension_numbers<[1], [0], [0], [1], [0, 0, 1, 1], [], []>} : vector<256x12xbf16>, vector<12x4xbf16>, vector<256x4xf32> -> vector<256x4xf32>
    %69 = arith.addf %64, %68 : vector<256x4xf32>
    %70 = vector.shape_cast %69 : vector<256x4xf32> to vector<1x16x16x4xf32>
    %71 = arith.truncf %70 : vector<1x16x16x4xf32> to vector<1x16x16x4xbf16>
    %c0_36 = arith.constant 0 : index
    %c0_37 = arith.constant 0 : index
    %c0_38 = arith.constant 0 : index
    %c0_39 = arith.constant 0 : index
    %72 = vector.load %arg5[%c0_36, %c0_37, %c0_38, %c0_39] : memref<1x16x16x4xbf16, #tpu.memory_space<vmem>>, vector<1x16x16x4xbf16>
    tpu.vector_store %arg5[%c0_36, %c0_37, %c0_38, %c0_39], %71 {strides = array<i32>} : memref<1x16x16x4xbf16, #tpu.memory_space<vmem>>, vector<1x16x16x4xbf16>,
    %cst_40 = arith.constant dense<0.000000e+00> : vector<4xf32>
    %73 = vector.multi_reduction <add>, %69, %cst_40 [0] : vector<256x4xf32> to vector<4xf32>
    %74 = vector.shape_cast %73 : vector<4xf32> to vector<1x4xf32>
    %cst_41 = arith.constant 2.560000e+02 : f32
    %75 = vector.broadcast %cst_41 : f32 to vector<1x4xf32>
    %76 = arith.divf %74, %75 : vector<1x4xf32>
    %77 = vector.broadcast %76 : vector<1x4xf32> to vector<256x4xf32>
    %78 = arith.subf %69, %77 : vector<256x4xf32>
    %79 = arith.mulf %78, %78 : vector<256x4xf32>
    %cst_42 = arith.constant dense<0.000000e+00> : vector<4xf32>
    %80 = vector.multi_reduction <add>, %79, %cst_42 [0] : vector<256x4xf32> to vector<4xf32>
    %81 = vector.shape_cast %80 : vector<4xf32> to vector<1x4xf32>
    %c0_43 = arith.constant 0 : index
    %c0_44 = arith.constant 0 : index
    %c0_45 = arith.constant 0 : index
    %82 = vector.load %arg6[%c0_43, %c0_44, %c0_45] : memref<1x2x4xf32, #tpu.memory_space<vmem>>, vector<1x1x4xf32>
    %83 = vector.shape_cast %82 : vector<1x1x4xf32> to vector<1x4xf32>
    %84 = vector.shape_cast %74 : vector<1x4xf32> to vector<1x1x4xf32>
    tpu.vector_store %arg6[%c0_43, %c0_44, %c0_45], %84 {strides = array<i32>} : memref<1x2x4xf32, #tpu.memory_space<vmem>>, vector<1x1x4xf32>,
    %c0_46 = arith.constant 0 : index
    %c1_47 = arith.constant 1 : index
    %c0_48 = arith.constant 0 : index
    %85 = vector.load %arg6[%c0_46, %c1_47, %c0_48] : memref<1x2x4xf32, #tpu.memory_space<vmem>>, vector<1x1x4xf32>
    %86 = vector.shape_cast %85 : vector<1x1x4xf32> to vector<1x4xf32>
    %87 = vector.shape_cast %81 : vector<1x4xf32> to vector<1x1x4xf32>
    tpu.vector_store %arg6[%c0_46, %c1_47, %c0_48], %87 {strides = array<i32>} : memref<1x2x4xf32, #tpu.memory_space<vmem>>, vector<1x1x4xf32>,
    return
  }
  func.func @transform_0(%arg0: i32) -> (i32, i32, i32, i32) {
    %c0_i32 = arith.constant 0 : i32
    %c0_i32_0 = arith.constant 0 : i32
    %c0_i32_1 = arith.constant 0 : i32
    %c0_i32_2 = arith.constant 0 : i32
    return %arg0, %c0_i32, %c0_i32_0, %c0_i32_1 : i32, i32, i32, i32
  }
  func.func @transform_1(%arg0: i32) -> (i32, i32) {
    %c0_i32 = arith.constant 0 : i32
    %c0_i32_0 = arith.constant 0 : i32
    %c0_i32_1 = arith.constant 0 : i32
    return %c0_i32, %c0_i32_0 : i32, i32
  }
  func.func @transform_2(%arg0: i32) -> (i32, i32) {
    %c0_i32 = arith.constant 0 : i32
    %c0_i32_0 = arith.constant 0 : i32
    %c0_i32_1 = arith.constant 0 : i32
    return %c0_i32, %c0_i32_0 : i32, i32
  }
  func.func @transform_3(%arg0: i32) -> (i32, i32, i32) {
    %c0_i32 = arith.constant 0 : i32
    %c0_i32_0 = arith.constant 0 : i32
    %c0_i32_1 = arith.constant 0 : i32
    %c0_i32_2 = arith.constant 0 : i32
    return %c0_i32, %c0_i32_0, %c0_i32_1 : i32, i32, i32
  }
  func.func @transform_4(%arg0: i32) -> (i32, i32, i32, i32) {
    %c0_i32 = arith.constant 0 : i32
    %c0_i32_0 = arith.constant 0 : i32
    %c0_i32_1 = arith.constant 0 : i32
    %c0_i32_2 = arith.constant 0 : i32
    return %arg0, %c0_i32, %c0_i32_0, %c0_i32_1 : i32, i32, i32, i32
  }
  func.func @transform_5(%arg0: i32) -> (i32, i32, i32) {
    %c0_i32 = arith.constant 0 : i32
    %c0_i32_0 = arith.constant 0 : i32
    %c0_i32_1 = arith.constant 0 : i32
    return %arg0, %c0_i32, %c0_i32_0 : i32, i32, i32
  }
}

</mosaic_0001>

<bundles_post_ra>
// kernel: basic_block_forward.5
= control target key start
LH: loop header
LB: loop body
LE: loop exit
PB: predicated region body
PF: predicated region fallthrough
CT: control target
= control target key end

     0   :  { %s694_s15 = smov 0   ;;  %s914_s0 = inlined_call_operand.vmem [shape: bf16[2,16,16,4], index: 0, kind: input, shape index: {}]   ;;  %s915_s1 = inlined_call_operand.vmem [shape: f32[2,16,16,4], index: 1, kind: input, shape index: {}]   ;;  %s916_s2 = inlined_call_operand.vmem [shape: f32[1,4], index: 2, kind: input, shape index: {}]   ;;  %s917_s3 = inlined_call_operand.vmem [shape: f32[1,4], index: 3, kind: input, shape index: {}]   ;;  %s918_s4 = inlined_call_operand.vmem [shape: f32[2,16,16,4], index: 4, kind: output, shape index: {}]  }
   0x1 LB: > { %s556_s16 = sadd.s32 4294967295, %s667_s15   ;;  %p560_p0 = scmp.ge.s32.totalorder %s667_s15, 1  ;;  %s667_s15 = sphi %s694_s15, %s14_s15  }
   0x2   : > { %p172_p1 = scmp.lt.s32.totalorder %s667_s15, 3 }
   0x4   : > { %p173_p2 = pnand %p560_p0, %p172_p1 }
   0x5   : > { %p203_p3 = scmp.lt.s32.totalorder (!%p173_p2), %s556_s16, 1  ;;  %v715_v1 = vld [vmem:[%s916_s2] ss:$0 sm:$0xff] (!%p173_p2)  ;;  %vm456_vm0 = vcmask (!%p173_p2), 31744  }
   0x6   : > { %176 = sbr.rel (%p173_p2) target bundleno = 60 (0x3c), region = 36  ;;  %v728_v5 = vld [vmem:[%s917_s3] ss:$0 sm:$0xff] (!%p173_p2) }
   0xd   : > { %s920_s16 = smov (!%p203_p3, %s556_s16), 1 }
   0xe   : > { %s571_s17 = sshll.u32 %s920_s16, 7  ;;  %s572_s18 = sshll.u32 %s920_s16, 8 }
   0xf   : > { %s709_s21 = scalar_lea.vmem %s914_s0, %s571_s17  ;;  %s722_s26 = scalar_lea.vmem %s915_s1, %s572_s18 }
  0x10   : > { %v575_v0 = vld [vmem:[%s709_s21] sm:$0xff]   ;;  %v638_v4 = vld [vmem:[%s709_s21 + $0x8] sm:$0xff]   ;;  %v639_v8 = vld [vmem:[%s709_s21 + $0x10] sm:$0xff]   ;;  %s759_s5 = scalar_lea.vmem %s918_s4, %s572_s18 }
  0x11   : > { %v576_v2 = vunpack.c.l.bf16 %v575_v0  ;;  %v577_v3 = vunpack.c.h.bf16 %v575_v0  ;;  %v580_v6 = vunpack.c.l.bf16 %v638_v4  ;;  %v581_v7 = vunpack.c.h.bf16 %v638_v4  ;;  %v640_v13 = vld [vmem:[%s709_s21 + $0x18] sm:$0xff]   ;;  %v360_v14 = vld [vmem:[%s722_s26] sm:$0xff]  ;;  %v361_v15 = vld [vmem:[%s722_s26 + $0x8] sm:$0xff] }
  0x12   : > { %v584_v11 = vunpack.c.l.bf16 %v639_v8  ;;  %v585_v12 = vunpack.c.h.bf16 %v639_v8  ;;  %v588_v18 = vunpack.c.l.bf16 %v640_v13  ;;  %v589_v19 = vunpack.c.h.bf16 %v640_v13  ;;  %v362_v22 = vld [vmem:[%s722_s26 + $0x10] sm:$0xff]  ;;  %v363_v23 = vld [vmem:[%s722_s26 + $0x18] sm:$0xff]  ;;  %v364_v28 = vld [vmem:[%s722_s26 + $0x20] sm:$0xff] }
  0x13   : > { %v289_v9 = vmul.f32 %v576_v2, %v715_v1  ;;  %v290_v10 = vmul.f32 %v577_v3, %v715_v1  ;;  %v291_v16 = vmul.f32 %v580_v6, %v715_v1  ;;  %v292_v17 = vmul.f32 %v581_v7, %v715_v1  ;;  %v365_v29 = vld [vmem:[%s722_s26 + $0x28] sm:$0xff]  ;;  %v366_v36 = vld [vmem:[%s722_s26 + $0x30] sm:$0xff]  ;;  %v367_v37 = vld [vmem:[%s722_s26 + $0x38] sm:$0xff] }
  0x14   : > { %v293_v24 = vmul.f32 %v584_v11, %v715_v1  ;;  %v294_v25 = vmul.f32 %v585_v12, %v715_v1  ;;  %v295_v30 = vmul.f32 %v588_v18, %v715_v1  ;;  %v296_v31 = vmul.f32 %v589_v19, %v715_v1  ;;  %v641_v42 = vld [vmem:[%s709_s21 + $0x20] sm:$0xff]   ;;  %v642_v47 = vld [vmem:[%s709_s21 + $0x28] sm:$0xff]   ;;  %v643_v52 = vld [vmem:[%s709_s21 + $0x30] sm:$0xff]  }
  0x15   : > { %v328_v20 = vadd.f32 %v728_v5, %v289_v9  ;;  %v329_v21 = vadd.f32 %v728_v5, %v290_v10  ;;  %v330_v26 = vadd.f32 %v728_v5, %v291_v16  ;;  %v331_v27 = vadd.f32 %v728_v5, %v292_v17  ;;  %v644_v57 = vld [vmem:[%s709_s21 + $0x38] sm:$0xff]   ;;  %v368_v3 = vld [vmem:[%s722_s26 + $0x40] sm:$0xff]  ;;  %v369_v4 = vld [vmem:[%s722_s26 + $0x48] sm:$0xff] }
  0x16   : > { %v332_v34 = vadd.f32 %v728_v5, %v293_v24  ;;  %v333_v35 = vadd.f32 %v728_v5, %v294_v25  ;;  %v334_v40 = vadd.f32 %v728_v5, %v295_v30  ;;  %v335_v41 = vadd.f32 %v728_v5, %v296_v31  ;;  %v370_v12 = vld [vmem:[%s722_s26 + $0x50] sm:$0xff]  ;;  %v371_v13 = vld [vmem:[%s722_s26 + $0x58] sm:$0xff]  ;;  %v372_v18 = vld [vmem:[%s722_s26 + $0x60] sm:$0xff] }
  0x17   : > { %v392_v32 = vadd.f32 %v360_v14, %v328_v20  ;;  %v393_v33 = vadd.f32 %v361_v15, %v329_v21  ;;  %v394_v38 = vadd.f32 %v362_v22, %v330_v26  ;;  %v395_v39 = vadd.f32 %v363_v23, %v331_v27  ;;  %v373_v19 = vld [vmem:[%s722_s26 + $0x68] sm:$0xff]  ;;  %v374_v26 = vld [vmem:[%s722_s26 + $0x70] sm:$0xff]  ;;  %v375_v27 = vld [vmem:[%s722_s26 + $0x78] sm:$0xff] }
  0x18   : > { %v396_v45 = vadd.f32 %v364_v28, %v332_v34  ;;  %v397_v46 = vadd.f32 %v365_v29, %v333_v35  ;;  %v398_v50 = vadd.f32 %v366_v36, %v334_v40  ;;  %v399_v51 = vadd.f32 %v367_v37, %v335_v41  ;;  %v646_v37 = vld [vmem:[%s709_s21 + $0x48] sm:$0xff]  }
  0x19   : > { %v424_v43 = vmax.f32 %v392_v32, 0.0  ;;  %v425_v44 = vmax.f32 %v393_v33, 0.0  ;;  %v426_v48 = vmax.f32 %v394_v38, 0.0  ;;  %v427_v49 = vmax.f32 %v395_v39, 0.0  ;;  %v645_v32 = vld [vmem:[%s709_s21 + $0x40] sm:$0xff]  }
  0x1a   : > { %v428_v53 = vmax.f32 %v396_v45, 0.0  ;;  %v429_v54 = vmax.f32 %v397_v46, 0.0  ;;  %v592_v55 = vunpack.c.l.bf16 %v641_v42  ;;  %v593_v56 = vunpack.c.h.bf16 %v641_v42  ;;  %v647_v42 = vld [vmem:[%s709_s21 + $0x50] sm:$0xff]  }
  0x1b   : > { %457 = vst.msk [vmem:[%s759_s5] sm:$0xff] %vm456_vm0, %v424_v43  ;;  %458 = vst.msk [vmem:[%s759_s5 + $0x8] sm:$0xff] %vm456_vm0, %v425_v44  ;;  %v430_v58 = vmax.f32 %v398_v50, 0.0  ;;  %v431_v59 = vmax.f32 %v399_v51, 0.0  ;;  %v596_v60 = vunpack.c.l.bf16 %v642_v47  ;;  %v597_v61 = vunpack.c.h.bf16 %v642_v47  ;;  %v648_v47 = vld [vmem:[%s709_s21 + $0x58] sm:$0xff]  }
  0x1c   : > { %459 = vst.msk [vmem:[%s759_s5 + $0x10] sm:$0xff] %vm456_vm0, %v426_v48  ;;  %460 = vst.msk [vmem:[%s759_s5 + $0x18] sm:$0xff] %vm456_vm0, %v427_v49  ;;  %v297_v62 = vmul.f32 %v592_v55, %v715_v1  ;;  %v298_v63 = vmul.f32 %v593_v56, %v715_v1  ;;  %v600_v0 = vunpack.c.l.bf16 %v643_v52  ;;  %v601_v2 = vunpack.c.h.bf16 %v643_v52  ;;  %v376_v56 = vld [vmem:[%s722_s26 + $0x80] sm:$0xff] }
  0x1d   : > { %461 = vst.msk [vmem:[%s759_s5 + $0x20] sm:$0xff] %vm456_vm0, %v428_v53  ;;  %462 = vst.msk [vmem:[%s759_s5 + $0x28] sm:$0xff] %vm456_vm0, %v429_v54  ;;  %v299_v6 = vmul.f32 %v596_v60, %v715_v1  ;;  %v300_v7 = vmul.f32 %v597_v61, %v715_v1  ;;  %v604_v8 = vunpack.c.l.bf16 %v644_v57  ;;  %v605_v9 = vunpack.c.h.bf16 %v644_v57  ;;  %v377_v57 = vld [vmem:[%s722_s26 + $0x88] sm:$0xff] }
  0x1e   : > { %463 = vst.msk [vmem:[%s759_s5 + $0x30] sm:$0xff] %vm456_vm0, %v430_v58  ;;  %464 = vst.msk [vmem:[%s759_s5 + $0x38] sm:$0xff] %vm456_vm0, %v431_v59  ;;  %v336_v10 = vadd.f32 %v728_v5, %v297_v62  ;;  %v337_v11 = vadd.f32 %v728_v5, %v298_v63  ;;  %v301_v14 = vmul.f32 %v600_v0, %v715_v1  ;;  %v608_v45 = vunpack.c.l.bf16 %v645_v32  ;;  %v378_v0 = vld [vmem:[%s722_s26 + $0x90] sm:$0xff] }
  0x1f   : > { %v302_v15 = vmul.f32 %v601_v2, %v715_v1  ;;  %v338_v16 = vadd.f32 %v728_v5, %v299_v6  ;;  %v339_v17 = vadd.f32 %v728_v5, %v300_v7  ;;  %v303_v20 = vmul.f32 %v604_v8, %v715_v1  ;;  %v379_v2 = vld [vmem:[%s722_s26 + $0x98] sm:$0xff]  ;;  %v380_v8 = vld [vmem:[%s722_s26 + $0xa0] sm:$0xff] }
  0x20   : > { %v304_v21 = vmul.f32 %v605_v9, %v715_v1  ;;  %v400_v22 = vadd.f32 %v368_v3, %v336_v10  ;;  %v401_v23 = vadd.f32 %v369_v4, %v337_v11  ;;  %v340_v24 = vadd.f32 %v728_v5, %v301_v14  ;;  %v381_v9 = vld [vmem:[%s722_s26 + $0xa8] sm:$0xff] }
  0x21   : > { %v341_v25 = vadd.f32 %v728_v5, %v302_v15  ;;  %v402_v28 = vadd.f32 %v370_v12, %v338_v16  ;;  %v403_v29 = vadd.f32 %v371_v13, %v339_v17  ;;  %v342_v30 = vadd.f32 %v728_v5, %v303_v20  ;;  %v382_v16 = vld [vmem:[%s722_s26 + $0xb0] sm:$0xff]  ;;  %v383_v17 = vld [vmem:[%s722_s26 + $0xb8] sm:$0xff] }
  0x22   : > { %v343_v31 = vadd.f32 %v728_v5, %v304_v21  ;;  %v432_v33 = vmax.f32 %v400_v22, 0.0  ;;  %v433_v34 = vmax.f32 %v401_v23, 0.0  ;;  %v404_v35 = vadd.f32 %v372_v18, %v340_v24  ;;  %v649_v22 = vld [vmem:[%s709_s21 + $0x60] sm:$0xff]  }
  0x23   : > { %v405_v36 = vadd.f32 %v373_v19, %v341_v25  ;;  %v434_v38 = vmax.f32 %v402_v28, 0.0  ;;  %v435_v39 = vmax.f32 %v403_v29, 0.0  ;;  %v406_v40 = vadd.f32 %v374_v26, %v342_v30 }
  0x24   : > { %v407_v41 = vadd.f32 %v375_v27, %v343_v31  ;;  %465 = vst.msk [vmem:[%s759_s5 + $0x40] sm:$0xff] %vm456_vm0, %v432_v33  ;;  %466 = vst.msk [vmem:[%s759_s5 + $0x48] sm:$0xff] %vm456_vm0, %v433_v34  ;;  %v436_v43 = vmax.f32 %v404_v35, 0.0  ;;  %v609_v46 = vunpack.c.h.bf16 %v645_v32  ;;  %v612_v50 = vunpack.c.l.bf16 %v646_v37  ;;  %v650_v27 = vld [vmem:[%s709_s21 + $0x68] sm:$0xff]   ;;  %v651_v32 = vld [vmem:[%s709_s21 + $0x70] sm:$0xff]  }
  0x25   : > { %v437_v44 = vmax.f32 %v405_v36, 0.0  ;;  %467 = vst.msk [vmem:[%s759_s5 + $0x50] sm:$0xff] %vm456_vm0, %v434_v38  ;;  %468 = vst.msk [vmem:[%s759_s5 + $0x58] sm:$0xff] %vm456_vm0, %v435_v39  ;;  %v438_v48 = vmax.f32 %v406_v40, 0.0  ;;  %v613_v51 = vunpack.c.h.bf16 %v646_v37  ;;  %v305_v52 = vmul.f32 %v608_v45, %v715_v1  ;;  %v652_v37 = vld [vmem:[%s709_s21 + $0x78] sm:$0xff]  }
  0x26   : > { %v439_v49 = vmax.f32 %v407_v41, 0.0  ;;  %469 = vst.msk [vmem:[%s759_s5 + $0x60] sm:$0xff] %vm456_vm0, %v436_v43  ;;  %v306_v53 = vmul.f32 %v609_v46, %v715_v1  ;;  %v616_v54 = vunpack.c.l.bf16 %v647_v42  ;;  %v617_v55 = vunpack.c.h.bf16 %v647_v42  ;;  %v384_v46 = vld [vmem:[%s722_s26 + $0xc0] sm:$0xff] }
  0x27   : > { %470 = vst.msk [vmem:[%s759_s5 + $0x68] sm:$0xff] %vm456_vm0, %v437_v44  ;;  %471 = vst.msk [vmem:[%s759_s5 + $0x70] sm:$0xff] %vm456_vm0, %v438_v48  ;;  %v307_v58 = vmul.f32 %v612_v50, %v715_v1  ;;  %v308_v59 = vmul.f32 %v613_v51, %v715_v1  ;;  %v620_v60 = vunpack.c.l.bf16 %v648_v47  ;;  %v621_v61 = vunpack.c.h.bf16 %v648_v47  ;;  %v385_v47 = vld [vmem:[%s722_s26 + $0xc8] sm:$0xff] }
  0x28   : > { %472 = vst.msk [vmem:[%s759_s5 + $0x78] sm:$0xff] %vm456_vm0, %v439_v49  ;;  %v344_v62 = vadd.f32 %v728_v5, %v305_v52  ;;  %v345_v63 = vadd.f32 %v728_v5, %v306_v53  ;;  %v309_v3 = vmul.f32 %v616_v54, %v715_v1  ;;  %v310_v4 = vmul.f32 %v617_v55, %v715_v1  ;;  %v386_v54 = vld [vmem:[%s722_s26 + $0xd0] sm:$0xff]  ;;  %v387_v55 = vld [vmem:[%s722_s26 + $0xd8] sm:$0xff] }
  0x29   : > { %v346_v6 = vadd.f32 %v728_v5, %v307_v58  ;;  %v347_v7 = vadd.f32 %v728_v5, %v308_v59  ;;  %v311_v10 = vmul.f32 %v620_v60, %v715_v1  ;;  %v312_v11 = vmul.f32 %v621_v61, %v715_v1  ;;  %v388_v60 = vld [vmem:[%s722_s26 + $0xe0] sm:$0xff]  ;;  %v389_v61 = vld [vmem:[%s722_s26 + $0xe8] sm:$0xff] }
  0x2a   : > { %v408_v12 = vadd.f32 %v376_v56, %v344_v62  ;;  %v409_v13 = vadd.f32 %v377_v57, %v345_v63  ;;  %v348_v14 = vadd.f32 %v728_v5, %v309_v3  ;;  %v349_v15 = vadd.f32 %v728_v5, %v310_v4 }
  0x2b   : > { %v410_v18 = vadd.f32 %v378_v0, %v346_v6  ;;  %v411_v19 = vadd.f32 %v379_v2, %v347_v7  ;;  %v350_v20 = vadd.f32 %v728_v5, %v311_v10  ;;  %v351_v21 = vadd.f32 %v728_v5, %v312_v11  ;;  %v390_v6 = vld [vmem:[%s722_s26 + $0xf0] sm:$0xff]  ;;  %v391_v7 = vld [vmem:[%s722_s26 + $0xf8] sm:$0xff] }
  0x2c   : > { %v440_v23 = vmax.f32 %v408_v12, 0.0  ;;  %v441_v24 = vmax.f32 %v409_v13, 0.0  ;;  %v412_v25 = vadd.f32 %v380_v8, %v348_v14  ;;  %v413_v26 = vadd.f32 %v381_v9, %v349_v15 }
  0x2d   : > { %v442_v28 = vmax.f32 %v410_v18, 0.0  ;;  %v443_v29 = vmax.f32 %v411_v19, 0.0  ;;  %v414_v30 = vadd.f32 %v382_v16, %v350_v20  ;;  %v415_v31 = vadd.f32 %v383_v17, %v351_v21 }
  0x2e   : > { %473 = vst.msk [vmem:[%s759_s5 + $0x80] sm:$0xff] %vm456_vm0, %v440_v23  ;;  %474 = vst.msk [vmem:[%s759_s5 + $0x88] sm:$0xff] %vm456_vm0, %v441_v24  ;;  %v444_v33 = vmax.f32 %v412_v25, 0.0  ;;  %v445_v34 = vmax.f32 %v413_v26, 0.0  ;;  %v624_v35 = vunpack.c.l.bf16 %v649_v22  ;;  %v625_v36 = vunpack.c.h.bf16 %v649_v22 }
  0x2f   : > { %475 = vst.msk [vmem:[%s759_s5 + $0x90] sm:$0xff] %vm456_vm0, %v442_v28  ;;  %476 = vst.msk [vmem:[%s759_s5 + $0x98] sm:$0xff] %vm456_vm0, %v443_v29  ;;  %v446_v38 = vmax.f32 %v414_v30, 0.0  ;;  %v447_v39 = vmax.f32 %v415_v31, 0.0  ;;  %v628_v40 = vunpack.c.l.bf16 %v650_v27  ;;  %v629_v41 = vunpack.c.h.bf16 %v650_v27 }
  0x30   : > { %477 = vst.msk [vmem:[%s759_s5 + $0xa0] sm:$0xff] %vm456_vm0, %v444_v33  ;;  %478 = vst.msk [vmem:[%s759_s5 + $0xa8] sm:$0xff] %vm456_vm0, %v445_v34  ;;  %v313_v42 = vmul.f32 %v624_v35, %v715_v1  ;;  %v314_v43 = vmul.f32 %v625_v36, %v715_v1  ;;  %v632_v44 = vunpack.c.l.bf16 %v651_v32  ;;  %v633_v45 = vunpack.c.h.bf16 %v651_v32 }
  0x31   : > { %479 = vst.msk [vmem:[%s759_s5 + $0xb0] sm:$0xff] %vm456_vm0, %v446_v38  ;;  %480 = vst.msk [vmem:[%s759_s5 + $0xb8] sm:$0xff] %vm456_vm0, %v447_v39  ;;  %v315_v48 = vmul.f32 %v628_v40, %v715_v1  ;;  %v316_v49 = vmul.f32 %v629_v41, %v715_v1  ;;  %v636_v50 = vunpack.c.l.bf16 %v652_v37  ;;  %v637_v51 = vunpack.c.h.bf16 %v652_v37 }
  0x32   : > { %v352_v52 = vadd.f32 %v728_v5, %v313_v42  ;;  %v353_v53 = vadd.f32 %v728_v5, %v314_v43  ;;  %v317_v56 = vmul.f32 %v632_v44, %v715_v1  ;;  %v318_v57 = vmul.f32 %v633_v45, %v715_v1 }
  0x33   : > { %v354_v58 = vadd.f32 %v728_v5, %v315_v48  ;;  %v355_v59 = vadd.f32 %v728_v5, %v316_v49  ;;  %v319_v62 = vmul.f32 %v636_v50, %v715_v1  ;;  %v320_v63 = vmul.f32 %v637_v51, %v715_v1 }
  0x34   : > { %v416_v0 = vadd.f32 %v384_v46, %v352_v52  ;;  %v417_v2 = vadd.f32 %v385_v47, %v353_v53  ;;  %v356_v3 = vadd.f32 %v728_v5, %v317_v56  ;;  %v357_v4 = vadd.f32 %v728_v5, %v318_v57 }
  0x35   : > { %v418_v8 = vadd.f32 %v386_v54, %v354_v58  ;;  %v419_v9 = vadd.f32 %v387_v55, %v355_v59  ;;  %v358_v10 = vadd.f32 %v728_v5, %v319_v62  ;;  %v359_v11 = vadd.f32 %v728_v5, %v320_v63 }
  0x36   : > { %v448_v12 = vmax.f32 %v416_v0, 0.0  ;;  %v449_v1 = vmax.f32 %v417_v2, 0.0  ;;  %v420_v13 = vadd.f32 %v388_v60, %v356_v3  ;;  %v421_v14 = vadd.f32 %v389_v61, %v357_v4 }
  0x37   : > { %v450_v15 = vmax.f32 %v418_v8, 0.0  ;;  %v451_v16 = vmax.f32 %v419_v9, 0.0  ;;  %v422_v17 = vadd.f32 %v390_v6, %v358_v10  ;;  %v423_v18 = vadd.f32 %v391_v7, %v359_v11 }
  0x38   : > { %481 = vst.msk [vmem:[%s759_s5 + $0xc0] sm:$0xff] %vm456_vm0, %v448_v12  ;;  %482 = vst.msk [vmem:[%s759_s5 + $0xc8] sm:$0xff] %vm456_vm0, %v449_v1  ;;  %v452_v19 = vmax.f32 %v420_v13, 0.0  ;;  %v453_v20 = vmax.f32 %v421_v14, 0.0 }
  0x39   : > { %483 = vst.msk [vmem:[%s759_s5 + $0xd0] sm:$0xff] %vm456_vm0, %v450_v15  ;;  %484 = vst.msk [vmem:[%s759_s5 + $0xd8] sm:$0xff] %vm456_vm0, %v451_v16  ;;  %v454_v5 = vmax.f32 %v422_v17, 0.0  ;;  %v455_v21 = vmax.f32 %v423_v18, 0.0 }
  0x3a   : > { %485 = vst.msk [vmem:[%s759_s5 + $0xe0] sm:$0xff] %vm456_vm0, %v452_v19  ;;  %486 = vst.msk [vmem:[%s759_s5 + $0xe8] sm:$0xff] %vm456_vm0, %v453_v20 }
  0x3b   : > { %487 = vst.msk [vmem:[%s759_s5 + $0xf0] sm:$0xff] %vm456_vm0, %v454_v5  ;;  %488 = vst.msk [vmem:[%s759_s5 + $0xf8] sm:$0xff] %vm456_vm0, %v455_v21 }
  0x3c PF: > { %s14_s15 = sadd.s32 1, %s667_s15  }
  0x3d   : > { %p11_p4 = scmp.ge.s32.totalorder %s14_s15, 4  }
  0x3f   :  { %13 = sbr.rel (!%p11_p4) target bundleno = 1 (0x1), region = 69 }

// kernel: basic_block_forward.3
= control target key start
LH: loop header
LB: loop body
LE: loop exit
PB: predicated region body
PF: predicated region fallthrough
CT: control target
= control target key end

     0   :  { %s3180_s12 = smov 0   ;;  %s4777_s0 = inlined_call_operand.vmem [shape: f32[2,16,16,4], index: 0, kind: input, shape index: {}]   ;;  %s4778_s1 = inlined_call_operand.vmem [shape: bf16[3,12,4], index: 1, kind: input, shape index: {}]   ;;  %s4779_s2 = inlined_call_operand.vmem [shape: bf16[2,16,16,4], index: 2, kind: output, shape index: {0}]   ;;  %s4780_s3 = inlined_call_operand.vmem [shape: f32[2,2,4], index: 3, kind: output, shape index: {1}]  }
   0x1 LB: > { %s2739_s13 = sadd.s32 4294967295, %s3153_s12   ;;  %p2743_p0 = scmp.ge.s32.totalorder %s3153_s12, 1  ;;  %s3153_s12 = sphi %s3180_s12, %s14_s12  }
   0x2   : > { %p140_p1 = scmp.lt.s32.totalorder %s3153_s12, 3 }
   0x4   : > { %p141_p2 = pnand %p2743_p0, %p140_p1 }
   0x5   : > { %vm217_vm0 = vcmask (!%p141_p2), 31744   ;;  %p168_p3 = scmp.lt.s32.totalorder (!%p141_p2), %s2739_s13, 1  ;;  %v292_v0 = vlaneseq (!%p141_p2)  ;;  %v3155_v1 = vmov (!%p141_p2), 0.0   ;;  %vm3156_vm1 = vmmov (!%p141_p2), 0   ;;  %s3158_s18 = smov (!%p141_p2), 4  }
   0x6   : > { %144 = sbr.rel (%p141_p2) target bundleno = 563 (0x233), region = 28  ;;  %218 = vst.msk [vmem:[#allocation2] sm:$0xff] (!%p141_p2), %vm217_vm0, %v3155_v1  ;;  %219 = vst.msk [vmem:[#allocation2 + $0x8] sm:$0xff] (!%p141_p2), %vm217_vm0, %v3155_v1  ;;  %v3157_v26 = vmov (!%p141_p2), 0   ;;  %s3159_s19 = smov (!%p141_p2), 8  }
   0x7   : > { %221 = vst.msk [vmem:[#allocation2 + $0x110] sm:$0xff] (!%p141_p2), %vm217_vm0, %v3155_v1  ;;  %222 = vst.msk [vmem:[#allocation2 + $0x118] sm:$0xff] (!%p141_p2), %vm217_vm0, %v3155_v1  ;;  %v3194_v2 = vshrl.u32 (!%p141_p2), %v292_v0, 7 }
   0x8   : > { %vm3205_vm2 = vmpackc.low (!%p141_p2), %vm3156_vm1, %vm3156_vm1 }
   0x9   : > { %v294_v3 = vadd.s32 (!%p141_p2), 8, %v3194_v2  ;;  %v296_v4 = vadd.s32 (!%p141_p2), 24, %v3194_v2  ;;  %v298_v5 = vadd.s32 (!%p141_p2), 40, %v3194_v2  ;;  %v300_v7 = vadd.s32 (!%p141_p2), 56, %v3194_v2 }
   0xa   : > { %v3211_v8 = vadd.s32 (!%p141_p2), 72, %v3194_v2  ;;  %v3214_v9 = vadd.s32 (!%p141_p2), 88, %v3194_v2  ;;  %v3246_v27 = vsel (!%p141_p2), %vm3205_vm2, 65537, %v3157_v26  ;;  %v306_v30 = vadd.s32 (!%p141_p2), 104, %v3194_v2 }
   0xb   : > { %v340_v13 = vand.u32 (!%p141_p2), 15, %v294_v3  ;;  %v354_v14 = vand.u32 (!%p141_p2), 15, %v296_v4  ;;  %v368_v15 = vand.u32 (!%p141_p2), 15, %v298_v5  ;;  %v382_v19 = vand.u32 (!%p141_p2), 15, %v300_v7 }
   0xc   : > { %v396_v33 = vand.u32 (!%p141_p2), 15, %v3211_v8  ;;  %v410_v36 = vand.u32 (!%p141_p2), 15, %v3214_v9  ;;  %vm1212_vm10 = vcmp.lt.s32.totalorder (!%p141_p2), %v3194_v2, 7  ;;  %v424_v46 = vand.u32 (!%p141_p2), 15, %v306_v30 }
   0xd   : > { %s4873_s13 = smov (!%p168_p3, %s2739_s13), 1  ;;  %v3225_v20 = vld [vmem:[#allocation2] sm:$0xff]  ;;  %v3227_v21 = vld [vmem:[#allocation2 + $0x8] sm:$0xff]  ;;  %vm1141_vm3 = vcmp.eq.s32.totalorder %v340_v13, 15  ;;  %vm3230_vm4 = vcmp.eq.s32.totalorder %v354_v14, 15  ;;  %vm3235_vm5 = vcmp.eq.s32.totalorder %v368_v15, 15 }
   0xe   : > { %s2874_s14 = sshll.u32 %s4873_s13, 8  ;;  %v761_v25 = vpack.c.bf16 %v3227_v21, %v3225_v20  ;;  %vm1340_vm6 = vmpackc.low %vm1141_vm3, %vm1141_vm3  ;;  %vm3257_vm8 = vcmp.eq.s32.totalorder %v382_v19, 15  ;;  %v1176_v37 = vrot.slane %v3225_v20, 1  ;;  %v1177_v38 = vrot.slane %v3227_v21, 1  ;;  %s2875_s26 = sshll.u32 %s4873_s13, 7 }
   0xf   : > { %s3203_s17 = scalar_lea.vmem %s4777_s0, %s2874_s14  ;;  %v1376_v31 = vsel %vm1340_vm6, 65537, %v3157_v26  ;;  %vm1342_vm7 = vmpackc.low %vm3230_vm4, %vm3230_vm4  ;;  %vm3298_vm12 = vcmp.eq.s32.totalorder %v396_v33, 15  ;;  %vm3302_vm13 = vcmp.eq.s32.totalorder %v410_v36, 15  ;;  %vm3340_vm15 = vcmp.eq.s32.totalorder %v424_v46, 15  ;;  %s4383_s29 = scalar_lea.vmem %s4779_s2, %s2875_s26 }
  0x10   : > { %v187_v10 = vld [vmem:[%s3203_s17 + $0x10] sm:$0xff]  ;;  %v188_v11 = vld [vmem:[%s3203_s17 + $0x18] sm:$0xff]  ;;  %v185_v12 = vld [vmem:[%s3203_s17] sm:$0xff]  ;;  %1519 = vrot.lane.b32.xlu0 %v761_v25, %s3158_s18  ;;  %v1378_v39 = vsel %vm1342_vm7, 65537, %v3157_v26  ;;  %v2767_v42 = vcombine.low %v3246_v27, %v1376_v31  ;;  %v1247_v58 = vsel %vm1212_vm10, %v1176_v37, %v1177_v38  ;;  %s2748_s30 = sshll.u32 %s4873_s13, 1 }
  0x11   : > { %226 = vst.msk [vmem:[#allocation2 + $0x20] sm:$0xff] %vm217_vm0, %v187_v10  ;;  %227 = vst.msk [vmem:[#allocation2 + $0x28] sm:$0xff] %vm217_vm0, %v188_v11  ;;  %v186_v16 = vld [vmem:[%s3203_s17 + $0x8] sm:$0xff]  ;;  %v189_v17 = vld [vmem:[%s3203_s17 + $0x20] sm:$0xff]  ;;  %v2768_v52 = vcombine.low %v3246_v27, %v1378_v39  ;;  %s4628_s6 = scalar_lea.vmem %s4780_s3, %s2748_s30 }
  0x12   : > { %224 = vst.msk [vmem:[#allocation2 + $0x10] sm:$0xff] %vm217_vm0, %v185_v12  ;;  %v190_v18 = vld [vmem:[%s3203_s17 + $0x28] sm:$0xff]  ;;  %225 = vst.msk [vmem:[#allocation2 + $0x18] sm:$0xff] %vm217_vm0, %v186_v16  ;;  %v191_v24 = vld [vmem:[%s3203_s17 + $0x30] sm:$0xff]  ;;  %vm3330_vm14 = vcmp.ne.s16.totalorder %v2767_v42, 0 }
  0x13   : > { %228 = vst.msk [vmem:[#allocation2 + $0x30] sm:$0xff] %vm217_vm0, %v189_v17  ;;  %229 = vst.msk [vmem:[#allocation2 + $0x38] sm:$0xff] %vm217_vm0, %v190_v18  ;;  %v192_v28 = vld [vmem:[%s3203_s17 + $0x38] sm:$0xff]  ;;  %v193_v29 = vld [vmem:[%s3203_s17 + $0x40] sm:$0xff]  ;;  %vm3346_vm1 = vcmp.ne.s16.totalorder %v2768_v52, 0 }
  0x14   : > { %230 = vst.msk [vmem:[#allocation2 + $0x40] sm:$0xff] %vm217_vm0, %v191_v24  ;;  %231 = vst.msk [vmem:[#allocation2 + $0x48] sm:$0xff] %vm217_vm0, %v192_v28  ;;  %v194_v34 = vld [vmem:[%s3203_s17 + $0x48] sm:$0xff]  ;;  %v195_v35 = vld [vmem:[%s3203_s17 + $0x50] sm:$0xff] }
  0x15   : > { %232 = vst.msk [vmem:[#allocation2 + $0x50] sm:$0xff] %vm217_vm0, %v193_v29  ;;  %vm1344_vm9 = vmpackc.low %vm3235_vm5, %vm3235_vm5  ;;  %v196_v40 = vld [vmem:[%s3203_s17 + $0x58] sm:$0xff]  ;;  %v197_v41 = vld [vmem:[%s3203_s17 + $0x60] sm:$0xff] }
  0x16   : > { %233 = vst.msk [vmem:[#allocation2 + $0x58] sm:$0xff] %vm217_vm0, %v194_v34  ;;  %234 = vst.msk [vmem:[#allocation2 + $0x60] sm:$0xff] %vm217_vm0, %v195_v35  ;;  %v198_v43 = vld [vmem:[%s3203_s17 + $0x68] sm:$0xff]  ;;  %v199_v44 = vld [vmem:[%s3203_s17 + $0x70] sm:$0xff]  ;;  %v1380_v45 = vsel %vm1344_vm9, 65537, %v3157_v26 }
  0x17   : > { %vm1346_vm11 = vmpackc.low %vm3257_vm8, %vm3257_vm8  ;;  %235 = vst.msk [vmem:[#allocation2 + $0x68] sm:$0xff] %vm217_vm0, %v196_v40  ;;  %v200_v47 = vld [vmem:[%s3203_s17 + $0x78] sm:$0xff]  ;;  %v201_v48 = vld [vmem:[%s3203_s17 + $0x80] sm:$0xff]  ;;  %v2769_v1 = vcombine.low %v3246_v27, %v1380_v45 }
  0x18   : > { %236 = vst.msk [vmem:[#allocation2 + $0x70] sm:$0xff] %vm217_vm0, %v197_v41  ;;  %237 = vst.msk [vmem:[#allocation2 + $0x78] sm:$0xff] %vm217_vm0, %v198_v43  ;;  %v3291_v49 = vld [vmem:[#allocation2 + $0x20] sm:$0xff]  ;;  %v3293_v50 = vld [vmem:[#allocation2 + $0x28] sm:$0xff]  ;;  %v1382_v61 = vsel %vm1346_vm11, 65537, %v3157_v26 }
  0x19   : > { %238 = vst.msk [vmem:[#allocation2 + $0x80] sm:$0xff] %vm217_vm0, %v199_v44  ;;  %v3295_v51 = vld [vmem:[#allocation2 + $0x10] sm:$0xff]  ;;  %239 = vst.msk [vmem:[#allocation2 + $0x88] sm:$0xff] %vm217_vm0, %v200_v47  ;;  %v763_v55 = vpack.c.bf16 %v3293_v50, %v3291_v49  ;;  %v1180_v56 = vrot.slane %v3291_v49, 1  ;;  %v3311_v57 = vld [vmem:[#allocation2 + $0x18] sm:$0xff]  ;;  %v1181_v62 = vrot.slane %v3293_v50, 1  ;;  %v2770_v13 = vcombine.low %v3246_v27, %v1382_v61 }
  0x1a   : > { %240 = vst.msk [vmem:[#allocation2 + $0x90] sm:$0xff] %vm217_vm0, %v201_v48  ;;  %v3317_v59 = vld [vmem:[#allocation2 + $0x30] sm:$0xff]  ;;  %v3319_v60 = vld [vmem:[#allocation2 + $0x38] sm:$0xff]  ;;  %v762_v63 = vpack.c.bf16 %v3311_v57, %v3295_v51  ;;  %v202_v3 = vld [vmem:[%s3203_s17 + $0x88] sm:$0xff]  ;;  %v1178_v4 = vrot.slane %v3295_v51, 1  ;;  %v1179_v5 = vrot.slane %v3311_v57, 1 }
  0x1b   : > { %1523 = vrot.lane.b32.xlu1 %v763_v55, %s3158_s18  ;;  %v1182_v6 = vrot.slane %v3317_v59, 1  ;;  %241 = vst.msk [vmem:[#allocation2 + $0x98] sm:$0xff] %vm217_vm0, %v202_v3  ;;  %v1243_v9 = vsel %vm1212_vm10, %v1180_v56, %v1181_v62  ;;  %v1183_v10 = vrot.slane %v3319_v60, 1  ;;  %v3353_v11 = vld [vmem:[#allocation2 + $0x40] sm:$0xff]  ;;  %v3355_v12 = vld [vmem:[#allocation2 + $0x48] sm:$0xff]  ;;  %v203_v14 = vld [vmem:[%s3203_s17 + $0x90] sm:$0xff]  ;;  %v764_v42 = vpack.c.bf16 %v3319_v60, %v3317_v59 }
  0x1c   : > { %1521 = vrot.lane.b32.xlu0 %v762_v63, %s3158_s18  ;;  %v1246_v15 = vsel %vm1212_vm10, %v1177_v38, %v1178_v4  ;;  %v1244_v16 = vsel %vm1212_vm10, %v1179_v5, %v1180_v56  ;;  %v1245_v17 = vsel %vm1212_vm10, %v1178_v4, %v1179_v5  ;;  %vm1348_vm2 = vmpackc.low %vm3298_vm12, %vm3298_vm12  ;;  %v204_v19 = vld [vmem:[%s3203_s17 + $0x98] sm:$0xff]  ;;  %242 = vst.msk [vmem:[#allocation2 + $0xa0] sm:$0xff] %vm217_vm0, %v203_v14  ;;  %v3372_v25 = vld [vmem:[#allocation2 + $0x50] sm:$0xff]  ;;  %vm3379_vm4 = vcmp.ne.s16.totalorder %v2769_v1, 0 }
  0x1d   : > { %v1242_v18 = vsel %vm1212_vm10, %v1181_v62, %v1182_v6  ;;  %v1249_v22 = vpack.c.bf16 %v1246_v15, %v1247_v58  ;;  %v1250_v23 = vpack.c.bf16 %v1244_v16, %v1245_v17  ;;  %vm1350_vm3 = vmpackc.low %vm3302_vm13, %vm3302_vm13  ;;  %243 = vst.msk [vmem:[#allocation2 + $0xa8] sm:$0xff] %vm217_vm0, %v204_v19  ;;  %v205_v28 = vld [vmem:[%s3203_s17 + $0xa0] sm:$0xff]  ;;  %v1184_v30 = vrot.slane %v3353_v11, 1  ;;  %v3385_v32 = vld [vmem:[#allocation2 + $0x58] sm:$0xff] }
  0x1e   : > { %v1251_v24 = vpack.c.bf16 %v1242_v18, %v1243_v9  ;;  %v1185_v31 = vrot.slane %v3355_v12, 1  ;;  %vm1352_vm5 = vmpackc.low %vm3340_vm15, %vm3340_vm15  ;;  %244 = vst.msk [vmem:[#allocation2 + $0xb0] sm:$0xff] %vm217_vm0, %v205_v28  ;;  %v1241_v35 = vsel %vm1212_vm10, %v1182_v6, %v1183_v10  ;;  %v1384_v36 = vsel %vm1348_vm2, 65537, %v3157_v26  ;;  %v3403_v38 = vld [vmem:[#allocation2 + $0x60] sm:$0xff]  ;;  %v206_v39 = vld [vmem:[%s3203_s17 + $0xa8] sm:$0xff] }
  0x1f   : > { %v1483_v33 = vsel %vm3330_vm14, 0, %v1249_v22  ;;  %v1484_v34 = vsel %vm3346_vm1, 0, %v1250_v23  ;;  %v207_v40 = vld [vmem:[%s3203_s17 + $0xb0] sm:$0xff]  ;;  %v208_v41 = vld [vmem:[%s3203_s17 + $0xb8] sm:$0xff]  ;;  %v1240_v43 = vsel %vm1212_vm10, %v1183_v10, %v1184_v30  ;;  %vm3414_vm6 = vcmp.ne.s16.totalorder %v2770_v13, 0  ;;  %v3419_v46 = vld [vmem:[#allocation2 + $0x68] sm:$0xff] }
  0x20   : > { %1573 = vrot.lane.b32.xlu1 %v1483_v33, %s3159_s19  ;;  %1575 = vrot.lane.b32.xlu0 %v1484_v34, %s3159_s19  ;;  %v1186_v45 = vrot.slane %v3372_v25, 1  ;;  %245 = vst.msk [vmem:[#allocation2 + $0xb8] sm:$0xff] %vm217_vm0, %v206_v39  ;;  %246 = vst.msk [vmem:[#allocation2 + $0xc0] sm:$0xff] %vm217_vm0, %v207_v40  ;;  %v209_v47 = vld [vmem:[%s3203_s17 + $0xc0] sm:$0xff]  ;;  %v210_v48 = vld [vmem:[%s3203_s17 + $0xc8] sm:$0xff]  ;;  %v1485_v52 = vsel %vm3379_vm4, 0, %v1251_v24  ;;  %v1252_v53 = vpack.c.bf16 %v1240_v43, %v1241_v35 }
  0x21   : > { %247 = vst.msk [vmem:[#allocation2 + $0xc8] sm:$0xff] %vm217_vm0, %v208_v41  ;;  %v1239_v55 = vsel %vm1212_vm10, %v1184_v30, %v1185_v31  ;;  %v3430_v56 = vld [vmem:[#allocation2 + $0x70] sm:$0xff]  ;;  %248 = vst.msk [vmem:[#allocation2 + $0xd0] sm:$0xff] %vm217_vm0, %v209_v47  ;;  %v212_v61 = vld [vmem:[%s3203_s17 + $0xd8] sm:$0xff]  ;;  %v2771_v63 = vcombine.low %v3246_v27, %v1384_v36  ;;  %v1187_v0 = vrot.slane %v3385_v32, 1  ;;  %v308_v1 = vadd.s32 120, %v3194_v2 }
  0x22   : > { %249 = vst.msk [vmem:[#allocation2 + $0xd8] sm:$0xff] %vm217_vm0, %v210_v48  ;;  %v211_v58 = vld [vmem:[%s3203_s17 + $0xd0] sm:$0xff]  ;;  %v1238_v62 = vsel %vm1212_vm10, %v1185_v31, %v1186_v45  ;;  %251 = vst.msk [vmem:[#allocation2 + $0xe8] sm:$0xff] %vm217_vm0, %v212_v61  ;;  %v213_v3 = vld [vmem:[%s3203_s17 + $0xe0] sm:$0xff]  ;;  %v765_v6 = vpack.c.bf16 %v3355_v12, %v3353_v11  ;;  %v1486_v8 = vsel %vm3414_vm6, 0, %v1252_v53  ;;  %v1188_v13 = vrot.slane %v3403_v38, 1 }
  0x23   : > { %250 = vst.msk [vmem:[#allocation2 + $0xe0] sm:$0xff] %vm217_vm0, %v211_v58  ;;  %v214_v4 = vld [vmem:[%s3203_s17 + $0xe8] sm:$0xff]  ;;  %v215_v5 = vld [vmem:[%s3203_s17 + $0xf0] sm:$0xff]  ;;  %252 = vst.msk [vmem:[#allocation2 + $0xf0] sm:$0xff] %vm217_vm0, %v213_v3  ;;  %v1253_v10 = vpack.c.bf16 %v1238_v62, %v1239_v55  ;;  %v1189_v14 = vrot.slane %v3419_v46, 1  ;;  %v1386_v15 = vsel %vm1350_vm3, 65537, %v3157_v26  ;;  %v1237_v16 = vsel %vm1212_vm10, %v1186_v45, %v1187_v0 }
  0x24   : > { %253 = vst.msk [vmem:[#allocation2 + $0xf8] sm:$0xff] %vm217_vm0, %v214_v4  ;;  %v216_v9 = vld [vmem:[%s3203_s17 + $0xf8] sm:$0xff]  ;;  %254 = vst.msk [vmem:[#allocation2 + $0x100] sm:$0xff] %vm217_vm0, %v215_v5  ;;  %1577 = vrot.lane.b32.xlu1 %v1485_v52, %s3159_s19  ;;  %1525 = vrot.lane.b32.xlu0 %v764_v42, %s3158_s18  ;;  %v2772_v17 = vcombine.low %v3246_v27, %v1386_v15  ;;  %v1190_v18 = vrot.slane %v3430_v56, 1  ;;  %v1388_v19 = vsel %vm1352_vm5, 65537, %v3157_v26  ;;  %vm1469_vm7 = vcmp.ne.s16.totalorder %v2771_v63, 0 }
  0x25   : > { %255 = vst.msk [vmem:[#allocation2 + $0x108] sm:$0xff] %vm217_vm0, %v216_v9  ;;  %v3475_v22 = vld [vmem:[#allocation2 + $0x78] sm:$0xff]  ;;  %v1236_v54 = vsel %vm1212_vm10, %v1187_v0, %v1188_v13  ;;  %v3479_v23 = vld [vmem:[#allocation2 + $0x80] sm:$0xff]  ;;  %v438_v24 = vand.u32 15, %v308_v1  ;;  %v766_v28 = vpack.c.bf16 %v3385_v32, %v3372_v25  ;;  %v2773_v29 = vcombine.low %v3246_v27, %v1388_v19  ;;  %v3491_v35 = vld [vmem:[#allocation2 + $0x88] sm:$0xff] }
  0x26   : > { %v1254_v7 = vpack.c.bf16 %v1236_v54, %v1237_v16  ;;  %v1234_v30 = vsel %vm1212_vm10, %v1189_v14, %v1190_v18  ;;  %v1235_v31 = vsel %vm1212_vm10, %v1188_v13, %v1189_v14  ;;  %v1191_v33 = vrot.slane %v3475_v22, 1  ;;  %v3494_v39 = vld [vmem:[#allocation2 + $0x90] sm:$0xff]  ;;  %v3509_v58 = vld [vmem:[#allocation2 + $0x98] sm:$0xff]  ;;  %v3513_v63 = vld [vmem:[#allocation2 + $0xa0] sm:$0xff] }
  0x27   : > { %v1487_v34 = vsel %vm1469_vm7, 0, %v1253_v10  ;;  %vm1470_vm8 = vcmp.ne.s16.totalorder %v2772_v17, 0  ;;  %v1192_v36 = vrot.slane %v3479_v23, 1  ;;  %vm1155_vm9 = vcmp.eq.s32.totalorder %v438_v24, 15  ;;  %v3519_v3 = vld [vmem:[#allocation2 + $0xa8] sm:$0xff]  ;;  %v3531_v13 = vld [vmem:[#allocation2 + $0xb0] sm:$0xff] }
  0x28   : > { %1527 = vrot.lane.b32.xlu1 %v765_v6, %s3158_s18  ;;  %1579 = vrot.lane.b32.xlu0 %v1486_v8, %s3159_s19  ;;  %v767_v40 = vpack.c.bf16 %v3419_v46, %v3403_v38  ;;  %v1255_v41 = vpack.c.bf16 %v1234_v30, %v1235_v31  ;;  %vm1471_vm11 = vcmp.ne.s16.totalorder %v2773_v29, 0  ;;  %vm1354_vm12 = vmpackc.low %vm1155_vm9, %vm1155_vm9  ;;  %v310_v42 = vadd.s32 136, %v3194_v2  ;;  %v3551_v31 = vld [vmem:[#allocation2 + $0xb8] sm:$0xff] }
  0x29   : > { %v1488_v43 = vsel %vm1470_vm8, 0, %v1254_v7  ;;  %v1193_v44 = vrot.slane %v3491_v35, 1  ;;  %v1233_v45 = vsel %vm1212_vm10, %v1190_v18, %v1191_v33  ;;  %v1390_v47 = vsel %vm1354_vm12, 65537, %v3157_v26 }
  0x2a   : > { %v1232_v48 = vsel %vm1212_vm10, %v1191_v33, %v1192_v36  ;;  %v2774_v52 = vcombine.low %v3246_v27, %v1390_v47  ;;  %v452_v53 = vand.u32 15, %v310_v42  ;;  %v1194_v55 = vrot.slane %v3494_v39, 1  ;;  %v3553_v33 = vld [vmem:[#allocation2 + $0xc0] sm:$0xff] }
  0x2b   : > { %v1489_v61 = vsel %vm1471_vm11, 0, %v1255_v41  ;;  %v768_v62 = vpack.c.bf16 %v3475_v22, %v3430_v56  ;;  %v1256_v0 = vpack.c.bf16 %v1232_v48, %v1233_v45  ;;  %v1231_v1 = vsel %vm1212_vm10, %v1192_v36, %v1193_v44 }
  0x2c   : > { %1581 = vrot.lane.b32.xlu1 %v1487_v34, %s3159_s19  ;;  %1529 = vrot.lane.b32.xlu0 %v766_v28, %s3158_s18  ;;  %vm1157_vm13 = vcmp.eq.s32.totalorder %v452_v53, 15  ;;  %v312_v4 = vadd.s32 152, %v3194_v2  ;;  %v314_v5 = vadd.s32 168, %v3194_v2  ;;  %vm3523_vm15 = vcmp.ne.s16.totalorder %v2774_v52, 0  ;;  %v3576_v52 = vld [vmem:[#allocation2 + $0xc8] sm:$0xff] }
  0x2d   : > { %vm1356_vm14 = vmpackc.low %vm1157_vm13, %vm1157_vm13  ;;  %v1230_v8 = vsel %vm1212_vm10, %v1193_v44, %v1194_v55  ;;  %v1195_v10 = vrot.slane %v3509_v58, 1  ;;  %v1196_v15 = vrot.slane %v3513_v63, 1  ;;  %v1197_v18 = vrot.slane %v3519_v3, 1 }
  0x2e   : > { %v1392_v9 = vsel %vm1356_vm14, 65537, %v3157_v26  ;;  %v466_v16 = vand.u32 15, %v312_v4  ;;  %v480_v17 = vand.u32 15, %v314_v5  ;;  %v769_v19 = vpack.c.bf16 %v3491_v35, %v3479_v23 }
  0x2f   : > { %v2775_v14 = vcombine.low %v3246_v27, %v1392_v9  ;;  %v1198_v24 = vrot.slane %v3531_v13, 1  ;;  %v1490_v28 = vsel %vm3523_vm15, 0, %v1256_v0  ;;  %v1257_v29 = vpack.c.bf16 %v1230_v8, %v1231_v1  ;;  %v3582_v1 = vld [vmem:[#allocation2 + $0xd0] sm:$0xff] }
  0x30   : > { %1531 = vrot.lane.b32.xlu1 %v767_v40, %s3158_s18  ;;  %1583 = vrot.lane.b32.xlu0 %v1488_v43, %s3159_s19  ;;  %vm1159_vm1 = vcmp.eq.s32.totalorder %v466_v16, 15  ;;  %vm3540_vm2 = vcmp.eq.s32.totalorder %v480_v17, 15  ;;  %v770_v7 = vpack.c.bf16 %v3509_v58, %v3494_v39  ;;  %v1229_v30 = vsel %vm1212_vm10, %v1194_v55, %v1195_v10  ;;  %v3690_v17 = vld [vmem:[#allocation2 + $0x108] sm:$0xff] }
  0x31   : > { %vm1358_vm3 = vmpackc.low %vm1159_vm1, %vm1159_vm1  ;;  %vm3555_vm4 = vcmp.ne.s16.totalorder %v2775_v14, 0  ;;  %v1228_v36 = vsel %vm1212_vm10, %v1195_v10, %v1196_v15  ;;  %v316_v41 = vadd.s32 184, %v3194_v2  ;;  %v1227_v43 = vsel %vm1212_vm10, %v1196_v15, %v1197_v18 }
  0x32   : > { %v1394_v40 = vsel %vm1358_vm3, 65537, %v3157_v26  ;;  %vm1360_vm5 = vmpackc.low %vm3540_vm2, %vm3540_vm2  ;;  %v318_v45 = vadd.s32 200, %v3194_v2  ;;  %v1226_v47 = vsel %vm1212_vm10, %v1197_v18, %v1198_v24  ;;  %v1199_v48 = vrot.slane %v3551_v31, 1 }
  0x33   : > { %v2776_v42 = vcombine.low %v3246_v27, %v1394_v40  ;;  %v1396_v44 = vsel %vm1360_vm5, 65537, %v3157_v26  ;;  %v1200_v53 = vrot.slane %v3553_v33, 1  ;;  %v494_v55 = vand.u32 15, %v316_v41 }
  0x34   : > { %1585 = vrot.lane.b32.xlu1 %v1489_v61, %s3159_s19  ;;  %1533 = vrot.lane.b32.xlu0 %v768_v62, %s3158_s18  ;;  %v1491_v61 = vsel %vm3555_vm4, 0, %v1257_v29  ;;  %v1258_v62 = vpack.c.bf16 %v1228_v36, %v1229_v30  ;;  %v2777_v0 = vcombine.low %v3246_v27, %v1396_v44  ;;  %v508_v4 = vand.u32 15, %v318_v45  ;;  %v3613_v30 = vld [vmem:[#allocation2 + $0xe0] sm:$0xff] }
  0x35   : > { %vm1474_vm6 = vcmp.ne.s16.totalorder %v2776_v42, 0  ;;  %vm1163_vm7 = vcmp.eq.s32.totalorder %v494_v55, 15  ;;  %v771_v5 = vpack.c.bf16 %v3519_v3, %v3513_v63  ;;  %v1259_v6 = vpack.c.bf16 %v1226_v47, %v1227_v43  ;;  %v3620_v42 = vld [vmem:[#allocation2 + $0xe8] sm:$0xff]  ;;  %v3622_v43 = vld [vmem:[#allocation2 + $0xf0] sm:$0xff] }
  0x36   : > { %v1201_v8 = vrot.slane %v3576_v52, 1  ;;  %vm1362_vm8 = vmpackc.low %vm1163_vm7, %vm1163_vm7  ;;  %vm3587_vm9 = vcmp.eq.s32.totalorder %v508_v4, 15  ;;  %v1224_v10 = vsel %vm1212_vm10, %v1199_v48, %v1200_v53  ;;  %v1225_v14 = vsel %vm1212_vm10, %v1198_v24, %v1199_v48 }
  0x37   : > { %v1398_v15 = vsel %vm1362_vm8, 65537, %v3157_v26  ;;  %v1202_v16 = vrot.slane %v3582_v1, 1  ;;  %vm1364_vm11 = vmpackc.low %vm3587_vm9, %vm3587_vm9  ;;  %v1492_v18 = vsel %vm1474_vm6, 0, %v1258_v62  ;;  %vm3603_vm12 = vcmp.ne.s16.totalorder %v2777_v0, 0 }
  0x38   : > { %1535 = vrot.lane.b32.xlu1 %v769_v19, %s3158_s18  ;;  %1587 = vrot.lane.b32.xlu0 %v1490_v28, %s3159_s19  ;;  %v2778_v54 = vcombine.low %v3246_v27, %v1398_v15  ;;  %v3608_v28 = vld [vmem:[#allocation2 + $0xd8] sm:$0xff]  ;;  %v816_v24 = vrot.slane %v3227_v21, 7  ;;  %v320_v34 = vadd.s32 216, %v3194_v2  ;;  %v772_v36 = vpack.c.bf16 %v3551_v31, %v3531_v13 }
  0x39   : > { %v1260_v40 = vpack.c.bf16 %v1224_v10, %v1225_v14  ;;  %v1223_v41 = vsel %vm1212_vm10, %v1200_v53, %v1201_v8  ;;  %v322_v44 = vadd.s32 232, %v3194_v2  ;;  %v1493_v45 = vsel %vm3603_vm12, 0, %v1259_v6  ;;  %v3675_v10 = vld [vmem:[#allocation2 + $0x110] sm:$0xff] }
  0x3a   : > { %v1222_v47 = vsel %vm1212_vm10, %v1201_v8, %v1202_v16  ;;  %v1203_v48 = vrot.slane %v3608_v28, 1  ;;  %v522_v55 = vand.u32 15, %v320_v34  ;;  %vm1476_vm13 = vcmp.ne.s16.totalorder %v2778_v54, 0  ;;  %v3653_v54 = vld [vmem:[#allocation2 + $0xf8] sm:$0xff] }
  0x3b   : > { %v536_v62 = vand.u32 15, %v322_v44  ;;  %v1205_v4 = vrot.slane %v3620_v42, 1  ;;  %v773_v9 = vpack.c.bf16 %v3576_v52, %v3553_v33  ;;  %v1494_v14 = vsel %vm1476_vm13, 0, %v1260_v40 }
  0x3c   : > { %1589 = vrot.lane.b32.xlu1 %v1491_v61, %s3159_s19  ;;  %1537 = vrot.lane.b32.xlu0 %v770_v7, %s3158_s18  ;;  %v1400_v7 = vsel %vm1364_vm11, 65537, %v3157_v26  ;;  %v1204_v61 = vrot.slane %v3613_v30, 1  ;;  %vm1167_vm14 = vcmp.eq.s32.totalorder %v522_v55, 15  ;;  %v1261_v15 = vpack.c.bf16 %v1222_v47, %v1223_v41 }
  0x3d   : > { %v2779_v53 = vcombine.low %v3246_v27, %v1400_v7  ;;  %vm1366_vm15 = vmpackc.low %vm1167_vm14, %vm1167_vm14  ;;  %vm3641_vm1 = vcmp.eq.s32.totalorder %v536_v62, 15  ;;  %v3655_v7 = vld [vmem:[#allocation2 + $0x100] sm:$0xff]  ;;  %v326_v47 = vadd.s32 264, %v3194_v2  ;;  %v774_v55 = vpack.c.bf16 %v3608_v28, %v3582_v1 }
  0x3e   : > { %v1402_v19 = vsel %vm1366_vm15, 65537, %v3157_v26  ;;  %vm1368_vm2 = vmpackc.low %vm3641_vm1, %vm3641_vm1  ;;  %v1219_v44 = vsel %vm1212_vm10, %v1204_v61, %v1205_v4  ;;  %vm851_vm9 = vcmp.lt.s32.totalorder %v3194_v2, 1 }
  0x3f   : > { %vm3657_vm3 = vcmp.ne.s16.totalorder %v2779_v53, 0  ;;  %v2780_v40 = vcombine.low %v3246_v27, %v1402_v19  ;;  %v1207_v53 = vrot.slane %v3653_v54, 1  ;;  %v3677_v19 = vld [vmem:[#allocation2 + $0x118] sm:$0xff]  ;;  %v564_v8 = vand.u32 15, %v326_v47 }
  0x40   : > { %1539 = vrot.lane.b32.xlu1 %v771_v5, %s3158_s18  ;;  %1591 = vrot.lane.b32.xlu0 %v1492_v18, %s3159_s19  ;;  %v1206_v5 = vrot.slane %v3622_v43, 1  ;;  %v1221_v18 = vsel %vm1212_vm10, %v1202_v16, %v1203_v48  ;;  %v324_v16 = vadd.s32 248, %v3194_v2 }
  0x41   : > { %vm3685_vm4 = vcmp.ne.s16.totalorder %v2780_v40, 0  ;;  %vm3692_vm7 = vcmp.eq.s32.totalorder %v564_v8, 15  ;;  %v328_v8 = vadd.s32 280, %v3194_v2  ;;  %v1209_v40 = vrot.slane %v3690_v17, 1 }
  0x42   : > { %v1218_v41 = vsel %vm1212_vm10, %v1205_v4, %v1206_v5  ;;  %v550_v62 = vand.u32 15, %v324_v16  ;;  %v775_v4 = vpack.c.bf16 %v3620_v42, %v3613_v30  ;;  %vm1372_vm8 = vmpackc.low %vm3692_vm7, %vm3692_vm7 }
  0x43   : > { %v1263_v16 = vpack.c.bf16 %v1218_v41, %v1219_v44  ;;  %v1217_v41 = vsel %vm1212_vm10, %v1206_v5, %v1207_v53 }
  0x44   : > { %1593 = vrot.lane.b32.xlu1 %v1493_v45, %s3159_s19  ;;  %1541 = vrot.lane.b32.xlu0 %v772_v36, %s3158_s18  ;;  %v1220_v36 = vsel %vm1212_vm10, %v1203_v48, %v1204_v61  ;;  %v1404_v45 = vsel %vm1368_vm2, 65537, %v3157_v26  ;;  %v1208_v48 = vrot.slane %v3655_v7, 1  ;;  %v1495_v61 = vsel %vm3657_vm3, 0, %v1261_v15 }
  0x45   : > { %v1262_v6 = vpack.c.bf16 %v1220_v36, %v1221_v18  ;;  %v2781_v0 = vcombine.low %v3246_v27, %v1404_v45  ;;  %vm1171_vm5 = vcmp.eq.s32.totalorder %v550_v62, 15  ;;  %v850_v15 = vrot.slane %v3677_v19, 7 }
  0x46   : > { %vm1370_vm6 = vmpackc.low %vm1171_vm5, %vm1171_vm5  ;;  %v1211_v18 = vrot.slane %v3677_v19, 1  ;;  %v1216_v34 = vsel %vm1212_vm10, %v1207_v53, %v1208_v48  ;;  %v578_v62 = vand.u32 15, %v328_v8  ;;  %v1215_v8 = vsel %vm1212_vm10, %v1208_v48, %v1209_v40 }
  0x47   : > { %v1406_v36 = vsel %vm1370_vm6, 65537, %v3157_v26  ;;  %v1496_v47 = vsel %vm3685_vm4, 0, %v1262_v6  ;;  %vm3724_vm11 = vcmp.ne.s16.totalorder %v2781_v0, 0 }
  0x48   : > { %1543 = vrot.lane.b32.xlu1 %v773_v9, %s3158_s18  ;;  %1595 = vrot.lane.b32.xlu0 %v1494_v14, %s3159_s19  ;;  %v1210_v14 = vrot.slane %v3675_v10, 1  ;;  %v3720_v45 = vsel %vm1212_vm10, %v1211_v18, %v1176_v37  ;;  %v2782_v53 = vcombine.low %v3246_v27, %v1406_v36  ;;  %v4823_v37 = vrot.slane %v3225_v20, 7 }
  0x49   : > { %v776_v9 = vpack.c.bf16 %v3653_v54, %v3622_v43  ;;  %vm3750_vm12 = vcmp.eq.s32.totalorder %v578_v62, 15  ;;  %v1264_v20 = vpack.c.bf16 %v1216_v34, %v1217_v41  ;;  %v4827_v62 = vrot.slane %v3293_v50, 7 }
  0x4a   : > { %v3714_v44 = vsel %vm1212_vm10, %v1210_v14, %v1211_v18  ;;  %v3738_v29 = vsel %vm851_vm9, %v4823_v37, %v816_v24  ;;  %v4824_v0 = vmov %v4823_v37  ;;  %vm1374_vm13 = vmpackc.low %vm3750_vm12, %vm3750_vm12  ;;  %v4828_v37 = vrot.slane %v3291_v49, 7 }
  0x4b   : > { %v1266_v5 = vpack.c.bf16 %v3720_v45, %v3714_v44  ;;  %v3746_v6 = vsel %vm851_vm9, %v850_v15, %v4824_v0  ;;  %v1214_v34 = vsel %vm1212_vm10, %v1209_v40, %v1210_v14  ;;  %vm1480_vm14 = vcmp.ne.s16.totalorder %v2782_v53, 0 }
  0x4c   : > { %1597 = vrot.lane.b32.xlu1 %v1495_v61, %s3159_s19  ;;  %1545 = vrot.lane.b32.xlu0 %v774_v55, %s3158_s18  ;;  %v1408_v61 = vsel %vm1372_vm8, 65537, %v3157_v26  ;;  %v888_v36 = vpack.c.bf16 %v3738_v29, %v3746_v6  ;;  %v3769_v0 = vsel %vm851_vm9, %v4828_v37, %v4827_v62  ;;  %v4829_v41 = vmov %v4828_v37  ;;  %v3144_v62 = vld [vmem:[%s4778_s1] sm:$0x3f]  }
  0x4d   : > { %v2783_v48 = vcombine.low %v3246_v27, %v1408_v61  ;;  %v4832_v40 = vrot.slane %v3295_v51, 7  ;;  %v822_v61 = vrot.slane %v3319_v60, 7  ;;  %v1410_v37 = vsel %vm1374_vm13, 65537, %v3157_v26 }
  0x4e   : > { %vm1743_vm10 = vcmask 1045504   ;;  %v777_v51 = vpack.c.bf16 %v3690_v17, %v3655_v7  ;;  %v1265_v21 = vpack.c.bf16 %v1214_v34, %v1215_v8  ;;  %v826_v8 = vrot.slane %v3385_v32, 7 }
  0x4f   : > { %vm1481_vm15 = vcmp.ne.s16.totalorder %v2783_v48, 0  ;;  %3128 = vmatprep.subr.msk.bf16.mxu0 %vm1743_vm10, %v3144_v62  ;;  %v778_v48 = vpack.c.bf16 %v3677_v19, %v3675_v10  ;;  %v829_v45 = vrot.slane %v3430_v56, 7  ;;  %v301_v19 = vadd.s32 64, %v3194_v2 }
  0x50   : > { %1547 = vrot.lane.b32.xlu1 %v775_v4, %s3158_s18  ;;  %1599 = vrot.lane.b32.xlu0 %v1496_v47, %s3159_s19  ;;  %v1497_v4 = vsel %vm3724_vm11, 0, %v1263_v16  ;;  %v4830_v47 = vrot.slane %v3311_v57, 7  ;;  %v3145_v16 = vld [vmem:[%s4778_s1 + $0x8] sm:$0x3f]   ;;  %v3813_v57 = vld [vmem:[%s4778_s1 + $0x10] sm:$0x3f]  }
  0x51   : > { %3127 = vmatprep.subr.msk.bf16.mxu1 %vm1743_vm10, %v3145_v16  ;;  %v1499_v34 = vsel %vm1481_vm15, 0, %v1265_v21 }
  0x52   : > { %v3782_v18 = vsel %vm851_vm9, %v4830_v47, %v4829_v41  ;;  %v4831_v49 = vmov %v4830_v47  ;;  %v4833_v41 = vmov %v4832_v40  ;;  %v823_v47 = vrot.slane %v3353_v11, 7 }
  0x53   : > { %v890_v14 = vpack.c.bf16 %v3769_v0, %v3782_v18  ;;  %v3798_v55 = vsel %vm851_vm9, %v4832_v40, %v4831_v49  ;;  %v3808_v53 = vsel %vm851_vm9, %v816_v24, %v4833_v41  ;;  %v824_v24 = vrot.slane %v3355_v12, 7 }
  0x54   : > { %1601 = vrot.lane.b32.xlu1 %v1497_v4, %s3159_s19  ;;  %1549 = vrot.lane.b32.xlu0 %v776_v9, %s3158_s18  ;;  %v889_v60 = vpack.c.bf16 %v3798_v55, %v3808_v53  ;;  %v1498_v49 = vsel %vm1480_vm14, 0, %v1264_v20  ;;  %v3825_v40 = vsel %vm1743_vm10, %v3144_v62, 0  ;;  %v2784_v11 = vcombine.low %v3246_v27, %v1410_v37 }
  0x55   : > { %2994 = vmatpush3.bf16.msra.mxu0 %v3825_v40  ;;  %v1745_v9 = vsel %vm1743_vm10, %v3145_v16, 0  ;;  %v821_v12 = vrot.slane %v3317_v59, 7  ;;  %v827_v20 = vrot.slane %v3403_v38, 7  ;;  %v828_v4 = vrot.slane %v3419_v46, 7 }
  0x56   : > { %2960 = vmatpush3.bf16.msra.mxu1 %v1745_v9  ;;  %3130 = vmatprep.subr.msk.bf16.mxu0 %vm1743_vm10, %v3813_v57  ;;  %v4834_v59 = vrot.slane %v3293_v50, 7  ;;  %v3854_v38 = vsel %vm851_vm9, %v823_v47, %v824_v24  ;;  %v3858_v46 = vsel %vm851_vm9, %v822_v61, %v823_v47  ;;  %vm1482_vm1 = vcmp.ne.s16.totalorder %v2784_v11, 0 }
  0x57   : > { %v3843_v32 = vsel %vm851_vm9, %v821_v12, %v822_v61  ;;  %3129 = vmatprep.subr.msk.bf16.mxu1 %vm1743_vm10, %v3144_v62  ;;  %v892_v50 = vpack.c.bf16 %v3854_v38, %v3858_v46  ;;  %v825_v41 = vrot.slane %v3372_v25, 7  ;;  %v3870_v62 = vsel %vm851_vm9, %v827_v20, %v828_v4 }
  0x58   : > { %1551 = vrot.lane.b32.xlu1 %v777_v51, %s3158_s18  ;;  %1603 = vrot.lane.b32.xlu0 %v1498_v49, %s3159_s19  ;;  %v3849_v16 = vsel %vm851_vm9, %v4834_v59, %v821_v12  ;;  %v831_v51 = vrot.slane %v3479_v23, 7  ;;  %v832_v61 = vrot.slane %v3491_v35, 7  ;;  %v1500_v47 = vsel %vm1482_vm1, 0, %v1266_v5 }
  0x59   : > { %v891_v37 = vpack.c.bf16 %v3843_v32, %v3849_v16  ;;  %v3878_v21 = vsel %vm851_vm9, %v825_v41, %v826_v8  ;;  %v3882_v25 = vsel %vm851_vm9, %v824_v24, %v825_v41  ;;  %v3888_v49 = vsel %vm851_vm9, %v826_v8, %v827_v20 }
  0x5a   : > { %v893_v23 = vpack.c.bf16 %v3878_v21, %v3882_v25  ;;  %v830_v35 = vrot.slane %v3475_v22, 7  ;;  %v894_v44 = vpack.c.bf16 %v3870_v62, %v3888_v49  ;;  %v3897_v5 = vsel %vm851_vm9, %v831_v51, %v832_v61 }
  0x5b   : > { %v835_v24 = vrot.slane %v3513_v63, 7  ;;  %v836_v11 = vrot.slane %v3519_v3, 7  ;;  %v3907_v22 = vsel %vm851_vm9, %v828_v4, %v829_v45  ;;  %v834_v8 = vrot.slane %v3509_v58, 7 }
  0x5c   : > { %1605 = vrot.lane.b32.xlu1 %v1499_v34, %s3159_s19  ;;  %1553 = vrot.lane.b32.xlu0 %v778_v48, %s3158_s18  ;;  %v3903_v9 = vsel %vm851_vm9, %v829_v45, %v830_v35  ;;  %v3914_v12 = vsel %vm851_vm9, %v830_v35, %v831_v51  ;;  %v833_v3 = vrot.slane %v3494_v39, 7  ;;  %v838_v20 = vrot.slane %v3551_v31, 7 }
  0x5d   : > { %v895_v56 = vpack.c.bf16 %v3903_v9, %v3907_v22  ;;  %v896_v63 = vpack.c.bf16 %v3897_v5, %v3914_v12  ;;  %v3922_v4 = vsel %vm851_vm9, %v835_v24, %v836_v11  ;;  %v839_v58 = vrot.slane %v3553_v33, 7 }
  0x5e   : > { %v840_v34 = vrot.slane %v3576_v52, 7  ;;  %v3928_v48 = vsel %vm851_vm9, %v833_v3, %v834_v8  ;;  %v3932_v59 = vsel %vm851_vm9, %v832_v61, %v833_v3  ;;  %v3938_v31 = vsel %vm851_vm9, %v834_v8, %v835_v24 }
  0x5f   : > { %v837_v52 = vrot.slane %v3531_v13, 7  ;;  %v3949_v51 = vsel %vm851_vm9, %v838_v20, %v839_v58  ;;  %v843_v24 = vrot.slane %v3613_v30, 7  ;;  %v844_v8 = vrot.slane %v3620_v42, 7 }
  0x60   : > { %1607 = vrot.lane.b32.xlu1 %v1500_v47, %s3159_s19  ;;  %v3945_v41 = vsel %vm851_vm9, %v839_v58, %v840_v34  ;;  %v842_v47 = vrot.slane %v3608_v28, 7  ;;  %v841_v3 = vrot.slane %v3582_v1, 7  ;;  %v848_v58 = vrot.slane %v3690_v17, 7 }
  0x61   : > { %v3953_v61 = vsel %vm851_vm9, %v837_v52, %v838_v20  ;;  %v3958_v35 = vsel %vm851_vm9, %v836_v11, %v837_v52  ;;  %v847_v11 = vrot.slane %v3655_v7, 7  ;;  %v846_v30 = vrot.slane %v3653_v54, 7 }
  0x62   : > { %v3969_v20 = vsel %vm851_vm9, %v841_v3, %v842_v47  ;;  %v3973_v28 = vsel %vm851_vm9, %v840_v34, %v841_v3  ;;  %v3982_v1 = vsel %vm851_vm9, %v843_v24, %v844_v8  ;;  %v3986_v42 = vsel %vm851_vm9, %v842_v47, %v843_v24 }
  0x63   : > { %v295_v34 = vadd.s32 16, %v3194_v2  ;;  %v845_v17 = vrot.slane %v3622_v43, 7  ;;  %v3994_v3 = vsel %vm851_vm9, %v847_v11, %v848_v58  ;;  %v3998_v54 = vsel %vm851_vm9, %v846_v30, %v847_v11 }
  0x64   : > { %v333_v13 = vand.u32 15, %v3194_v2  ;;  %v297_v11 = vadd.s32 32, %v3194_v2  ;;  %v303_v45 = vadd.s32 80, %v3194_v2  ;;  %v305_v43 = vadd.s32 96, %v3194_v2 }
  0x65   : > { %v347_v52 = vand.u32 15, %v295_v34  ;;  %v4002_v47 = vsel %vm851_vm9, %v845_v17, %v846_v30  ;;  %v4006_v24 = vsel %vm851_vm9, %v844_v8, %v845_v17  ;;  %v849_v34 = vrot.slane %v3675_v10, 7 }
  0x66   : > { %v299_v30 = vadd.s32 48, %v3194_v2  ;;  %vm779_vm3 = vcmp.eq.s32.totalorder %v333_v13, 0  ;;  %v361_v7 = vand.u32 15, %v297_v11  ;;  %v389_v11 = vand.u32 15, %v301_v19 }
  0x67   : > { %vm781_vm2 = vcmp.eq.s32.totalorder %v347_v52, 0  ;;  %v4020_v8 = vsel %vm851_vm9, %v849_v34, %v850_v15  ;;  %v4024_v17 = vsel %vm851_vm9, %v848_v58, %v849_v34  ;;  %vm978_vm5 = vmpackc.low %vm779_vm3, %vm779_vm3  ;;  %v2090_v53 = vsel %vm1743_vm10, %v3813_v57, 0 }
  0x68   : > { %vm980_vm4 = vmpackc.low %vm781_vm2, %vm781_vm2  ;;  %v375_v10 = vand.u32 15, %v299_v30  ;;  %vm783_vm6 = vcmp.eq.s32.totalorder %v361_v7, 0  ;;  %v1014_v15 = vsel %vm978_vm5, 65537, %v3157_v26  ;;  %v403_v7 = vand.u32 15, %v303_v45 }
  0x69   : > { %v1016_v52 = vsel %vm980_vm4, 65537, %v3157_v26  ;;  %vm982_vm8 = vmpackc.low %vm783_vm6, %vm783_vm6  ;;  %v2749_v34 = vcombine.low %v1014_v15, %v3246_v27  ;;  %vm4037_vm12 = vcmp.eq.s32.totalorder %v389_v11, 0  ;;  %vm1663_vm2 = vcmask 64512  }
  0x6a   : > { %vm785_vm7 = vcmp.eq.s32.totalorder %v375_v10, 0  ;;  %v2750_v13 = vcombine.low %v1016_v52, %v3246_v27  ;;  %v1018_v30 = vsel %vm982_vm8, 65537, %v3157_v26  ;;  %vm4045_vm14 = vcmp.eq.s32.totalorder %v403_v7, 0  ;;  %vm986_vm15 = vmpackc.low %vm4037_vm12, %vm4037_vm12 }
  0x6b   : > { %vm984_vm9 = vmpackc.low %vm785_vm7, %vm785_vm7  ;;  %vm1104_vm13 = vcmp.ne.s16.totalorder %v2749_v34, 0  ;;  %v2751_v52 = vcombine.low %v1018_v30, %v3246_v27  ;;  %v417_v34 = vand.u32 15, %v305_v43  ;;  %vm1710_vm4 = vcmask 97280  }
  0x6c   : > { %vm1105_vm11 = vcmp.ne.s16.totalorder %v2750_v13, 0  ;;  %v1020_v33 = vsel %vm984_vm9, 65537, %v3157_v26  ;;  %v307_v13 = vadd.s32 112, %v3194_v2  ;;  %v1122_v30 = vsel %vm1104_vm13, 0, %v888_v36  ;;  %vm988_vm3 = vmpackc.low %vm4045_vm14, %vm4045_vm14 }
  0x6d   : > { %v1123_v19 = vsel %vm1105_vm11, 0, %v889_v60  ;;  %v2752_v11 = vcombine.low %v1020_v33, %v3246_v27  ;;  %vm1106_vm1 = vcmp.ne.s16.totalorder %v2751_v52, 0  ;;  %v1022_v60 = vsel %vm986_vm15, 65537, %v3157_v26 }
  0x6e   : > { %v431_v33 = vand.u32 15, %v307_v13  ;;  %vm4065_vm6 = vcmp.eq.s32.totalorder %v417_v34, 0  ;;  %v309_v36 = vadd.s32 128, %v3194_v2  ;;  %v1124_v10 = vsel %vm1106_vm1, 0, %v890_v14 }
  0x6f   : > { %vm1107_vm5 = vcmp.ne.s16.totalorder %v2752_v11, 0  ;;  %vm990_vm10 = vmpackc.low %vm4065_vm6, %vm4065_vm6  ;;  %v311_v18 = vadd.s32 144, %v3194_v2  ;;  %v321_v38 = vadd.s32 224, %v3194_v2  ;;  %v4853_v5 = vpack.c.bf16 %v3928_v48, %v3932_v59 }
  0x70   : > { %vm4086_vm7 = vcmp.eq.s32.totalorder %v431_v33, 0  ;;  %v445_v34 = vand.u32 15, %v309_v36  ;;  %v327_v49 = vadd.s32 272, %v3194_v2 }
  0x71   : > { %vm992_vm9 = vmpackc.low %vm4086_vm7, %vm4086_vm7  ;;  %v529_v59 = vand.u32 15, %v321_v38 }
  0x72   : > { %vm4107_vm12 = vcmp.eq.s32.totalorder %v445_v34, 0 }
  0x73   : > { %vm994_vm13 = vmpackc.low %vm4107_vm12, %vm4107_vm12 }
  0x82   : > { %v1520_v58 = vpop.permute.xlu0 %1519 }
  0x83   : > { %v1611_v43 = vsel %vm217_vm0, %v1122_v30, %v1520_v58  ;;  %v2753_v58 = vcombine.low %v1022_v60, %v3246_v27  ;;  %v313_v30 = vadd.s32 160, %v3194_v2 }
  0x85   : > { %vm1108_vm8 = vcmp.ne.s16.totalorder %v2753_v58, 0  ;;  %v473_v46 = vand.u32 15, %v313_v30 }
  0x86   : > { %v1126_v33 = vsel %vm1108_vm8, 0, %v892_v50  ;;  %v315_v50 = vadd.s32 176, %v3194_v2 }
  0x8d   : > { %v1524_v39 = vpop.permute.xlu1 %1523 }
  0x8e   : > { %v1522_v15 = vpop.permute.xlu0 %1521  ;;  %v1617_v14 = vsel %vm217_vm0, %v1124_v10, %v1524_v39  ;;  %v459_v39 = vand.u32 15, %v311_v18 }
  0x8f   : > { %v1614_v55 = vsel %vm217_vm0, %v1123_v19, %v1522_v15  ;;  %v1024_v19 = vsel %vm988_vm3, 65537, %v3157_v26  ;;  %v1125_v15 = vsel %vm1107_vm5, 0, %v891_v37  ;;  %v1026_v37 = vsel %vm990_vm10, 65537, %v3157_v26 }
  0x90   : > { %v2754_v11 = vcombine.low %v1024_v19, %v3246_v27  ;;  %vm4129_vm14 = vcmp.eq.s32.totalorder %v459_v39, 0  ;;  %vm4148_vm3 = vcmp.eq.s32.totalorder %v473_v46, 0  ;;  %v487_v19 = vand.u32 15, %v315_v50 }
  0x91   : > { %vm996_vm1 = vmpackc.low %vm4129_vm14, %vm4129_vm14  ;;  %v323_v46 = vadd.s32 240, %v3194_v2 }
  0x92   : > { %v1574_v7 = vpop.permute.xlu1 %1573  ;;  %v1576_v29 = vpop.permute.xlu0 %1575  ;;  %vm1109_vm11 = vcmp.ne.s16.totalorder %v2754_v11, 0  ;;  %vm998_vm6 = vmpackc.low %vm4148_vm3, %vm4148_vm3  ;;  %vm4171_vm10 = vcmp.eq.s32.totalorder %v487_v19, 0  ;;  %vm4239_vm3 = vcmp.eq.s32.totalorder %v529_v59, 0 }
  0x93   : > { %v1667_v57 = vsel %vm1663_vm2, %v1614_v55, %v1576_v29  ;;  %v1665_v52 = vsel %vm1663_vm2, %v1611_v43, %v1574_v7  ;;  %v2755_v7 = vcombine.low %v1026_v37, %v3246_v27  ;;  %v1127_v29 = vsel %vm1109_vm11, 0, %v893_v23  ;;  %vm1000_vm8 = vmpackc.low %vm4171_vm10, %vm4171_vm10 }
  0x94   : > { %2961 = vmatprep.mubr.msk.bf16.mxu1 %vm1710_vm4, %v1667_v57  ;;  %2995 = vmatprep.mubr.msk.bf16.mxu0 %vm1710_vm4, %v1665_v52  ;;  %v1030_v23 = vsel %vm994_vm13, 65537, %v3157_v26  ;;  %v1034_v30 = vsel %vm998_vm6, 65537, %v3157_v26  ;;  %vm1006_vm6 = vmpackc.low %vm4239_vm3, %vm4239_vm3 }
  0x95   : > { %2996 = vmatmul.mubr.msk.bf16.vlgmr.msra.gmra.mrb[0].mxu0 %vm1710_vm4, %v1667_v57  ;;  %vm1110_vm15 = vcmp.ne.s16.totalorder %v2755_v7, 0 }
  0x96   : > { %v1578_v45 = vpop.permute.xlu1 %1577  ;;  %v1526_v13 = vpop.permute.xlu0 %1525  ;;  %3028 = vmatpush3.bf16.msra.mxu0 %v2090_v53  ;;  %v1128_v58 = vsel %vm1110_vm15, 0, %v894_v44  ;;  %v319_v44 = vadd.s32 208, %v3194_v2 }
  0x97   : > { %v4094_v32 = vsel %vm1663_vm2, %v1617_v14, %v1578_v45  ;;  %v1620_v16 = vsel %vm217_vm0, %v1125_v15, %v1526_v13  ;;  %v2757_v14 = vcombine.low %v1030_v23, %v3246_v27  ;;  %v1032_v45 = vsel %vm996_vm1, 65537, %v3157_v26 }
  0x98   : > { %2962 = vmatmul.mubr.msk.bf16.vlgmr.msra.gmra.mrb[0].mxu1 %vm1710_vm4, %v4094_v32  ;;  %2999 = vmatprep.mubr.msk.bf16.mxu0 %vm1710_vm4, %v4094_v32  ;;  %v317_v13 = vadd.s32 192, %v3194_v2  ;;  %v2758_v37 = vcombine.low %v1032_v45, %v3246_v27  ;;  %v4856_v23 = vpack.c.bf16 %v3922_v4, %v3938_v31  ;;  %v325_v45 = vadd.s32 256, %v3194_v2 }
  0x99   : > { %3062 = vmatpush3.bf16.msra.mxu1 %v3825_v40  ;;  %v1028_v40 = vsel %vm992_vm9, 65537, %v3157_v26  ;;  %vm1112_vm7 = vcmp.ne.s16.totalorder %v2757_v14, 0  ;;  %v4859_v31 = vpack.c.bf16 %v3953_v61, %v3958_v35  ;;  %v1042_v2 = vsel %vm1006_vm6, 65537, %v3157_v26 }
  0x9a   : > { %v1528_v55 = vpop.permute.xlu1 %1527  ;;  %v1580_v53 = vpop.permute.xlu0 %1579  ;;  %v2756_v57 = vcombine.low %v1028_v40, %v3246_v27  ;;  %v501_v9 = vand.u32 15, %v317_v13  ;;  %vm1113_vm9 = vcmp.ne.s16.totalorder %v2758_v37, 0  ;;  %v1036_v40 = vsel %vm1000_vm8, 65537, %v3157_v26 }
  0x9b   : > { %v4115_v43 = vsel %vm1663_vm2, %v1620_v16, %v1580_v53  ;;  %v1623_v6 = vsel %vm217_vm0, %v1126_v33, %v1528_v55  ;;  %v1130_v55 = vsel %vm1112_vm7, 0, %v896_v63  ;;  %v2759_v33 = vcombine.low %v1034_v30, %v3246_v27 }
  0x9c   : > { %2965 = vmatprep.mubr.msk.bf16.mxu1 %vm1710_vm4, %v4115_v43  ;;  %vm1111_vm5 = vcmp.ne.s16.totalorder %v2756_v57, 0  ;;  %vm4198_vm11 = vcmp.eq.s32.totalorder %v501_v9, 0  ;;  %v1131_v12 = vsel %vm1113_vm9, 0, %v4853_v5  ;;  %v557_v35 = vand.u32 15, %v325_v45 }
  0x9d   : > { %3000 = vmatmul.mubr.msk.bf16.gmra.mrb[4].mxu0 %vm1710_vm4, %v4115_v43  ;;  %v1129_v62 = vsel %vm1111_vm5, 0, %v895_v56  ;;  %v515_v56 = vand.u32 15, %v319_v44  ;;  %vm1002_vm13 = vmpackc.low %vm4198_vm11, %vm4198_vm11  ;;  %vm1114_vm14 = vcmp.ne.s16.totalorder %v2759_v33, 0  ;;  %v4862_v9 = vpack.c.bf16 %v3945_v41, %v3949_v51 }
  0x9e   : > { %v1582_v36 = vpop.permute.xlu1 %1581  ;;  %v1530_v10 = vpop.permute.xlu0 %1529  ;;  %v1132_v52 = vsel %vm1114_vm14, 0, %v4856_v23  ;;  %vm4281_vm9 = vcmp.eq.s32.totalorder %v557_v35, 0  ;;  %v4865_v41 = vpack.c.bf16 %v3969_v20, %v3973_v28  ;;  %v4868_v63 = vpack.c.bf16 %v3982_v1, %v3986_v42 }
  0x9f   : > { %v4137_v21 = vsel %vm1663_vm2, %v1623_v6, %v1582_v36  ;;  %v1626_v25 = vsel %vm217_vm0, %v1127_v29, %v1530_v10  ;;  %vm4210_vm12 = vcmp.eq.s32.totalorder %v515_v56, 0  ;;  %v2760_v10 = vcombine.low %v1036_v40, %v3246_v27 }
  0xa0   : > { %2966 = vmatmul.mubr.msk.bf16.gmra.mrb[4].mxu1 %vm1710_vm4, %v4137_v21  ;;  %3003 = vmatprep.mubr.msk.bf16.mxu0 %vm1710_vm4, %v4137_v21  ;;  %vm1004_vm15 = vmpackc.low %vm4210_vm12, %vm4210_vm12 }
  0xa1   : > { %vm1115_vm1 = vcmp.ne.s16.totalorder %v2760_v10, 0  ;;  %vm1010_vm12 = vmpackc.low %vm4281_vm9, %vm4281_vm9  ;;  %v4869_v10 = vpack.c.bf16 %v4002_v47, %v4006_v24  ;;  %v4870_v47 = vpack.c.bf16 %v3994_v3, %v3998_v54 }
  0xa2   : > { %v1532_v15 = vpop.permute.xlu1 %1531  ;;  %v1584_v0 = vpop.permute.xlu0 %1583  ;;  %v1133_v13 = vsel %vm1115_vm1, 0, %v4859_v31 }
  0xa3   : > { %v4156_v18 = vsel %vm1663_vm2, %v1626_v25, %v1584_v0  ;;  %v1629_v11 = vsel %vm217_vm0, %v1128_v58, %v1532_v15  ;;  %v543_v25 = vand.u32 15, %v323_v46  ;;  %v1040_v0 = vsel %vm1004_vm15, 65537, %v3157_v26 }
  0xa4   : > { %2969 = vmatprep.mubr.msk.bf16.mxu1 %vm1710_vm4, %v4156_v18 }
  0xa5   : > { %3004 = vmatmul.mubr.msk.bf16.gmra.mrb[8].mxu0 %vm1710_vm4, %v4156_v18  ;;  %vm4252_vm5 = vcmp.eq.s32.totalorder %v543_v25, 0 }
  0xa6   : > { %v1586_v34 = vpop.permute.xlu1 %1585  ;;  %v1534_v16 = vpop.permute.xlu0 %1533  ;;  %vm1008_vm7 = vmpackc.low %vm4252_vm5, %vm4252_vm5 }
  0xa7   : > { %v4179_v39 = vsel %vm1663_vm2, %v1629_v11, %v1586_v34  ;;  %v1632_v22 = vsel %vm217_vm0, %v1129_v62, %v1534_v16  ;;  %v2762_v16 = vcombine.low %v1040_v0, %v3246_v27 }
  0xa8   : > { %2970 = vmatmul.mubr.msk.bf16.gmra.mrb[8].mxu1 %vm1710_vm4, %v4179_v39  ;;  %3007 = vmatprep.mubr.msk.bf16.mxu0 %vm1710_vm4, %v4179_v39 }
  0xa9   : > { %vm1117_vm8 = vcmp.ne.s16.totalorder %v2762_v16, 0 }
  0xaa   : > { %v1536_v53 = vpop.permute.xlu1 %1535  ;;  %v1588_v60 = vpop.permute.xlu0 %1587  ;;  %v1135_v51 = vsel %vm1117_vm8, 0, %v4865_v41 }
  0xab   : > { %v4195_v7 = vsel %vm1663_vm2, %v1632_v22, %v1588_v60  ;;  %v1635_v50 = vsel %vm217_vm0, %v1130_v55, %v1536_v53  ;;  %v1044_v55 = vsel %vm1008_vm7, 65537, %v3157_v26  ;;  %v2763_v60 = vcombine.low %v1042_v2, %v3246_v27 }
  0xac   : > { %2973 = vmatprep.mubr.msk.bf16.mxu1 %vm1710_vm4, %v4195_v7  ;;  %v2764_v5 = vcombine.low %v1044_v55, %v3246_v27 }
  0xad   : > { %3008 = vmatmul.mubr.msk.bf16.gmra.mrb[12].mxu0 %vm1710_vm4, %v4195_v7 }
  0xae   : > { %v1590_v6 = vpop.permute.xlu1 %1589  ;;  %3029 = vmatprep.mubr.msk.bf16.mxu0 %vm1710_vm4, %v4094_v32  ;;  %v1538_v36 = vpop.permute.xlu0 %1537  ;;  %v1038_v32 = vsel %vm1002_vm13, 65537, %v3157_v26  ;;  %vm1118_vm13 = vcmp.ne.s16.totalorder %v2763_v60, 0  ;;  %vm1119_vm15 = vcmp.ne.s16.totalorder %v2764_v5, 0 }
  0xaf   : > { %v4223_v48 = vsel %vm1663_vm2, %v1635_v50, %v1590_v6  ;;  %v1638_v57 = vsel %vm217_vm0, %v1131_v12, %v1538_v36  ;;  %v2761_v4 = vcombine.low %v1038_v32, %v3246_v27  ;;  %v1136_v46 = vsel %vm1118_vm13, 0, %v4868_v63 }
  0xb0   : > { %2974 = vmatmul.mubr.msk.bf16.gmra.mrb[12].mxu1 %vm1710_vm4, %v4223_v48  ;;  %v1137_v59 = vsel %vm1119_vm15, 0, %v4869_v10 }
  0xb1   : > { %vm1116_vm10 = vcmp.ne.s16.totalorder %v2761_v4, 0 }
  0xb2   : > { %v1540_v19 = vpop.permute.xlu1 %1539  ;;  %v1592_v58 = vpop.permute.xlu0 %1591  ;;  %v1134_v22 = vsel %vm1116_vm10, 0, %v4862_v9 }
  0xb3   : > { %v4236_v15 = vsel %vm1663_vm2, %v1638_v57, %v1592_v58  ;;  %v1641_v44 = vsel %vm217_vm0, %v1132_v52, %v1540_v19 }
  0xb4   : > { %2977 = vmatprep.mubr.msk.bf16.mxu1 %vm1710_vm4, %v4236_v15 }
  0xb5   : > { %3030 = vmatmul.mubr.msk.bf16.vlgmr.msra.gmra.mrb[0].mxu0 %vm1710_vm4, %v4115_v43 }
  0xb6   : > { %v1594_v11 = vpop.permute.xlu1 %1593  ;;  %3033 = vmatprep.mubr.msk.bf16.mxu0 %vm1710_vm4, %v4137_v21  ;;  %v1542_v34 = vpop.permute.xlu0 %1541  ;;  %v571_v21 = vand.u32 15, %v327_v49 }
  0xb7   : > { %v4265_v61 = vsel %vm1663_vm2, %v1641_v44, %v1594_v11  ;;  %v1644_v43 = vsel %vm217_vm0, %v1133_v13, %v1542_v34 }
  0xb8   : > { %2978 = vmatmul.mubr.msk.bf16.gmra.mrb[16].mxu1 %vm1710_vm4, %v4265_v61  ;;  %vm4293_vm11 = vcmp.eq.s32.totalorder %v571_v21, 0 }
  0xb9   : > { %vm1012_vm14 = vmpackc.low %vm4293_vm11, %vm4293_vm11 }
  0xba   : > { %v1544_v37 = vpop.permute.xlu1 %1543  ;;  %v1596_v30 = vpop.permute.xlu0 %1595  ;;  %v1048_v6 = vsel %vm1012_vm14, 65537, %v3157_v26 }
  0xbb   : > { %v4278_v56 = vsel %vm1663_vm2, %v1644_v43, %v1596_v30  ;;  %v1647_v40 = vsel %vm217_vm0, %v1134_v22, %v1544_v37 }
  0xbc   : > { %2981 = vmatprep.mubr.msk.bf16.mxu1 %vm1710_vm4, %v4278_v56 }
  0xbd   : > { %3034 = vmatmul.mubr.msk.bf16.gmra.mrb[4].mxu0 %vm1710_vm4, %v4156_v18  ;;  %v1046_v18 = vsel %vm1010_vm12, 65537, %v3157_v26  ;;  %v2766_v26 = vcombine.low %v1048_v6, %v3246_v27 }
  0xbe   : > { %v1598_v29 = vpop.permute.xlu1 %1597  ;;  %3037 = vmatprep.mubr.msk.bf16.mxu0 %vm1710_vm4, %v4179_v39  ;;  %v1546_v38 = vpop.permute.xlu0 %1545  ;;  %v2765_v36 = vcombine.low %v1046_v18, %v3246_v27  ;;  %v4871_v27 = vpack.c.bf16 %v4020_v8, %v4024_v17 }
  0xbf   : > { %v1689_v20 = vsel %vm1663_vm2, %v1647_v40, %v1598_v29  ;;  %v1650_v28 = vsel %vm217_vm0, %v1135_v51, %v1546_v38  ;;  %vm1121_vm3 = vcmp.ne.s16.totalorder %v2766_v26, 0 }
  0xc0   : > { %2982 = vmatmul.mubr.msk.bf16.gmra.mrb[20].mxu1 %vm1710_vm4, %v1689_v20  ;;  %vm1120_vm1 = vcmp.ne.s16.totalorder %v2765_v36, 0  ;;  %v1139_v19 = vsel %vm1121_vm3, 0, %v4871_v27 }
  0xc1   : > { %v1138_v24 = vsel %vm1120_vm1, 0, %v4870_v47 }
  0xc2   : > { %v1548_v39 = vpop.permute.xlu1 %1547  ;;  %v1600_v12 = vpop.permute.xlu0 %1599 }
  0xc3   : > { %v1691_v50 = vsel %vm1663_vm2, %v1650_v28, %v1600_v12  ;;  %v1653_v57 = vsel %vm217_vm0, %v1136_v46, %v1548_v39 }
  0xc4   : > { %2985 = vmatprep.mubr.msk.bf16.mxu1 %vm1710_vm4, %v1691_v50 }
  0xc5   : > { %3038 = vmatmul.mubr.msk.bf16.gmra.mrb[8].mxu0 %vm1710_vm4, %v4195_v7 }
  0xc6   : > { %v1602_v32 = vpop.permute.xlu1 %1601  ;;  %3041 = vmatprep.mubr.msk.bf16.mxu0 %vm1710_vm4, %v4223_v48  ;;  %v1550_v1 = vpop.permute.xlu0 %1549 }
  0xc7   : > { %v1693_v42 = vsel %vm1663_vm2, %v1653_v57, %v1602_v32  ;;  %v1656_v25 = vsel %vm217_vm0, %v1137_v59, %v1550_v1 }
  0xc8   : > { %2986 = vmatmul.mubr.msk.bf16.gmra.mrb[24].mxu1 %vm1710_vm4, %v1693_v42 }
  0xca   : > { %v1552_v7 = vpop.permute.xlu1 %1551  ;;  %v1604_v23 = vpop.permute.xlu0 %1603 }
  0xcb   : > { %v1695_v52 = vsel %vm1663_vm2, %v1656_v25, %v1604_v23  ;;  %v1659_v58 = vsel %vm217_vm0, %v1138_v24, %v1552_v7 }
  0xcc   : > { %2989 = vmatprep.mubr.msk.bf16.mxu1 %vm1710_vm4, %v1695_v52 }
  0xcd   : > { %3042 = vmatmul.mubr.msk.bf16.gmra.mrb[12].mxu0 %vm1710_vm4, %v4236_v15 }
  0xce   : > { %v1606_v0 = vpop.permute.xlu1 %1605  ;;  %3045 = vmatprep.mubr.msk.bf16.mxu0 %vm1710_vm4, %v4265_v61  ;;  %v1554_v14 = vpop.permute.xlu0 %1553 }
  0xcf   : > { %v1697_v3 = vsel %vm1663_vm2, %v1659_v58, %v1606_v0  ;;  %v1662_v54 = vsel %vm217_vm0, %v1139_v19, %v1554_v14 }
  0xd0   : > { %2990 = vmatmul.mubr.msk.bf16.gmra.mrb[28].mxu1 %vm1710_vm4, %v1697_v3 }
  0xd1   : > { %3011 = vmatprep.mubr.msk.bf16.mxu1 %vm1710_vm4, %v4223_v48 }
  0xd2   : > { %v1608_v45 = vpop.permute.xlu1 %1607 }
  0xd3   : > { %v1699_v8 = vsel %vm1663_vm2, %v1662_v54, %v1608_v45  ;;  %vm2413_vm2 = vcmask 27648  }
  0xd5   : > { %3046 = vmatmul.mubr.msk.bf16.gmra.mrb[16].mxu0 %vm1710_vm4, %v4278_v56 }
  0xd6   : > { %3049 = vmatprep.mubr.msk.bf16.mxu0 %vm1710_vm4, %v1689_v20 }
  0xd8   : > { %3012 = vmatmul.mubr.msk.bf16.vlgmr.msra.gmra.mrb[16].mxu1 %vm1710_vm4, %v4236_v15 }
  0xd9   : > { %3015 = vmatprep.mubr.msk.bf16.mxu1 %vm1710_vm4, %v4265_v61 }
  0xdd   : > { %3050 = vmatmul.mubr.msk.bf16.gmra.mrb[20].mxu0 %vm1710_vm4, %v1691_v50 }
  0xde   : > { %3053 = vmatprep.mubr.msk.bf16.mxu0 %vm1710_vm4, %v1693_v42 }
  0xe0   : > { %3016 = vmatmul.mubr.msk.bf16.gmra.mrb[20].mxu1 %vm1710_vm4, %v4278_v56 }
  0xe1   : > { %3019 = vmatprep.mubr.msk.bf16.mxu1 %vm1710_vm4, %v1689_v20 }
  0xe5   : > { %3054 = vmatmul.mubr.msk.bf16.gmra.mrb[24].mxu0 %vm1710_vm4, %v1695_v52 }
  0xe6   : > { %3057 = vmatprep.mubr.msk.bf16.mxu0 %vm1710_vm4, %v1697_v3 }
  0xe8   : > { %3020 = vmatmul.mubr.msk.bf16.gmra.mrb[24].mxu1 %vm1710_vm4, %v1691_v50 }
  0xe9   : > { %3023 = vmatprep.mubr.msk.bf16.mxu1 %vm1710_vm4, %v1693_v42 }
  0xed   : > { %3058 = vmatmul.mubr.msk.bf16.gmra.mrb[28].mxu0 %vm1710_vm4, %v1699_v8 }
  0xf0   : > { %3024 = vmatmul.mubr.msk.bf16.gmra.mrb[28].mxu1 %vm1710_vm4, %v1695_v52  ;;  %vm2650_vm4 = vcmask 24576  }
 0x16b   : > { %v2963_v17 = vpop.f32.mrb[0].mxu1 }
 0x16c   : > { %v1781_v48 = vpop.f32.mrb[1].mxu1 }
 0x16d   : > { %v2964_v15 = vpop.f32.mrb[2].mxu1 }
 0x16e   : > { %v1784_v4 = vpop.f32.mrb[3].mxu1 }
 0x173   : > { %v2967_v31 = vpop.f32.mrb[4].mxu1 }
 0x174   : > { %v1797_v13 = vpop.f32.mrb[5].mxu1 }
 0x175   : > { %v2968_v62 = vpop.f32.mrb[6].mxu1 }
 0x176   : > { %v1800_v49 = vpop.f32.mrb[7].mxu1 }
 0x17b   : > { %v2971_v44 = vpop.f32.mrb[8].mxu1 }
 0x17c   : > { %v1813_v11 = vpop.f32.mrb[9].mxu1 }
 0x17d   : > { %v2972_v34 = vpop.f32.mrb[10].mxu1 }
 0x17e   : > { %v4367_v16 = vpop.f32.mrb[11].mxu1 }
 0x183   : > { %v4369_v61 = vpop.f32.mrb[12].mxu1 }
 0x184   : > { %v4371_v35 = vpop.f32.mrb[13].mxu1 }
 0x185   : > { %v4373_v43 = vpop.f32.mrb[14].mxu1 }
 0x186   : > { %v4375_v2 = vpop.f32.mrb[15].mxu1 }
 0x188   : > { %v3031_v21 = vpop.f32.mrb[0].mxu0 }
 0x189   : > { %v4378_v37 = vadd.f32 %v3031_v21, %v2963_v17  ;;  %v2126_v30 = vpop.f32.mrb[1].mxu0 }
 0x18a   : > { %v4385_v9 = vadd.f32 %v2126_v30, %v1781_v48  ;;  %v3032_v22 = vpop.f32.mrb[2].mxu0 }
 0x18b   : > { %v2878_v56 = vpack.c.bf16 %v4378_v37, %v4378_v37  ;;  %v4389_v55 = vadd.f32 %v3032_v22, %v2964_v15  ;;  %v2129_v53 = vpop.f32.mrb[3].mxu0  ;;  %v2449_v5 = vsel %vm217_vm0, %v4378_v37, 0.0 }
 0x18c   : > { %v2876_v60 = vpack.c.bf16 %v4385_v9, %v4385_v9  ;;  %v4393_v41 = vadd.f32 %v2129_v53, %v1784_v4  ;;  %v2446_v33 = vsel %vm217_vm0, %v4385_v9, 0.0 }
 0x18d   : > { %2416 = vst.msk [vmem:[%s4383_s29 + $0x8] sm:$0xf] %vm2413_vm2, %v2878_v56  ;;  %v2879_v51 = vpack.c.bf16 %v4389_v55, %v4389_v55  ;;  %v2451_v12 = vsel %vm217_vm0, %v4389_v55, 0.0 }
 0x18e   : > { %2414 = vst.msk [vmem:[%s4383_s29] sm:$0xf] %vm2413_vm2, %v2876_v60  ;;  %v2877_v40 = vpack.c.bf16 %v4393_v41, %v4393_v41  ;;  %v2447_v29 = vsel %vm217_vm0, %v4393_v41, 0.0 }
 0x18f   : > { %2417 = vst.msk [vmem:[%s4383_s29 + $0xc] sm:$0xf] %vm2413_vm2, %v2879_v51  ;;  %v2448_v38 = vadd.f32 %v2447_v29, %v2446_v33 }
 0x190   : > { %2415 = vst.msk [vmem:[%s4383_s29 + $0x4] sm:$0xf] %vm2413_vm2, %v2877_v40  ;;  %v3035_v20 = vpop.f32.mrb[4].mxu0 }
 0x191   : > { %v2450_v28 = vadd.f32 %v2449_v5, %v2448_v38  ;;  %v4413_v18 = vadd.f32 %v3035_v20, %v2967_v31  ;;  %v2142_v39 = vpop.f32.mrb[5].mxu0 }
 0x192   : > { %v4417_v63 = vadd.f32 %v2142_v39, %v1797_v13  ;;  %v3036_v46 = vpop.f32.mrb[6].mxu0 }
 0x193   : > { %v2882_v50 = vpack.c.bf16 %v4413_v18, %v4413_v18  ;;  %v2452_v6 = vadd.f32 %v2451_v12, %v2450_v28  ;;  %v4421_v36 = vadd.f32 %v3036_v46, %v2968_v62  ;;  %v2145_v10 = vpop.f32.mrb[7].mxu0  ;;  %v2457_v23 = vsel %vm217_vm0, %v4413_v18, 0.0 }
 0x194   : > { %v2880_v59 = vpack.c.bf16 %v4417_v63, %v4417_v63  ;;  %v2453_v57 = vsel %vm217_vm0, %v4417_v63, 0.0  ;;  %v4427_v32 = vadd.f32 %v2145_v10, %v1800_v49 }
 0x195   : > { %2420 = vst.msk [vmem:[%s4383_s29 + $0x18] sm:$0xf] %vm2413_vm2, %v2882_v50  ;;  %v2454_v1 = vadd.f32 %v2453_v57, %v2452_v6  ;;  %v2883_v26 = vpack.c.bf16 %v4421_v36, %v4421_v36  ;;  %v2459_v19 = vsel %vm217_vm0, %v4421_v36, 0.0 }
 0x196   : > { %2418 = vst.msk [vmem:[%s4383_s29 + $0x10] sm:$0xf] %vm2413_vm2, %v2880_v59  ;;  %v2881_v42 = vpack.c.bf16 %v4427_v32, %v4427_v32  ;;  %v2455_v25 = vsel %vm217_vm0, %v4427_v32, 0.0 }
 0x197   : > { %2421 = vst.msk [vmem:[%s4383_s29 + $0x1c] sm:$0xf] %vm2413_vm2, %v2883_v26  ;;  %v2456_v7 = vadd.f32 %v2455_v25, %v2454_v1 }
 0x198   : > { %2419 = vst.msk [vmem:[%s4383_s29 + $0x14] sm:$0xf] %vm2413_vm2, %v2881_v42  ;;  %v3039_v47 = vpop.f32.mrb[8].mxu0 }
 0x199   : > { %v2458_v24 = vadd.f32 %v2457_v23, %v2456_v7  ;;  %v4445_v52 = vadd.f32 %v3039_v47, %v2971_v44  ;;  %v2158_v27 = vpop.f32.mrb[9].mxu0 }
 0x19a   : > { %v4449_v58 = vadd.f32 %v2158_v27, %v1813_v11  ;;  %v3040_v0 = vpop.f32.mrb[10].mxu0 }
 0x19b   : > { %v2886_v14 = vpack.c.bf16 %v4445_v52, %v4445_v52  ;;  %v2460_v3 = vadd.f32 %v2459_v19, %v2458_v24  ;;  %v4453_v54 = vadd.f32 %v3040_v0, %v2972_v34  ;;  %v2161_v45 = vpop.f32.mrb[11].mxu0  ;;  %v2465_v49 = vsel %vm217_vm0, %v4445_v52, 0.0 }
 0x19c   : > { %v2884_v8 = vpack.c.bf16 %v4449_v58, %v4449_v58  ;;  %v2461_v17 = vsel %vm217_vm0, %v4449_v58, 0.0  ;;  %v4460_v48 = vadd.f32 %v2161_v45, %v4367_v16 }
 0x19d   : > { %2424 = vst.msk [vmem:[%s4383_s29 + $0x28] sm:$0xf] %vm2413_vm2, %v2886_v14  ;;  %v2462_v15 = vadd.f32 %v2461_v17, %v2460_v3  ;;  %v2887_v4 = vpack.c.bf16 %v4453_v54, %v4453_v54  ;;  %v2467_v21 = vsel %vm217_vm0, %v4453_v54, 0.0 }
 0x19e   : > { %2422 = vst.msk [vmem:[%s4383_s29 + $0x20] sm:$0xf] %vm2413_vm2, %v2884_v8  ;;  %v2885_v31 = vpack.c.bf16 %v4460_v48, %v4460_v48  ;;  %v2463_v13 = vsel %vm217_vm0, %v4460_v48, 0.0 }
 0x19f   : > { %2425 = vst.msk [vmem:[%s4383_s29 + $0x2c] sm:$0xf] %vm2413_vm2, %v2887_v4  ;;  %v2464_v62 = vadd.f32 %v2463_v13, %v2462_v15 }
 0x1a0   : > { %2423 = vst.msk [vmem:[%s4383_s29 + $0x24] sm:$0xf] %vm2413_vm2, %v2885_v31  ;;  %v3043_v44 = vpop.f32.mrb[12].mxu0 }
 0x1a1   : > { %v2466_v11 = vadd.f32 %v2465_v49, %v2464_v62  ;;  %v4479_v34 = vadd.f32 %v3043_v44, %v4369_v61  ;;  %v2174_v16 = vpop.f32.mrb[13].mxu0 }
 0x1a2   : > { %v4484_v30 = vadd.f32 %v2174_v16, %v4371_v35  ;;  %v3044_v22 = vpop.f32.mrb[14].mxu0 }
 0x1a3   : > { %v2890_v56 = vpack.c.bf16 %v4479_v34, %v4479_v34  ;;  %v2468_v53 = vadd.f32 %v2467_v21, %v2466_v11  ;;  %v4489_v60 = vadd.f32 %v3044_v22, %v4373_v43  ;;  %v2177_v51 = vpop.f32.mrb[15].mxu0 }
 0x1a4   : > { %v2888_v61 = vpack.c.bf16 %v4484_v30, %v4484_v30  ;;  %v2469_v33 = vsel %vm217_vm0, %v4484_v30, 0.0  ;;  %v4496_v40 = vadd.f32 %v2177_v51, %v4375_v2  ;;  %v2473_v2 = vsel %vm217_vm0, %v4479_v34, 0.0 }
 0x1a5   : > { %2428 = vst.msk [vmem:[%s4383_s29 + $0x38] sm:$0xf] %vm2413_vm2, %v2890_v56  ;;  %v2470_v35 = vadd.f32 %v2469_v33, %v2468_v53  ;;  %v2891_v29 = vpack.c.bf16 %v4489_v60, %v4489_v60  ;;  %v2475_v12 = vsel %vm217_vm0, %v4489_v60, 0.0 }
 0x1a6   : > { %2426 = vst.msk [vmem:[%s4383_s29 + $0x30] sm:$0xf] %vm2413_vm2, %v2888_v61  ;;  %v2889_v43 = vpack.c.bf16 %v4496_v40, %v4496_v40  ;;  %v2471_v38 = vsel %vm217_vm0, %v4496_v40, 0.0 }
 0x1a7   : > { %2429 = vst.msk [vmem:[%s4383_s29 + $0x3c] sm:$0xf] %vm2413_vm2, %v2891_v29  ;;  %v2472_v5 = vadd.f32 %v2471_v38, %v2470_v35 }
 0x1a8   : > { %2427 = vst.msk [vmem:[%s4383_s29 + $0x34] sm:$0xf] %vm2413_vm2, %v2889_v43  ;;  %v3047_v20 = vpop.f32.mrb[16].mxu0 }
 0x1a9   : > { %v2474_v28 = vadd.f32 %v2473_v2, %v2472_v5  ;;  %v2190_v39 = vpop.f32.mrb[17].mxu0 }
 0x1aa   : > { %v3048_v46 = vpop.f32.mrb[18].mxu0 }
 0x1ab   : > { %v3013_v50 = vpop.f32.mrb[16].mxu1  ;;  %v2193_v6 = vpop.f32.mrb[19].mxu0  ;;  %v2476_v10 = vadd.f32 %v2475_v12, %v2474_v28 }
 0x1ac   : > { %v4516_v59 = vadd.f32 %v3047_v20, %v3013_v50  ;;  %v2016_v57 = vpop.f32.mrb[17].mxu1 }
 0x1ad   : > { %v4518_v1 = vadd.f32 %v2190_v39, %v2016_v57  ;;  %v3014_v26 = vpop.f32.mrb[18].mxu1 }
 0x1ae   : > { %v2894_v42 = vpack.c.bf16 %v4516_v59, %v4516_v59  ;;  %v4522_v25 = vadd.f32 %v3048_v46, %v3014_v26  ;;  %v2019_v7 = vpop.f32.mrb[19].mxu1  ;;  %v2481_v15 = vsel %vm217_vm0, %v4516_v59, 0.0 }
 0x1af   : > { %v2892_v23 = vpack.c.bf16 %v4518_v1, %v4518_v1  ;;  %v2477_v47 = vsel %vm217_vm0, %v4518_v1, 0.0  ;;  %v4528_v24 = vadd.f32 %v2193_v6, %v2019_v7 }
 0x1b0   : > { %2432 = vst.msk [vmem:[%s4383_s29 + $0x48] sm:$0xf] %vm2413_vm2, %v2894_v42  ;;  %v2478_v27 = vadd.f32 %v2477_v47, %v2476_v10  ;;  %v2895_v19 = vpack.c.bf16 %v4522_v25, %v4522_v25  ;;  %v3051_v0 = vpop.f32.mrb[20].mxu0  ;;  %v2483_v44 = vsel %vm217_vm0, %v4522_v25, 0.0 }
 0x1b1   : > { %2430 = vst.msk [vmem:[%s4383_s29 + $0x40] sm:$0xf] %vm2413_vm2, %v2892_v23  ;;  %v2893_v14 = vpack.c.bf16 %v4528_v24, %v4528_v24  ;;  %v2479_v3 = vsel %vm217_vm0, %v4528_v24, 0.0  ;;  %v2206_v45 = vpop.f32.mrb[21].mxu0 }
 0x1b2   : > { %2433 = vst.msk [vmem:[%s4383_s29 + $0x4c] sm:$0xf] %vm2413_vm2, %v2895_v19  ;;  %v2480_v8 = vadd.f32 %v2479_v3, %v2478_v27  ;;  %v3052_v17 = vpop.f32.mrb[22].mxu0 }
 0x1b3   : > { %2431 = vst.msk [vmem:[%s4383_s29 + $0x44] sm:$0xf] %vm2413_vm2, %v2893_v14  ;;  %v3017_v4 = vpop.f32.mrb[20].mxu1  ;;  %v2209_v31 = vpop.f32.mrb[23].mxu0 }
 0x1b4   : > { %v2482_v13 = vadd.f32 %v2481_v15, %v2480_v8  ;;  %v4546_v62 = vadd.f32 %v3051_v0, %v3017_v4  ;;  %v2032_v49 = vpop.f32.mrb[21].mxu1 }
 0x1b5   : > { %v4550_v11 = vadd.f32 %v2206_v45, %v2032_v49  ;;  %v3018_v16 = vpop.f32.mrb[22].mxu1 }
 0x1b6   : > { %v2898_v21 = vpack.c.bf16 %v4546_v62, %v4546_v62  ;;  %v2484_v22 = vadd.f32 %v2483_v44, %v2482_v13  ;;  %v4554_v56 = vadd.f32 %v3052_v17, %v3018_v16  ;;  %v2035_v53 = vpop.f32.mrb[23].mxu1  ;;  %v2489_v39 = vsel %vm217_vm0, %v4546_v62, 0.0 }
 0x1b7   : > { %v2896_v51 = vpack.c.bf16 %v4550_v11, %v4550_v11  ;;  %v2485_v61 = vsel %vm217_vm0, %v4550_v11, 0.0  ;;  %v4560_v33 = vadd.f32 %v2209_v31, %v2035_v53 }
 0x1b8   : > { %2436 = vst.msk [vmem:[%s4383_s29 + $0x58] sm:$0xf] %vm2413_vm2, %v2898_v21  ;;  %v2486_v35 = vadd.f32 %v2485_v61, %v2484_v22  ;;  %v2899_v29 = vpack.c.bf16 %v4554_v56, %v4554_v56  ;;  %v3055_v43 = vpop.f32.mrb[24].mxu0  ;;  %v2491_v57 = vsel %vm217_vm0, %v4554_v56, 0.0 }
 0x1b9   : > { %2434 = vst.msk [vmem:[%s4383_s29 + $0x50] sm:$0xf] %vm2413_vm2, %v2896_v51  ;;  %v2897_v38 = vpack.c.bf16 %v4560_v33, %v4560_v33  ;;  %v2487_v5 = vsel %vm217_vm0, %v4560_v33, 0.0  ;;  %v2222_v2 = vpop.f32.mrb[25].mxu0 }
 0x1ba   : > { %2437 = vst.msk [vmem:[%s4383_s29 + $0x5c] sm:$0xf] %vm2413_vm2, %v2899_v29  ;;  %v2488_v20 = vadd.f32 %v2487_v5, %v2486_v35  ;;  %v3056_v28 = vpop.f32.mrb[26].mxu0 }
 0x1bb   : > { %2435 = vst.msk [vmem:[%s4383_s29 + $0x54] sm:$0xf] %vm2413_vm2, %v2897_v38  ;;  %v3021_v12 = vpop.f32.mrb[24].mxu1  ;;  %v2225_v46 = vpop.f32.mrb[27].mxu0 }
 0x1bc   : > { %v2490_v50 = vadd.f32 %v2489_v39, %v2488_v20  ;;  %v4578_v6 = vadd.f32 %v3055_v43, %v3021_v12  ;;  %v2048_v10 = vpop.f32.mrb[25].mxu1 }
 0x1bd   : > { %v4582_v26 = vadd.f32 %v2222_v2, %v2048_v10  ;;  %v3022_v42 = vpop.f32.mrb[26].mxu1 }
 0x1be   : > { %v2902_v7 = vpack.c.bf16 %v4578_v6, %v4578_v6  ;;  %v2492_v23 = vadd.f32 %v2491_v57, %v2490_v50  ;;  %v4586_v47 = vadd.f32 %v3056_v28, %v3022_v42  ;;  %v2051_v27 = vpop.f32.mrb[27].mxu1  ;;  %v2497_v49 = vsel %vm217_vm0, %v4578_v6, 0.0 }
 0x1bf   : > { %v2900_v19 = vpack.c.bf16 %v4582_v26, %v4582_v26  ;;  %v2493_v0 = vsel %vm217_vm0, %v4582_v26, 0.0  ;;  %v4592_v14 = vadd.f32 %v2225_v46, %v2051_v27 }
 0x1c0   : > { %2440 = vst.msk [vmem:[%s4383_s29 + $0x68] sm:$0xf] %vm2413_vm2, %v2902_v7  ;;  %v2494_v3 = vadd.f32 %v2493_v0, %v2492_v23  ;;  %v2903_v45 = vpack.c.bf16 %v4586_v47, %v4586_v47  ;;  %v3059_v8 = vpop.f32.mrb[28].mxu0  ;;  %v2499_v51 = vsel %vm217_vm0, %v4586_v47, 0.0 }
 0x1c1   : > { %2438 = vst.msk [vmem:[%s4383_s29 + $0x60] sm:$0xf] %vm2413_vm2, %v2900_v19  ;;  %v2901_v17 = vpack.c.bf16 %v4592_v14, %v4592_v14  ;;  %v2495_v15 = vsel %vm217_vm0, %v4592_v14, 0.0  ;;  %v2238_v4 = vpop.f32.mrb[29].mxu0 }
 0x1c2   : > { %2441 = vst.msk [vmem:[%s4383_s29 + $0x6c] sm:$0xf] %vm2413_vm2, %v2903_v45  ;;  %v2496_v31 = vadd.f32 %v2495_v15, %v2494_v3  ;;  %v3060_v13 = vpop.f32.mrb[30].mxu0 }
 0x1c3   : > { %2439 = vst.msk [vmem:[%s4383_s29 + $0x64] sm:$0xf] %vm2413_vm2, %v2901_v17  ;;  %v3025_v44 = vpop.f32.mrb[28].mxu1  ;;  %v2241_v16 = vpop.f32.mrb[31].mxu0 }
 0x1c4   : > { %v2498_v21 = vadd.f32 %v2497_v49, %v2496_v31  ;;  %v3091_v22 = vadd.f32 %v3059_v8, %v3025_v44  ;;  %v2064_v53 = vpop.f32.mrb[29].mxu1 }
 0x1c5   : > { %v3092_v61 = vadd.f32 %v2238_v4, %v2064_v53  ;;  %v3026_v35 = vpop.f32.mrb[30].mxu1 }
 0x1c6   : > { %v2906_v29 = vpack.c.bf16 %v3091_v22, %v3091_v22  ;;  %v2500_v43 = vadd.f32 %v2499_v51, %v2498_v21  ;;  %v3093_v38 = vadd.f32 %v3060_v13, %v3026_v35  ;;  %v2067_v5 = vpop.f32.mrb[31].mxu1  ;;  %v2505_v57 = vsel %vm217_vm0, %v3091_v22, 0.0 }
 0x1c7   : > { %v2904_v2 = vpack.c.bf16 %v3092_v61, %v3092_v61  ;;  %v2501_v20 = vsel %vm217_vm0, %v3092_v61, 0.0  ;;  %v3094_v28 = vadd.f32 %v2241_v16, %v2067_v5 }
 0x1c8   : > { %2444 = vst.msk [vmem:[%s4383_s29 + $0x78] sm:$0xf] %vm2413_vm2, %v2906_v29  ;;  %v2502_v39 = vadd.f32 %v2501_v20, %v2500_v43  ;;  %v2907_v12 = vpack.c.bf16 %v3093_v38, %v3093_v38  ;;  %v2507_v7 = vsel %vm217_vm0, %v3093_v38, 0.0 }
 0x1c9   : > { %2442 = vst.msk [vmem:[%s4383_s29 + $0x70] sm:$0xf] %vm2413_vm2, %v2904_v2  ;;  %v2905_v46 = vpack.c.bf16 %v3094_v28, %v3094_v28  ;;  %v2503_v50 = vsel %vm217_vm0, %v3094_v28, 0.0 }
 0x1ca   : > { %2445 = vst.msk [vmem:[%s4383_s29 + $0x7c] sm:$0xf] %vm2413_vm2, %v2907_v12  ;;  %v2504_v10 = vadd.f32 %v2503_v50, %v2502_v39 }
 0x1cb   : > { %2443 = vst.msk [vmem:[%s4383_s29 + $0x74] sm:$0xf] %vm2413_vm2, %v2905_v46 }
 0x1cc   : > { %v2506_v42 = vadd.f32 %v2505_v57, %v2504_v10 }
 0x1ce   : > { %v2508_v23 = vadd.f32 %v2507_v7, %v2506_v42 }
 0x1d0   : > { %v2509_v27 = vrot.slane %v2508_v23, 4 }
 0x1d2   : > { %v2510_v19 = vadd.f32 %v2509_v27, %v2508_v23 }
 0x1d4   : > { %v2511_v0 = vrot.slane %v2510_v19, 2 }
 0x1d6   : > { %v2512_v3 = vadd.f32 %v2511_v0, %v2510_v19 }
 0x1d8   : > { %v2513_v45 = vrot.slane %v2512_v3, 1 }
 0x1da   : > { %v2514_v8 = vadd.f32 %v2513_v45, %v2512_v3 }
 0x1dc   : > { %2651 = vst.msk [vmem:[%s4628_s6] sm:$0x1] %vm2650_vm4, %v2514_v8  ;;  %v2516_v17 = vmul.f32 0.00390625, %v2514_v8 }
 0x1de   : > { %v4633_v15 = vsub.f32 %v4484_v30, %v2516_v17  ;;  %v4636_v4 = vsub.f32 %v4496_v40, %v2516_v17  ;;  %v4639_v31 = vsub.f32 %v4479_v34, %v2516_v17  ;;  %v4642_v13 = vsub.f32 %v4489_v60, %v2516_v17 }
 0x1df   : > { %v4645_v49 = vsub.f32 %v4518_v1, %v2516_v17  ;;  %v4648_v44 = vsub.f32 %v4528_v24, %v2516_v17  ;;  %v4651_v16 = vsub.f32 %v4516_v59, %v2516_v17  ;;  %v4654_v30 = vsub.f32 %v4522_v25, %v2516_v17 }
 0x1e0   : > { %v4657_v40 = vsub.f32 %v4550_v11, %v2516_v17  ;;  %v4660_v34 = vsub.f32 %v4560_v33, %v2516_v17  ;;  %v4663_v60 = vsub.f32 %v4546_v62, %v2516_v17  ;;  %v4666_v1 = vsub.f32 %v4554_v56, %v2516_v17 }
 0x1e1   : > { %v4669_v24 = vsub.f32 %v4582_v26, %v2516_v17  ;;  %v4672_v59 = vsub.f32 %v4592_v14, %v2516_v17  ;;  %v4675_v25 = vsub.f32 %v4578_v6, %v2516_v17  ;;  %v4678_v11 = vsub.f32 %v4586_v47, %v2516_v17 }
 0x1e2   : > { %v4680_v33 = vsub.f32 %v3092_v61, %v2516_v17  ;;  %v4682_v21 = vsub.f32 %v3094_v28, %v2516_v17  ;;  %v4684_v62 = vsub.f32 %v3091_v22, %v2516_v17  ;;  %v4686_v56 = vsub.f32 %v3093_v38, %v2516_v17 }
 0x1e3   : > { %v2517_v26 = vsub.f32 %v4385_v9, %v2516_v17  ;;  %v2518_v53 = vsub.f32 %v4393_v41, %v2516_v17  ;;  %v2519_v14 = vsub.f32 %v4378_v37, %v2516_v17  ;;  %v2520_v6 = vsub.f32 %v4389_v55, %v2516_v17 }
 0x1e4   : > { %v2521_v47 = vsub.f32 %v4417_v63, %v2516_v17  ;;  %v2522_v29 = vsub.f32 %v4427_v32, %v2516_v17  ;;  %v2523_v9 = vsub.f32 %v4413_v18, %v2516_v17  ;;  %v2524_v55 = vsub.f32 %v4421_v36, %v2516_v17 }
 0x1e5   : > { %v2549_v51 = vmul.f32 %v2517_v26, %v2517_v26  ;;  %v2550_v35 = vmul.f32 %v2518_v53, %v2518_v53  ;;  %v2551_v61 = vmul.f32 %v2519_v14, %v2519_v14  ;;  %v2552_v43 = vmul.f32 %v2520_v6, %v2520_v6 }
 0x1e6   : > { %v2553_v41 = vmul.f32 %v2521_v47, %v2521_v47  ;;  %v2554_v20 = vmul.f32 %v2522_v29, %v2522_v29  ;;  %v2525_v32 = vsub.f32 %v4449_v58, %v2516_v17  ;;  %v2555_v39 = vmul.f32 %v2523_v9, %v2523_v9 }
 0x1e7   : > { %v2581_v22 = vsel %vm217_vm0, %v2549_v51, 0.0  ;;  %v2582_v38 = vsel %vm217_vm0, %v2550_v35, 0.0  ;;  %v2584_v37 = vsel %vm217_vm0, %v2551_v61, 0.0  ;;  %v2586_v63 = vsel %vm217_vm0, %v2552_v43, 0.0 }
 0x1e8   : > { %v2583_v5 = vadd.f32 %v2582_v38, %v2581_v22  ;;  %v2588_v12 = vsel %vm217_vm0, %v2553_v41, 0.0  ;;  %v2526_v50 = vsub.f32 %v4460_v48, %v2516_v17  ;;  %v2556_v10 = vmul.f32 %v2524_v55, %v2524_v55 }
 0x1e9   : > { %v2590_v18 = vsel %vm217_vm0, %v2554_v20, 0.0  ;;  %v2527_v42 = vsub.f32 %v4445_v52, %v2516_v17  ;;  %v2557_v7 = vmul.f32 %v2525_v32, %v2525_v32  ;;  %v2592_v36 = vsel %vm217_vm0, %v2555_v39, 0.0 }
 0x1ea   : > { %v2585_v2 = vadd.f32 %v2584_v37, %v2583_v5  ;;  %v2528_v27 = vsub.f32 %v4453_v54, %v2516_v17  ;;  %v2558_v19 = vmul.f32 %v2526_v50, %v2526_v50  ;;  %v2594_v58 = vsel %vm217_vm0, %v2556_v10, 0.0 }
 0x1eb   : > { %v2559_v3 = vmul.f32 %v2527_v42, %v2527_v42  ;;  %v2596_v45 = vsel %vm217_vm0, %v2557_v7, 0.0  ;;  %v2561_v52 = vmul.f32 %v4633_v15, %v4633_v15  ;;  %v2562_v54 = vmul.f32 %v4636_v4, %v4636_v4 }
 0x1ec   : > { %v2587_v28 = vadd.f32 %v2586_v63, %v2585_v2  ;;  %v2560_v8 = vmul.f32 %v2528_v27, %v2528_v27  ;;  %v2598_v26 = vsel %vm217_vm0, %v2558_v19, 0.0  ;;  %v2563_v35 = vmul.f32 %v4639_v31, %v4639_v31 }
 0x1ed   : > { %v2600_v14 = vsel %vm217_vm0, %v2559_v3, 0.0  ;;  %v2604_v47 = vsel %vm217_vm0, %v2561_v52, 0.0  ;;  %v2564_v29 = vmul.f32 %v4642_v13, %v4642_v13  ;;  %v2606_v15 = vsel %vm217_vm0, %v2562_v54, 0.0 }
 0x1ee   : > { %v2589_v46 = vadd.f32 %v2588_v12, %v2587_v28  ;;  %v2602_v17 = vsel %vm217_vm0, %v2560_v8, 0.0  ;;  %v2565_v22 = vmul.f32 %v4645_v49, %v4645_v49  ;;  %v2608_v4 = vsel %vm217_vm0, %v2563_v35, 0.0 }
 0x1ef   : > { %v2566_v5 = vmul.f32 %v4648_v44, %v4648_v44  ;;  %v2610_v31 = vsel %vm217_vm0, %v2564_v29, 0.0  ;;  %v2567_v41 = vmul.f32 %v4651_v16, %v4651_v16  ;;  %v2568_v2 = vmul.f32 %v4654_v30, %v4654_v30 }
 0x1f0   : > { %v2591_v57 = vadd.f32 %v2590_v18, %v2589_v46  ;;  %v2612_v13 = vsel %vm217_vm0, %v2565_v22, 0.0  ;;  %v2569_v20 = vmul.f32 %v4657_v40, %v4657_v40  ;;  %v2570_v28 = vmul.f32 %v4660_v34, %v4660_v34 }
 0x1f1   : > { %v2614_v49 = vsel %vm217_vm0, %v2566_v5, 0.0  ;;  %v2616_v44 = vsel %vm217_vm0, %v2567_v41, 0.0  ;;  %v2618_v16 = vsel %vm217_vm0, %v2568_v2, 0.0  ;;  %v2571_v39 = vmul.f32 %v4663_v60, %v4663_v60 }
 0x1f2   : > { %v2593_v23 = vadd.f32 %v2592_v36, %v2591_v57  ;;  %v2620_v30 = vsel %vm217_vm0, %v2569_v20, 0.0  ;;  %v2572_v46 = vmul.f32 %v4666_v1, %v4666_v1  ;;  %v2622_v40 = vsel %vm217_vm0, %v2570_v28, 0.0 }
 0x1f3   : > { %v2573_v10 = vmul.f32 %v4669_v24, %v4669_v24  ;;  %v2624_v34 = vsel %vm217_vm0, %v2571_v39, 0.0  ;;  %v2574_v57 = vmul.f32 %v4672_v59, %v4672_v59  ;;  %v2575_v7 = vmul.f32 %v4675_v25, %v4675_v25 }
 0x1f4   : > { %v2595_v0 = vadd.f32 %v2594_v58, %v2593_v23  ;;  %v2626_v60 = vsel %vm217_vm0, %v2572_v46, 0.0  ;;  %v2576_v23 = vmul.f32 %v4678_v11, %v4678_v11  ;;  %v2577_v19 = vmul.f32 %v4680_v33, %v4680_v33 }
 0x1f5   : > { %v2628_v1 = vsel %vm217_vm0, %v2573_v10, 0.0  ;;  %v2630_v24 = vsel %vm217_vm0, %v2574_v57, 0.0  ;;  %v2632_v59 = vsel %vm217_vm0, %v2575_v7, 0.0  ;;  %v2580_v8 = vmul.f32 %v4686_v56, %v4686_v56 }
 0x1f6   : > { %v2597_v48 = vadd.f32 %v2596_v45, %v2595_v0  ;;  %v2578_v0 = vmul.f32 %v4682_v21, %v4682_v21  ;;  %v2634_v25 = vsel %vm217_vm0, %v2576_v23, 0.0  ;;  %v2579_v45 = vmul.f32 %v4684_v62, %v4684_v62 }
 0x1f7   : > { %v2636_v11 = vsel %vm217_vm0, %v2577_v19, 0.0  ;;  %v2642_v21 = vsel %vm217_vm0, %v2580_v8, 0.0 }
 0x1f8   : > { %v2599_v53 = vadd.f32 %v2598_v26, %v2597_v48  ;;  %v2638_v33 = vsel %vm217_vm0, %v2578_v0, 0.0 }
 0x1fa   : > { %v2601_v6 = vadd.f32 %v2600_v14, %v2599_v53  ;;  %v2640_v53 = vsel %vm217_vm0, %v2579_v45, 0.0 }
 0x1fc   : > { %v2603_v51 = vadd.f32 %v2602_v17, %v2601_v6 }
 0x1fe   : > { %v2605_v61 = vadd.f32 %v2604_v47, %v2603_v51 }
 0x200   : > { %v2607_v43 = vadd.f32 %v2606_v15, %v2605_v61 }
 0x202   : > { %v2609_v38 = vadd.f32 %v2608_v4, %v2607_v43 }
 0x204   : > { %v2611_v9 = vadd.f32 %v2610_v31, %v2609_v38 }
 0x206   : > { %v2613_v37 = vadd.f32 %v2612_v13, %v2611_v9 }
 0x208   : > { %v2615_v55 = vadd.f32 %v2614_v49, %v2613_v37 }
 0x20a   : > { %v2617_v63 = vadd.f32 %v2616_v44, %v2615_v55 }
 0x20c   : > { %v2619_v32 = vadd.f32 %v2618_v16, %v2617_v63 }
 0x20e   : > { %v2621_v12 = vadd.f32 %v2620_v30, %v2619_v32 }
 0x210   : > { %v2623_v50 = vadd.f32 %v2622_v40, %v2621_v12 }
 0x212   : > { %v2625_v18 = vadd.f32 %v2624_v34, %v2623_v50 }
 0x214   : > { %v2627_v42 = vadd.f32 %v2626_v60, %v2625_v18 }
 0x216   : > { %v2629_v36 = vadd.f32 %v2628_v1, %v2627_v42 }
 0x218   : > { %v2631_v27 = vadd.f32 %v2630_v24, %v2629_v36 }
 0x21a   : > { %v2633_v58 = vadd.f32 %v2632_v59, %v2631_v27 }
 0x21c   : > { %v2635_v3 = vadd.f32 %v2634_v25, %v2633_v58 }
 0x21e   : > { %v2637_v48 = vadd.f32 %v2636_v11, %v2635_v3 }
 0x220   : > { %v2639_v26 = vadd.f32 %v2638_v33, %v2637_v48 }
 0x222   : > { %v2641_v52 = vadd.f32 %v2640_v53, %v2639_v26 }
 0x224   : > { %v2643_v14 = vadd.f32 %v2642_v21, %v2641_v52 }
 0x226   : > { %v2644_v6 = vrot.slane %v2643_v14, 4 }
 0x228   : > { %v2645_v54 = vadd.f32 %v2644_v6, %v2643_v14 }
 0x22a   : > { %v2646_v17 = vrot.slane %v2645_v54, 2 }
 0x22c   : > { %v2647_v62 = vadd.f32 %v2646_v17, %v2645_v54 }
 0x22e   : > { %v2648_v51 = vrot.slane %v2647_v62, 1 }
 0x230   : > { %v2649_v35 = vadd.f32 %v2648_v51, %v2647_v62 }
 0x232   : > { %2652 = vst.msk [vmem:[%s4628_s6 + $0x1] sm:$0x1] %vm2650_vm4, %v2649_v35 }
 0x233 PF: > { %s14_s12 = sadd.s32 1, %s3153_s12  }
 0x234   : > { %p11_p4 = scmp.ge.s32.totalorder %s14_s12, 4  }
 0x236   :  { %13 = sbr.rel (!%p11_p4) target bundleno = 1 (0x1), region = 74 }

// kernel: basic_block_forward.4
= control target key start
LH: loop header
LB: loop body
LE: loop exit
PB: predicated region body
PF: predicated region fallthrough
CT: control target
= control target key end

     0   :  { %s3467_s18 = smov 0   ;;  %s5129_s0 = inlined_call_operand.vmem [shape: bf16[2,16,16,4], index: 0, kind: input, shape index: {}]   ;;  %s5130_s1 = inlined_call_operand.vmem [shape: f32[1,4], index: 1, kind: input, shape index: {}]   ;;  %s5131_s2 = inlined_call_operand.vmem [shape: f32[1,4], index: 2, kind: input, shape index: {}]   ;;  %s5132_s3 = inlined_call_operand.vmem [shape: bf16[3,12,4], index: 3, kind: input, shape index: {}]   ;;  %s5133_s4 = inlined_call_operand.vmem [shape: bf16[2,16,16,4], index: 4, kind: output, shape index: {0}]   ;;  %s5134_s5 = inlined_call_operand.vmem [shape: f32[2,2,4], index: 5, kind: output, shape index: {1}]  }
   0x1 LB: > { %s2935_s19 = sadd.s32 4294967295, %s3430_s18   ;;  %p2939_p0 = scmp.ge.s32.totalorder %s3430_s18, 1  ;;  %s3430_s18 = sphi %s3467_s18, %s16_s18  }
   0x2   : > { %p190_p1 = scmp.lt.s32.totalorder %s3430_s18, 3 }
   0x4   : > { %p191_p2 = pnand %p2939_p0, %p190_p1 }
   0x5   : > { %vm413_vm0 = vcmask (!%p191_p2), 31744   ;;  %p222_p3 = scmp.lt.s32.totalorder (!%p191_p2), %s2935_s19, 1  ;;  %v488_v0 = vlaneseq (!%p191_p2)  ;;  %v3432_v1 = vmov (!%p191_p2), 0.0   ;;  %v3502_v12 = vld [vmem:[%s5130_s1] ss:$0 sm:$0xff] (!%p191_p2)  ;;  %vm3433_vm1 = vmmov (!%p191_p2), 0  }
   0x6   : > { %194 = sbr.rel (%p191_p2) target bundleno = 580 (0x244), region = 36  ;;  %414 = vst.msk [vmem:[#allocation2] sm:$0xff] (!%p191_p2), %vm413_vm0, %v3432_v1  ;;  %415 = vst.msk [vmem:[#allocation2 + $0x8] sm:$0xff] (!%p191_p2), %vm413_vm0, %v3432_v1  ;;  %v3514_v20 = vld [vmem:[%s5131_s2] ss:$0 sm:$0xff] (!%p191_p2)  ;;  %s3434_s28 = smov (!%p191_p2), 4  }
   0x7   : > { %417 = vst.msk [vmem:[#allocation2 + $0x110] sm:$0xff] (!%p191_p2), %vm413_vm0, %v3432_v1  ;;  %418 = vst.msk [vmem:[#allocation2 + $0x118] sm:$0xff] (!%p191_p2), %vm413_vm0, %v3432_v1  ;;  %v3481_v2 = vshrl.u32 (!%p191_p2), %v488_v0, 7  ;;  %v3435_v27 = vmov (!%p191_p2), 0   ;;  %s3436_s29 = smov (!%p191_p2), 8  }
   0x8   : > { %vm1175_vm2 = vmpackc.low (!%p191_p2), %vm3433_vm1, %vm3433_vm1 }
   0x9   : > { %v490_v3 = vadd.s32 (!%p191_p2), 8, %v3481_v2  ;;  %v492_v4 = vadd.s32 (!%p191_p2), 24, %v3481_v2  ;;  %v494_v5 = vadd.s32 (!%p191_p2), 40, %v3481_v2  ;;  %v3526_v28 = vsel (!%p191_p2), %vm1175_vm2, 65537, %v3435_v27 }
   0xa   : > { %v496_v30 = vadd.s32 (!%p191_p2), 56, %v3481_v2  ;;  %vm1408_vm5 = vcmp.lt.s32.totalorder (!%p191_p2), %v3481_v2, 7  ;;  %v498_v38 = vadd.s32 (!%p191_p2), 72, %v3481_v2  ;;  %v3546_v39 = vadd.s32 (!%p191_p2), 88, %v3481_v2 }
   0xb   : > { %v536_v8 = vand.u32 (!%p191_p2), 15, %v490_v3  ;;  %v550_v17 = vand.u32 (!%p191_p2), 15, %v492_v4  ;;  %v564_v21 = vand.u32 (!%p191_p2), 15, %v494_v5 }
   0xc   : > { %v578_v53 = vand.u32 (!%p191_p2), 15, %v496_v30  ;;  %v592_v55 = vand.u32 (!%p191_p2), 15, %v498_v38 }
   0xd   : > { %s5220_s19 = smov (!%p222_p3, %s2935_s19), 1  ;;  %v3504_v15 = vld [vmem:[#allocation2] sm:$0xff]  ;;  %v3506_v16 = vld [vmem:[#allocation2 + $0x8] sm:$0xff]  ;;  %vm3519_vm3 = vcmp.eq.s32.totalorder %v536_v8, 15  ;;  %vm3533_vm4 = vcmp.eq.s32.totalorder %v550_v17, 15  ;;  %vm3548_vm7 = vcmp.eq.s32.totalorder %v564_v21, 15 }
   0xe   : > { %s3072_s20 = sshll.u32 %s5220_s19, 7  ;;  %v957_v19 = vpack.c.bf16 %v3506_v16, %v3504_v15  ;;  %vm1536_vm6 = vmpackc.low %vm3519_vm3, %vm3519_vm3  ;;  %v1372_v45 = vrot.slane %v3504_v15, 1  ;;  %v1373_v46 = vrot.slane %v3506_v16, 1  ;;  %vm3584_vm10 = vcmp.eq.s32.totalorder %v578_v53, 15  ;;  %s2944_s14 = sshll.u32 %s5220_s19, 1 }
   0xf   : > { %s3491_s23 = scalar_lea.vmem %s5129_s0, %s3072_s20  ;;  %vm1538_vm8 = vmpackc.low %vm3533_vm4, %vm3533_vm4  ;;  %v1572_v49 = vsel %vm1536_vm6, 65537, %v3435_v27  ;;  %vm3595_vm11 = vcmp.eq.s32.totalorder %v592_v55, 15  ;;  %s4723_s13 = scalar_lea.vmem %s5133_s4, %s3072_s20 }
  0x10   : > { %v3170_v6 = vld [vmem:[%s3491_s23 + $0x8] sm:$0xff]   ;;  %v3107_v7 = vld [vmem:[%s3491_s23] sm:$0xff]   ;;  %v3497_v9 = vld [vmem:[%s3491_s23 + $0x10] sm:$0xff]   ;;  %1715 = vrot.lane.b32.xlu0 %v957_v19, %s3434_s28  ;;  %v1574_v58 = vsel %vm1538_vm8, 65537, %v3435_v27  ;;  %v2965_v62 = vcombine.low %v3526_v28, %v1572_v49  ;;  %s4963_s17 = scalar_lea.vmem %s5134_s5, %s2944_s14 }
  0x11   : > { %v3112_v10 = vunpack.c.l.bf16 %v3170_v6  ;;  %v3113_v11 = vunpack.c.h.bf16 %v3170_v6  ;;  %v3108_v13 = vunpack.c.l.bf16 %v3107_v7  ;;  %v3109_v14 = vunpack.c.h.bf16 %v3107_v7  ;;  %v3172_v37 = vld [vmem:[%s3491_s23 + $0x18] sm:$0xff]   ;;  %v3173_v44 = vld [vmem:[%s3491_s23 + $0x20] sm:$0xff]   ;;  %v3174_v57 = vld [vmem:[%s3491_s23 + $0x28] sm:$0xff]  }
  0x12   : > { %v3116_v18 = vunpack.c.l.bf16 %v3497_v9  ;;  %v3117_v50 = vunpack.c.h.bf16 %v3497_v9  ;;  %v3120_v51 = vunpack.c.l.bf16 %v3172_v37  ;;  %v3121_v52 = vunpack.c.h.bf16 %v3172_v37  ;;  %vm1540_vm9 = vmpackc.low %vm3548_vm7, %vm3548_vm7 }
  0x13   : > { %v312_v22 = vmul.f32 %v3112_v10, %v3502_v12  ;;  %v313_v23 = vmul.f32 %v3113_v11, %v3502_v12  ;;  %v310_v24 = vmul.f32 %v3108_v13, %v3502_v12  ;;  %v311_v26 = vmul.f32 %v3109_v14, %v3502_v12  ;;  %vm1542_vm12 = vmpackc.low %vm3584_vm10, %vm3584_vm10 }
  0x14   : > { %v314_v29 = vmul.f32 %v3116_v18, %v3502_v12  ;;  %v3124_v54 = vunpack.c.l.bf16 %v3173_v44  ;;  %v3125_v56 = vunpack.c.h.bf16 %v3173_v44  ;;  %v315_v59 = vmul.f32 %v3117_v50, %v3502_v12  ;;  %vm1544_vm14 = vmpackc.low %vm3595_vm11, %vm3595_vm11 }
  0x15   : > { %v351_v31 = vadd.f32 %v3514_v20, %v312_v22  ;;  %v352_v32 = vadd.f32 %v3514_v20, %v313_v23  ;;  %v349_v33 = vadd.f32 %v3514_v20, %v310_v24  ;;  %v350_v35 = vadd.f32 %v3514_v20, %v311_v26 }
  0x16   : > { %v353_v36 = vadd.f32 %v3514_v20, %v314_v29  ;;  %v316_v60 = vmul.f32 %v3120_v51, %v3502_v12  ;;  %v317_v61 = vmul.f32 %v3121_v52, %v3502_v12  ;;  %v318_v0 = vmul.f32 %v3124_v54, %v3502_v12 }
  0x17   : > { %v383_v40 = vmax.f32 %v351_v31, 0.0  ;;  %v384_v41 = vmax.f32 %v352_v32, 0.0  ;;  %v381_v42 = vmax.f32 %v349_v33, 0.0  ;;  %v382_v47 = vmax.f32 %v350_v35, 0.0 }
  0x18   : > { %v385_v48 = vmax.f32 %v353_v36, 0.0  ;;  %v319_v1 = vmul.f32 %v3125_v56, %v3502_v12  ;;  %v354_v3 = vadd.f32 %v3514_v20, %v315_v59  ;;  %v355_v4 = vadd.f32 %v3514_v20, %v316_v60  ;;  %v3175_v56 = vld [vmem:[%s3491_s23 + $0x30] sm:$0xff]  }
  0x19   : > { %422 = vst.msk [vmem:[#allocation2 + $0x20] sm:$0xff] %vm413_vm0, %v383_v40  ;;  %423 = vst.msk [vmem:[#allocation2 + $0x28] sm:$0xff] %vm413_vm0, %v384_v41  ;;  %v356_v5 = vadd.f32 %v3514_v20, %v317_v61  ;;  %v3128_v6 = vunpack.c.l.bf16 %v3174_v57  ;;  %v2966_v7 = vcombine.low %v3526_v28, %v1574_v58  ;;  %v357_v8 = vadd.f32 %v3514_v20, %v318_v0 }
  0x1a   : > { %420 = vst.msk [vmem:[#allocation2 + $0x10] sm:$0xff] %vm413_vm0, %v381_v42  ;;  %421 = vst.msk [vmem:[#allocation2 + $0x18] sm:$0xff] %vm413_vm0, %v382_v47  ;;  %v358_v10 = vadd.f32 %v3514_v20, %v319_v1  ;;  %v1576_v11 = vsel %vm1540_vm9, 65537, %v3435_v27  ;;  %v386_v13 = vmax.f32 %v354_v3, 0.0  ;;  %v387_v14 = vmax.f32 %v355_v4, 0.0 }
  0x1b   : > { %424 = vst.msk [vmem:[#allocation2 + $0x30] sm:$0xff] %vm413_vm0, %v385_v48  ;;  %v388_v17 = vmax.f32 %v356_v5, 0.0  ;;  %v389_v22 = vmax.f32 %v357_v8, 0.0  ;;  %v3129_v24 = vunpack.c.h.bf16 %v3174_v57  ;;  %v320_v25 = vmul.f32 %v3128_v6, %v3502_v12 }
  0x1c   : > { %v390_v23 = vmax.f32 %v358_v10, 0.0  ;;  %v1443_v31 = vsel %vm1408_vm5, %v1372_v45, %v1373_v46  ;;  %vm3622_vm13 = vcmp.ne.s16.totalorder %v2965_v62, 0  ;;  %425 = vst.msk [vmem:[#allocation2 + $0x38] sm:$0xff] %vm413_vm0, %v386_v13  ;;  %426 = vst.msk [vmem:[#allocation2 + $0x40] sm:$0xff] %vm413_vm0, %v387_v14  ;;  %vm3637_vm15 = vcmp.ne.s16.totalorder %v2966_v7, 0 }
  0x1d   : > { %427 = vst.msk [vmem:[#allocation2 + $0x48] sm:$0xff] %vm413_vm0, %v388_v17  ;;  %v2967_v37 = vcombine.low %v3526_v28, %v1576_v11  ;;  %428 = vst.msk [vmem:[#allocation2 + $0x50] sm:$0xff] %vm413_vm0, %v389_v22  ;;  %v1578_v42 = vsel %vm1542_vm12, 65537, %v3435_v27  ;;  %v1580_v44 = vsel %vm1544_vm14, 65537, %v3435_v27  ;;  %v321_v47 = vmul.f32 %v3129_v24, %v3502_v12 }
  0x1e   : > { %429 = vst.msk [vmem:[#allocation2 + $0x58] sm:$0xff] %vm413_vm0, %v390_v23  ;;  %v359_v48 = vadd.f32 %v3514_v20, %v320_v25  ;;  %v2968_v58 = vcombine.low %v3526_v28, %v1578_v42  ;;  %v502_v59 = vadd.s32 104, %v3481_v2  ;;  %v2969_v1 = vcombine.low %v3526_v28, %v1580_v44 }
  0x1f   : > { %vm3671_vm1 = vcmp.ne.s16.totalorder %v2967_v37, 0  ;;  %v360_v3 = vadd.f32 %v3514_v20, %v321_v47  ;;  %v606_v8 = vand.u32 15, %v3546_v39  ;;  %v3132_v9 = vunpack.c.l.bf16 %v3175_v56 }
  0x20   : > { %v3604_v18 = vld [vmem:[#allocation2 + $0x20] sm:$0xff]  ;;  %v3606_v19 = vld [vmem:[#allocation2 + $0x28] sm:$0xff]  ;;  %v3133_v14 = vunpack.c.h.bf16 %v3175_v56  ;;  %vm3708_vm2 = vcmp.ne.s16.totalorder %v2968_v58, 0  ;;  %vm3724_vm4 = vcmp.ne.s16.totalorder %v2969_v1, 0  ;;  %v504_v1 = vadd.s32 120, %v3481_v2 }
  0x21   : > { %v3608_v21 = vld [vmem:[#allocation2 + $0x10] sm:$0xff]  ;;  %v959_v26 = vpack.c.bf16 %v3606_v19, %v3604_v18  ;;  %v1376_v29 = vrot.slane %v3604_v18, 1  ;;  %v3614_v30 = vld [vmem:[#allocation2 + $0x18] sm:$0xff]  ;;  %v1377_v34 = vrot.slane %v3606_v19, 1  ;;  %vm1347_vm3 = vcmp.eq.s32.totalorder %v606_v8, 15  ;;  %v3177_v56 = vld [vmem:[%s3491_s23 + $0x40] sm:$0xff]  }
  0x22   : > { %v3626_v33 = vld [vmem:[#allocation2 + $0x30] sm:$0xff]  ;;  %v958_v35 = vpack.c.bf16 %v3614_v30, %v3608_v21  ;;  %v1374_v38 = vrot.slane %v3608_v21, 1  ;;  %v1375_v40 = vrot.slane %v3614_v30, 1  ;;  %vm1546_vm6 = vmpackc.low %vm1347_vm3, %vm1347_vm3  ;;  %v506_v8 = vadd.s32 136, %v3481_v2 }
  0x23   : > { %1719 = vrot.lane.b32.xlu1 %v959_v26, %s3434_s28  ;;  %v1378_v41 = vrot.slane %v3626_v33, 1  ;;  %v1439_v43 = vsel %vm1408_vm5, %v1376_v29, %v1377_v34  ;;  %v3681_v62 = vld [vmem:[#allocation2 + $0x38] sm:$0xff]  ;;  %v3683_v63 = vld [vmem:[#allocation2 + $0x40] sm:$0xff]  ;;  %v1582_v42 = vsel %vm1546_vm6, 65537, %v3435_v27 }
  0x24   : > { %1717 = vrot.lane.b32.xlu0 %v958_v35, %s3434_s28  ;;  %v1442_v49 = vsel %vm1408_vm5, %v1373_v46, %v1374_v38  ;;  %v1440_v50 = vsel %vm1408_vm5, %v1375_v40, %v1376_v29  ;;  %v1441_v51 = vsel %vm1408_vm5, %v1374_v38, %v1375_v40  ;;  %v391_v46 = vmax.f32 %v359_v48, 0.0  ;;  %v3685_v0 = vld [vmem:[#allocation2 + $0x48] sm:$0xff]  ;;  %v3694_v6 = vld [vmem:[#allocation2 + $0x50] sm:$0xff] }
  0x25   : > { %v1438_v52 = vsel %vm1408_vm5, %v1377_v34, %v1378_v41  ;;  %v1445_v53 = vpack.c.bf16 %v1442_v49, %v1443_v31  ;;  %v1446_v54 = vpack.c.bf16 %v1440_v50, %v1441_v51  ;;  %v960_v4 = vpack.c.bf16 %v3681_v62, %v3626_v33  ;;  %v3696_v7 = vld [vmem:[#allocation2 + $0x58] sm:$0xff] }
  0x26   : > { %v1447_v55 = vpack.c.bf16 %v1438_v52, %v1439_v43  ;;  %v1379_v5 = vrot.slane %v3681_v62, 1  ;;  %430 = vst.msk [vmem:[#allocation2 + $0x60] sm:$0xff] %vm413_vm0, %v391_v46  ;;  %v1380_v11 = vrot.slane %v3683_v63, 1  ;;  %v1381_v13 = vrot.slane %v3685_v0, 1  ;;  %v3176_v31 = vld [vmem:[%s3491_s23 + $0x38] sm:$0xff]  }
  0x27   : > { %v1679_v60 = vsel %vm3622_vm13, 0, %v1445_v53  ;;  %v1680_v61 = vsel %vm3637_vm15, 0, %v1446_v54  ;;  %v961_v17 = vpack.c.bf16 %v3685_v0, %v3683_v63  ;;  %v1382_v39 = vrot.slane %v3694_v6, 1 }
  0x28   : > { %1769 = vrot.lane.b32.xlu1 %v1679_v60, %s3436_s29  ;;  %1771 = vrot.lane.b32.xlu0 %v1680_v61, %s3436_s29  ;;  %v1681_v10 = vsel %vm3671_vm1, 0, %v1447_v55  ;;  %v1437_v22 = vsel %vm1408_vm5, %v1378_v41, %v1379_v5  ;;  %v1436_v24 = vsel %vm1408_vm5, %v1379_v5, %v1380_v11  ;;  %v1435_v25 = vsel %vm1408_vm5, %v1380_v11, %v1381_v13 }
  0x29   : > { %v1383_v26 = vrot.slane %v3696_v7, 1  ;;  %v392_v29 = vmax.f32 %v360_v3, 0.0  ;;  %v1448_v32 = vpack.c.bf16 %v1436_v24, %v1437_v22  ;;  %v1434_v34 = vsel %vm1408_vm5, %v1381_v13, %v1382_v39 }
  0x2a   : > { %v322_v35 = vmul.f32 %v3132_v9, %v3502_v12  ;;  %v1449_v36 = vpack.c.bf16 %v1434_v34, %v1435_v25  ;;  %v620_v38 = vand.u32 15, %v502_v59  ;;  %v323_v40 = vmul.f32 %v3133_v14, %v3502_v12 }
  0x2b   : > { %431 = vst.msk [vmem:[#allocation2 + $0x68] sm:$0xff] %vm413_vm0, %v392_v29  ;;  %v1682_v41 = vsel %vm3708_vm2, 0, %v1448_v32  ;;  %v3136_v44 = vunpack.c.l.bf16 %v3176_v31  ;;  %v962_v47 = vpack.c.bf16 %v3696_v7, %v3694_v6  ;;  %v2970_v49 = vcombine.low %v3526_v28, %v1582_v42 }
  0x2c   : > { %1773 = vrot.lane.b32.xlu1 %v1681_v10, %s3436_s29  ;;  %1721 = vrot.lane.b32.xlu0 %v960_v4, %s3434_s28  ;;  %v361_v43 = vadd.f32 %v3514_v20, %v322_v35  ;;  %vm3739_vm7 = vcmp.eq.s32.totalorder %v620_v38, 15  ;;  %v362_v51 = vadd.f32 %v3514_v20, %v323_v40  ;;  %v1433_v53 = vsel %vm1408_vm5, %v1382_v39, %v1383_v26 }
  0x2d   : > { %v3736_v48 = vld [vmem:[#allocation2 + $0x60] sm:$0xff]  ;;  %v3137_v55 = vunpack.c.h.bf16 %v3176_v31  ;;  %v1683_v57 = vsel %vm3724_vm4, 0, %v1449_v36  ;;  %vm1548_vm8 = vmpackc.low %vm3739_vm7, %vm3739_vm7  ;;  %v324_v46 = vmul.f32 %v3136_v44, %v3502_v12  ;;  %vm3758_vm9 = vcmp.ne.s16.totalorder %v2970_v49, 0 }
  0x2e   : > { %v1384_v52 = vrot.slane %v3736_v48, 1  ;;  %v393_v54 = vmax.f32 %v361_v43, 0.0  ;;  %v394_v58 = vmax.f32 %v362_v51, 0.0  ;;  %v3140_v5 = vunpack.c.l.bf16 %v3177_v56 }
  0x2f   : > { %v325_v61 = vmul.f32 %v3137_v55, %v3502_v12  ;;  %v363_v4 = vadd.f32 %v3514_v20, %v324_v46  ;;  %v1584_v10 = vsel %vm1548_vm8, 65537, %v3435_v27  ;;  %v634_v13 = vand.u32 15, %v504_v1 }
  0x30   : > { %1723 = vrot.lane.b32.xlu1 %v961_v17, %s3434_s28  ;;  %1775 = vrot.lane.b32.xlu0 %v1682_v41, %s3436_s29  ;;  %v1432_v59 = vsel %vm1408_vm5, %v1383_v26, %v1384_v52  ;;  %432 = vst.msk [vmem:[#allocation2 + $0x70] sm:$0xff] %vm413_vm0, %v393_v54  ;;  %433 = vst.msk [vmem:[#allocation2 + $0x78] sm:$0xff] %vm413_vm0, %v394_v58  ;;  %v3141_v14 = vunpack.c.h.bf16 %v3177_v56  ;;  %v3178_v17 = vld [vmem:[%s3491_s23 + $0x48] sm:$0xff]   ;;  %v326_v26 = vmul.f32 %v3140_v5, %v3502_v12  ;;  %v3179_v56 = vld [vmem:[%s3491_s23 + $0x50] sm:$0xff]  }
  0x31   : > { %v1450_v3 = vpack.c.bf16 %v1432_v59, %v1433_v53  ;;  %v364_v11 = vadd.f32 %v3514_v20, %v325_v61  ;;  %v395_v24 = vmax.f32 %v363_v4, 0.0  ;;  %vm1351_vm10 = vcmp.eq.s32.totalorder %v634_v13, 15 }
  0x32   : > { %v3770_v9 = vld [vmem:[#allocation2 + $0x68] sm:$0xff]  ;;  %v2971_v29 = vcombine.low %v3526_v28, %v1584_v10  ;;  %vm1550_vm11 = vmpackc.low %vm1351_vm10, %vm1351_vm10  ;;  %v648_v31 = vand.u32 15, %v506_v8  ;;  %v327_v32 = vmul.f32 %v3141_v14, %v3502_v12  ;;  %v3144_v34 = vunpack.c.l.bf16 %v3178_v17  ;;  %v3180_v8 = vld [vmem:[%s3491_s23 + $0x58] sm:$0xff]  }
  0x33   : > { %v963_v22 = vpack.c.bf16 %v3770_v9, %v3736_v48  ;;  %v1385_v23 = vrot.slane %v3770_v9, 1  ;;  %v1684_v39 = vsel %vm3758_vm9, 0, %v1450_v3  ;;  %v396_v25 = vmax.f32 %v364_v11, 0.0  ;;  %434 = vst.msk [vmem:[#allocation2 + $0x80] sm:$0xff] %vm413_vm0, %v395_v24 }
  0x34   : > { %1777 = vrot.lane.b32.xlu1 %v1683_v57, %s3436_s29  ;;  %1725 = vrot.lane.b32.xlu0 %v962_v47, %s3434_s28  ;;  %v1586_v35 = vsel %vm1550_vm11, 65537, %v3435_v27  ;;  %v365_v36 = vadd.f32 %v3514_v20, %v326_v26  ;;  %v3145_v37 = vunpack.c.h.bf16 %v3178_v17  ;;  %v508_v38 = vadd.s32 152, %v3481_v2 }
  0x35   : > { %435 = vst.msk [vmem:[#allocation2 + $0x88] sm:$0xff] %vm413_vm0, %v396_v25  ;;  %v1431_v41 = vsel %vm1408_vm5, %v1384_v52, %v1385_v23  ;;  %vm3799_vm12 = vcmp.eq.s32.totalorder %v648_v31, 15  ;;  %v366_v43 = vadd.f32 %v3514_v20, %v327_v32  ;;  %v328_v44 = vmul.f32 %v3144_v34, %v3502_v12 }
  0x36   : > { %v397_v50 = vmax.f32 %v365_v36, 0.0  ;;  %v329_v51 = vmul.f32 %v3145_v37, %v3502_v12  ;;  %v662_v53 = vand.u32 15, %v508_v38  ;;  %vm3809_vm13 = vcmp.ne.s16.totalorder %v2971_v29, 0  ;;  %vm1552_vm14 = vmpackc.low %vm3799_vm12, %vm3799_vm12 }
  0x37   : > { %v3795_v40 = vld [vmem:[#allocation2 + $0x70] sm:$0xff]  ;;  %v3806_v49 = vld [vmem:[#allocation2 + $0x78] sm:$0xff]  ;;  %v2972_v55 = vcombine.low %v3526_v28, %v1586_v35  ;;  %v398_v46 = vmax.f32 %v366_v43, 0.0  ;;  %v367_v59 = vadd.f32 %v3514_v20, %v328_v44  ;;  %v3148_v4 = vunpack.c.l.bf16 %v3179_v56 }
  0x38   : > { %1727 = vrot.lane.b32.xlu1 %v963_v22, %s3434_s28  ;;  %1779 = vrot.lane.b32.xlu0 %v1684_v39, %s3436_s29  ;;  %v1386_v47 = vrot.slane %v3795_v40, 1  ;;  %v964_v52 = vpack.c.bf16 %v3806_v49, %v3795_v40  ;;  %v1387_v58 = vrot.slane %v3806_v49, 1  ;;  %436 = vst.msk [vmem:[#allocation2 + $0x90] sm:$0xff] %vm413_vm0, %v397_v50  ;;  %v368_v61 = vadd.f32 %v3514_v20, %v329_v51 }
  0x39   : > { %437 = vst.msk [vmem:[#allocation2 + $0x98] sm:$0xff] %vm413_vm0, %v398_v46  ;;  %v399_v1 = vmax.f32 %v367_v59, 0.0  ;;  %vm3828_vm15 = vcmp.eq.s32.totalorder %v662_v53, 15  ;;  %v510_v5 = vadd.s32 168, %v3481_v2  ;;  %v1588_v14 = vsel %vm1552_vm14, 65537, %v3435_v27 }
  0x3a   : > { %v1430_v57 = vsel %vm1408_vm5, %v1385_v23, %v1386_v47  ;;  %v3836_v11 = vld [vmem:[#allocation2 + $0x80] sm:$0xff]  ;;  %v400_v17 = vmax.f32 %v368_v61, 0.0  ;;  %vm1554_vm1 = vmpackc.low %vm3828_vm15, %vm3828_vm15  ;;  %v3149_v22 = vunpack.c.h.bf16 %v3179_v56  ;;  %v1429_v24 = vsel %vm1408_vm5, %v1386_v47, %v1387_v58 }
  0x3b   : > { %v1451_v60 = vpack.c.bf16 %v1430_v57, %v1431_v41  ;;  %v1388_v39 = vrot.slane %v3836_v11, 1  ;;  %vm3850_vm2 = vcmp.ne.s16.totalorder %v2972_v55, 0  ;;  %438 = vst.msk [vmem:[#allocation2 + $0xa0] sm:$0xff] %vm413_vm0, %v399_v1  ;;  %v1590_v29 = vsel %vm1554_vm1, 65537, %v3435_v27 }
  0x3c   : > { %1729 = vrot.lane.b32.xlu0 %v964_v52, %s3434_s28  ;;  %v3838_v13 = vld [vmem:[#allocation2 + $0x88] sm:$0xff]  ;;  %439 = vst.msk [vmem:[#allocation2 + $0xa8] sm:$0xff] %vm413_vm0, %v400_v17  ;;  %v330_v31 = vmul.f32 %v3148_v4, %v3502_v12  ;;  %v676_v32 = vand.u32 15, %v510_v5  ;;  %v2973_v35 = vcombine.low %v3526_v28, %v1588_v14  ;;  %v331_v36 = vmul.f32 %v3149_v22, %v3502_v12  ;;  %v3181_v14 = vld [vmem:[%s3491_s23 + $0x60] sm:$0xff]  }
  0x3d   : > { %v1685_v10 = vsel %vm3809_vm13, 0, %v1451_v60  ;;  %v965_v23 = vpack.c.bf16 %v3838_v13, %v3836_v11  ;;  %v1389_v26 = vrot.slane %v3838_v13, 1  ;;  %v1428_v34 = vsel %vm1408_vm5, %v1387_v58, %v1388_v39 }
  0x3e   : > { %1781 = vrot.lane.b32.xlu1 %v1685_v10, %s3436_s29  ;;  %v3152_v37 = vunpack.c.l.bf16 %v3180_v8  ;;  %v1452_v38 = vpack.c.bf16 %v1428_v34, %v1429_v24  ;;  %v2974_v42 = vcombine.low %v3526_v28, %v1590_v29  ;;  %v369_v43 = vadd.f32 %v3514_v20, %v330_v31 }
  0x3f   : > { %v3863_v41 = vld [vmem:[#allocation2 + $0x90] sm:$0xff]  ;;  %vm1357_vm3 = vcmp.eq.s32.totalorder %v676_v32, 15  ;;  %v1427_v47 = vsel %vm1408_vm5, %v1388_v39, %v1389_v26  ;;  %v370_v50 = vadd.f32 %v3514_v20, %v331_v36  ;;  %v3153_v51 = vunpack.c.h.bf16 %v3180_v8  ;;  %v3182_v39 = vld [vmem:[%s3491_s23 + $0x68] sm:$0xff]  }
  0x40   : > { %v1390_v44 = vrot.slane %v3863_v41, 1  ;;  %vm1556_vm4 = vmpackc.low %vm1357_vm3, %vm1357_vm3  ;;  %v1686_v53 = vsel %vm3850_vm2, 0, %v1452_v38  ;;  %v3874_v54 = vld [vmem:[#allocation2 + $0x98] sm:$0xff]  ;;  %v401_v52 = vmax.f32 %v369_v43, 0.0  ;;  %v332_v56 = vmul.f32 %v3152_v37, %v3502_v12 }
  0x41   : > { %v1592_v55 = vsel %vm1556_vm4, 65537, %v3435_v27  ;;  %1783 = vrot.lane.b32.xlu0 %v1686_v53, %s3436_s29  ;;  %vm1669_vm6 = vcmp.ne.s16.totalorder %v2973_v35, 0  ;;  %v966_v58 = vpack.c.bf16 %v3874_v54, %v3863_v41  ;;  %v1391_v46 = vrot.slane %v3874_v54, 1 }
  0x42   : > { %1731 = vrot.lane.b32.xlu1 %v965_v23, %s3434_s28  ;;  %v1426_v57 = vsel %vm1408_vm5, %v1389_v26, %v1390_v44  ;;  %v3884_v60 = vld [vmem:[#allocation2 + $0xa0] sm:$0xff]  ;;  %440 = vst.msk [vmem:[#allocation2 + $0xb0] sm:$0xff] %vm413_vm0, %v401_v52  ;;  %v2975_v61 = vcombine.low %v3526_v28, %v1592_v55  ;;  %v402_v1 = vmax.f32 %v370_v50, 0.0  ;;  %v333_v3 = vmul.f32 %v3153_v51, %v3502_v12 }
  0x43   : > { %v1453_v59 = vpack.c.bf16 %v1426_v57, %v1427_v47  ;;  %v3889_v4 = vld [vmem:[#allocation2 + $0xa8] sm:$0xff]  ;;  %v1392_v5 = vrot.slane %v3884_v60, 1  ;;  %v1425_v8 = vsel %vm1408_vm5, %v1390_v44, %v1391_v46  ;;  %v371_v10 = vadd.f32 %v3514_v20, %v332_v56 }
  0x44   : > { %v967_v22 = vpack.c.bf16 %v3889_v4, %v3884_v60  ;;  %vm3898_vm7 = vcmp.ne.s16.totalorder %v2974_v42, 0  ;;  %441 = vst.msk [vmem:[#allocation2 + $0xb8] sm:$0xff] %vm413_vm0, %v402_v1  ;;  %v1393_v24 = vrot.slane %v3889_v4, 1  ;;  %v372_v26 = vadd.f32 %v3514_v20, %v333_v3 }
  0x45   : > { %v1687_v17 = vsel %vm1669_vm6, 0, %v1453_v59  ;;  %1733 = vrot.lane.b32.xlu0 %v966_v58, %s3434_s28  ;;  %v1424_v25 = vsel %vm1408_vm5, %v1391_v46, %v1392_v5  ;;  %v403_v29 = vmax.f32 %v371_v10, 0.0  ;;  %vm3910_vm8 = vcmp.ne.s16.totalorder %v2975_v61, 0 }
  0x46   : > { %1785 = vrot.lane.b32.xlu1 %v1687_v17, %s3436_s29  ;;  %v1454_v31 = vpack.c.bf16 %v1424_v25, %v1425_v8  ;;  %v512_v34 = vadd.s32 184, %v3481_v2  ;;  %v3156_v35 = vunpack.c.l.bf16 %v3181_v14  ;;  %v404_v36 = vmax.f32 %v372_v26, 0.0 }
  0x47   : > { %442 = vst.msk [vmem:[#allocation2 + $0xc0] sm:$0xff] %vm413_vm0, %v403_v29  ;;  %v514_v37 = vadd.s32 200, %v3481_v2  ;;  %v3157_v38 = vunpack.c.h.bf16 %v3181_v14  ;;  %v3160_v42 = vunpack.c.l.bf16 %v3182_v39  ;;  %v3161_v50 = vunpack.c.h.bf16 %v3182_v39 }
  0x48   : > { %v1688_v43 = vsel %vm3898_vm7, 0, %v1454_v31  ;;  %v690_v44 = vand.u32 15, %v512_v34  ;;  %v334_v47 = vmul.f32 %v3156_v35, %v3502_v12  ;;  %443 = vst.msk [vmem:[#allocation2 + $0xc8] sm:$0xff] %vm413_vm0, %v404_v36  ;;  %v516_v56 = vadd.s32 216, %v3481_v2  ;;  %v3183_v36 = vld [vmem:[%s3491_s23 + $0x70] sm:$0xff]  }
  0x49   : > { %1787 = vrot.lane.b32.xlu0 %v1688_v43, %s3436_s29  ;;  %v3922_v51 = vld [vmem:[#allocation2 + $0xb0] sm:$0xff]  ;;  %v704_v53 = vand.u32 15, %v514_v37  ;;  %v335_v52 = vmul.f32 %v3157_v38, %v3502_v12  ;;  %v336_v55 = vmul.f32 %v3160_v42, %v3502_v12  ;;  %v1423_v58 = vsel %vm1408_vm5, %v1392_v5, %v1393_v24 }
  0x4a   : > { %1735 = vrot.lane.b32.xlu1 %v967_v22, %s3434_s28  ;;  %v1394_v57 = vrot.slane %v3922_v51, 1  ;;  %vm1359_vm9 = vcmp.eq.s32.totalorder %v690_v44, 15  ;;  %v373_v46 = vadd.f32 %v3514_v20, %v334_v47  ;;  %v337_v3 = vmul.f32 %v3161_v50, %v3502_v12  ;;  %v3184_v47 = vld [vmem:[%s3491_s23 + $0x78] sm:$0xff]  }
  0x4b   : > { %v3932_v59 = vld [vmem:[#allocation2 + $0xb8] sm:$0xff]  ;;  %vm1558_vm10 = vmpackc.low %vm1359_vm9, %vm1359_vm9  ;;  %vm3934_vm11 = vcmp.eq.s32.totalorder %v704_v53, 15  ;;  %v374_v1 = vadd.f32 %v3514_v20, %v335_v52  ;;  %v375_v8 = vadd.f32 %v3514_v20, %v336_v55  ;;  %v718_v17 = vand.u32 15, %v516_v56 }
  0x4c   : > { %v1422_v10 = vsel %vm1408_vm5, %v1393_v24, %v1394_v57  ;;  %v968_v5 = vpack.c.bf16 %v3932_v59, %v3922_v51  ;;  %v1395_v14 = vrot.slane %v3932_v59, 1  ;;  %v1594_v23 = vsel %vm1558_vm10, 65537, %v3435_v27  ;;  %vm1560_vm12 = vmpackc.low %vm3934_vm11, %vm3934_vm11 }
  0x4d   : > { %v1455_v22 = vpack.c.bf16 %v1422_v10, %v1423_v58  ;;  %v405_v39 = vmax.f32 %v373_v46, 0.0  ;;  %v2976_v24 = vcombine.low %v3526_v28, %v1594_v23  ;;  %v406_v26 = vmax.f32 %v374_v1, 0.0 }
  0x4e   : > { %1737 = vrot.lane.b32.xlu0 %v968_v5, %s3434_s28  ;;  %v3951_v25 = vld [vmem:[#allocation2 + $0xc0] sm:$0xff]  ;;  %v1421_v34 = vsel %vm1408_vm5, %v1394_v57, %v1395_v14  ;;  %v376_v35 = vadd.f32 %v3514_v20, %v337_v3  ;;  %v1596_v38 = vsel %vm1560_vm12, 65537, %v3435_v27  ;;  %v407_v32 = vmax.f32 %v375_v8, 0.0 }
  0x4f   : > { %v1689_v29 = vsel %vm3910_vm8, 0, %v1455_v22  ;;  %v1396_v31 = vrot.slane %v3951_v25, 1  ;;  %444 = vst.msk [vmem:[#allocation2 + $0xd0] sm:$0xff] %vm413_vm0, %v405_v39  ;;  %v3963_v37 = vld [vmem:[#allocation2 + $0xc8] sm:$0xff]  ;;  %445 = vst.msk [vmem:[#allocation2 + $0xd8] sm:$0xff] %vm413_vm0, %v406_v26  ;;  %vm3967_vm13 = vcmp.eq.s32.totalorder %v718_v17, 15  ;;  %v3164_v55 = vunpack.c.l.bf16 %v3183_v36 }
  0x50   : > { %1789 = vrot.lane.b32.xlu1 %v1689_v29, %s3436_s29  ;;  %v969_v43 = vpack.c.bf16 %v3963_v37, %v3951_v25  ;;  %vm1672_vm14 = vcmp.ne.s16.totalorder %v2976_v24, 0  ;;  %v1397_v50 = vrot.slane %v3963_v37, 1  ;;  %v408_v52 = vmax.f32 %v376_v35, 0.0  ;;  %446 = vst.msk [vmem:[#allocation2 + $0xe0] sm:$0xff] %vm413_vm0, %v407_v32  ;;  %vm1562_vm15 = vmpackc.low %vm3967_vm13, %vm3967_vm13 }
  0x51   : > { %v1420_v44 = vsel %vm1408_vm5, %v1395_v14, %v1396_v31  ;;  %v2977_v56 = vcombine.low %v3526_v28, %v1596_v38  ;;  %v518_v57 = vadd.s32 232, %v3481_v2  ;;  %v3165_v58 = vunpack.c.h.bf16 %v3183_v36 }
  0x52   : > { %v1456_v53 = vpack.c.bf16 %v1420_v44, %v1421_v34  ;;  %447 = vst.msk [vmem:[#allocation2 + $0xe8] sm:$0xff] %vm413_vm0, %v408_v52  ;;  %v338_v61 = vmul.f32 %v3164_v55, %v3502_v12  ;;  %v3168_v1 = vunpack.c.l.bf16 %v3184_v47  ;;  %v3169_v3 = vunpack.c.h.bf16 %v3184_v47 }
  0x53   : > { %v1598_v8 = vsel %vm1562_vm15, 65537, %v3435_v27  ;;  %v732_v10 = vand.u32 15, %v518_v57  ;;  %v339_v5 = vmul.f32 %v3165_v58, %v3502_v12  ;;  %v520_v14 = vadd.s32 248, %v3481_v2 }
  0x54   : > { %1739 = vrot.lane.b32.xlu1 %v969_v43, %s3434_s28  ;;  %v1690_v46 = vsel %vm1672_vm14, 0, %v1456_v53  ;;  %v1419_v22 = vsel %vm1408_vm5, %v1396_v31, %v1397_v50  ;;  %v377_v23 = vadd.f32 %v3514_v20, %v338_v61  ;;  %v340_v39 = vmul.f32 %v3168_v1, %v3502_v12 }
  0x55   : > { %1791 = vrot.lane.b32.xlu0 %v1690_v46, %s3436_s29  ;;  %v341_v24 = vmul.f32 %v3169_v3, %v3502_v12  ;;  %vm4000_vm1 = vcmp.eq.s32.totalorder %v732_v10, 15  ;;  %v378_v35 = vadd.f32 %v3514_v20, %v339_v5  ;;  %v746_v36 = vand.u32 15, %v520_v14 }
  0x56   : > { %v3990_v17 = vld [vmem:[#allocation2 + $0xd0] sm:$0xff]  ;;  %v3998_v29 = vld [vmem:[#allocation2 + $0xd8] sm:$0xff]  ;;  %v2978_v32 = vcombine.low %v3526_v28, %v1598_v8  ;;  %v409_v42 = vmax.f32 %v377_v23, 0.0  ;;  %vm1564_vm2 = vmpackc.low %vm4000_vm1, %vm4000_vm1  ;;  %vm4014_vm3 = vcmp.ne.s16.totalorder %v2977_v56, 0  ;;  %v379_v53 = vadd.f32 %v3514_v20, %v340_v39 }
  0x57   : > { %v1398_v26 = vrot.slane %v3990_v17, 1  ;;  %v970_v31 = vpack.c.bf16 %v3998_v29, %v3990_v17  ;;  %v1399_v38 = vrot.slane %v3998_v29, 1  ;;  %v4018_v44 = vld [vmem:[#allocation2 + $0xe0] sm:$0xff]  ;;  %v410_v47 = vmax.f32 %v378_v35, 0.0 }
  0x58   : > { %v1400_v55 = vrot.slane %v4018_v44, 1  ;;  %448 = vst.msk [vmem:[#allocation2 + $0xf0] sm:$0xff] %vm413_vm0, %v409_v42  ;;  %v1600_v57 = vsel %vm1564_vm2, 65537, %v3435_v27  ;;  %v380_v46 = vadd.f32 %v3514_v20, %v341_v24  ;;  %v411_v61 = vmax.f32 %v379_v53, 0.0  ;;  %v4079_v53 = vld [vmem:[#allocation2 + $0x110] sm:$0xff] }
  0x59   : > { %v1418_v12 = vsel %vm1408_vm5, %v1397_v50, %v1398_v26  ;;  %1741 = vrot.lane.b32.xlu0 %v970_v31, %s3434_s28  ;;  %v522_v50 = vadd.s32 264, %v3481_v2  ;;  %v4026_v56 = vld [vmem:[#allocation2 + $0xe8] sm:$0xff]  ;;  %v1417_v58 = vsel %vm1408_vm5, %v1398_v26, %v1399_v38  ;;  %449 = vst.msk [vmem:[#allocation2 + $0xf8] sm:$0xff] %vm413_vm0, %v410_v47  ;;  %vm4032_vm4 = vcmp.eq.s32.totalorder %v746_v36, 15 }
  0x5a   : > { %v1457_v52 = vpack.c.bf16 %v1418_v12, %v1419_v22  ;;  %vm1674_vm6 = vcmp.ne.s16.totalorder %v2978_v32, 0  ;;  %v971_v8 = vpack.c.bf16 %v4026_v56, %v4018_v44  ;;  %v1416_v10 = vsel %vm1408_vm5, %v1399_v38, %v1400_v55  ;;  %450 = vst.msk [vmem:[#allocation2 + $0x100] sm:$0xff] %vm413_vm0, %v411_v61  ;;  %vm1566_vm7 = vmpackc.low %vm4032_vm4, %vm4032_vm4  ;;  %v4071_v12 = vld [vmem:[#allocation2 + $0x118] sm:$0xff] }
  0x5b   : > { %v2979_v5 = vcombine.low %v3526_v28, %v1600_v57  ;;  %v412_v20 = vmax.f32 %v380_v46, 0.0  ;;  %v1401_v14 = vrot.slane %v4026_v56, 1  ;;  %v1458_v22 = vpack.c.bf16 %v1416_v10, %v1417_v58 }
  0x5c   : > { %v1691_v3 = vsel %vm4014_vm3, 0, %v1457_v52  ;;  %v760_v23 = vand.u32 15, %v522_v50  ;;  %v1011_v39 = vrot.slane %v3504_v15, 7  ;;  %v1012_v24 = vrot.slane %v3506_v16, 7  ;;  %v3422_v15 = vld [vmem:[%s5132_s3 + $0x8] sm:$0x3f]  }
  0x5d   : > { %1793 = vrot.lane.b32.xlu1 %v1691_v3, %s3436_s29  ;;  %451 = vst.msk [vmem:[#allocation2 + $0x108] sm:$0xff] %vm413_vm0, %v412_v20  ;;  %v1692_v26 = vsel %vm1674_vm6, 0, %v1458_v22  ;;  %v1602_v34 = vsel %vm1566_vm7, 65537, %v3435_v27  ;;  %v524_v36 = vadd.s32 280, %v3481_v2  ;;  %v1015_v31 = vrot.slane %v3604_v18, 7 }
  0x5e   : > { %vm4053_vm8 = vcmp.eq.s32.totalorder %v760_v23, 15  ;;  %v1016_v38 = vrot.slane %v3606_v19, 7  ;;  %1795 = vrot.lane.b32.xlu0 %v1692_v26, %s3436_s29  ;;  %vm4064_vm9 = vcmp.ne.s16.totalorder %v2979_v5, 0  ;;  %vm1047_vm11 = vcmp.lt.s32.totalorder %v3481_v2, 1 }
  0x5f   : > { %v4062_v32 = vld [vmem:[#allocation2 + $0xf0] sm:$0xff]  ;;  %vm1568_vm10 = vmpackc.low %vm4053_vm8, %vm4053_vm8  ;;  %v1415_v43 = vsel %vm1408_vm5, %v1400_v55, %v1401_v14  ;;  %v1046_v52 = vrot.slane %v4071_v12, 7  ;;  %v774_v57 = vand.u32 15, %v524_v36  ;;  %v2980_v46 = vcombine.low %v3526_v28, %v1602_v34 }
  0x60   : > { %v1402_v18 = vrot.slane %v4062_v32, 1  ;;  %v4077_v47 = vld [vmem:[#allocation2 + $0xf8] sm:$0xff]  ;;  %v1604_v61 = vsel %vm1568_vm10, 65537, %v3435_v27  ;;  %v1407_v3 = vrot.slane %v4071_v12, 1  ;;  %v4100_v10 = vsel %vm1047_vm11, %v1011_v39, %v1012_v24 }
  0x61   : > { %1743 = vrot.lane.b32.xlu1 %v971_v8, %s3434_s28  ;;  %v972_v50 = vpack.c.bf16 %v4077_v47, %v4062_v32  ;;  %v1403_v58 = vrot.slane %v4077_v47, 1  ;;  %v4089_v55 = vld [vmem:[#allocation2 + $0x100] sm:$0xff]  ;;  %vm4092_vm12 = vcmp.eq.s32.totalorder %v774_v57, 15  ;;  %v1013_v5 = vrot.slane %v3608_v21, 7 }
  0x62   : > { %v1414_v1 = vsel %vm1408_vm5, %v1401_v14, %v1402_v18  ;;  %v1404_v14 = vrot.slane %v4089_v55, 1  ;;  %v1406_v22 = vrot.slane %v4079_v53, 1  ;;  %vm1570_vm13 = vmpackc.low %vm4092_vm12, %vm4092_vm12  ;;  %v1014_v23 = vrot.slane %v3614_v30, 7 }
  0x63   : > { %v1459_v20 = vpack.c.bf16 %v1414_v1, %v1415_v43  ;;  %1745 = vrot.lane.b32.xlu0 %v972_v50, %s3434_s28  ;;  %v1413_v34 = vsel %vm1408_vm5, %v1402_v18, %v1403_v58  ;;  %v2981_v21 = vcombine.low %v3526_v28, %v1604_v61  ;;  %v4119_v35 = vsel %vm1047_vm11, %v1046_v52, %v1011_v39 }
  0x64   : > { %v4110_v26 = vld [vmem:[#allocation2 + $0x108] sm:$0xff]  ;;  %vm4124_vm14 = vcmp.ne.s16.totalorder %v2980_v46, 0  ;;  %v1606_v57 = vsel %vm1570_vm13, 65537, %v3435_v27  ;;  %v1412_v39 = vsel %vm1408_vm5, %v1403_v58, %v1404_v14  ;;  %v1409_v42 = vsel %vm1408_vm5, %v1406_v22, %v1407_v3 }
  0x65   : > { %v1693_v36 = vsel %vm4064_vm9, 0, %v1459_v20  ;;  %v1405_v43 = vrot.slane %v4110_v26, 1  ;;  %v973_v18 = vpack.c.bf16 %v4110_v26, %v4089_v55  ;;  %v1084_v50 = vpack.c.bf16 %v4100_v10, %v4119_v35 }
  0x66   : > { %1797 = vrot.lane.b32.xlu1 %v1693_v36, %s3436_s29  ;;  %v1460_v46 = vpack.c.bf16 %v1412_v39, %v1413_v34  ;;  %v1444_v8 = vsel %vm1408_vm5, %v1407_v3, %v1372_v45  ;;  %vm1677_vm15 = vcmp.ne.s16.totalorder %v2981_v21, 0  ;;  %v2982_v58 = vcombine.low %v3526_v28, %v1606_v57 }
  0x67   : > { %v1410_v61 = vsel %vm1408_vm5, %v1405_v43, %v1406_v22  ;;  %v1411_v1 = vsel %vm1408_vm5, %v1404_v14, %v1405_v43  ;;  %v4151_v34 = vsel %vm1047_vm11, %v1015_v31, %v1016_v38  ;;  %v3421_v22 = vld [vmem:[%s5132_s3] sm:$0x3f]   ;;  %v1018_v45 = vrot.slane %v3681_v62, 7 }
  0x68   : > { %v1461_v20 = vpack.c.bf16 %v1410_v61, %v1411_v1  ;;  %v1019_v3 = vrot.slane %v3683_v63, 7  ;;  %v1694_v14 = vsel %vm4124_vm14, 0, %v1460_v46  ;;  %v4165_v21 = vsel %vm1047_vm11, %v1014_v23, %v1015_v31  ;;  %v4187_v31 = vld [vmem:[%s5132_s3 + $0x10] sm:$0x3f]  }
  0x69   : > { %v1020_v36 = vrot.slane %v3685_v0, 7  ;;  %1799 = vrot.lane.b32.xlu0 %v1694_v14, %s3436_s29  ;;  %v974_v43 = vpack.c.bf16 %v4071_v12, %v4079_v53  ;;  %v1462_v57 = vpack.c.bf16 %v1444_v8, %v1409_v42  ;;  %v1086_v62 = vpack.c.bf16 %v4151_v34, %v4165_v21 }
  0x6a   : > { %1747 = vrot.lane.b32.xlu1 %v973_v18, %s3434_s28  ;;  %v1695_v63 = vsel %vm1677_vm15, 0, %v1461_v20  ;;  %v4176_v30 = vsel %vm1047_vm11, %v1013_v5, %v1014_v23  ;;  %v4182_v0 = vsel %vm1047_vm11, %v1012_v24, %v1013_v5  ;;  %vm1939_vm5 = vcmask 1045504  }
  0x6b   : > { %vm1678_vm1 = vcmp.ne.s16.totalorder %v2982_v58, 0  ;;  %v1085_v18 = vpack.c.bf16 %v4176_v30, %v4182_v0  ;;  %3405 = vmatprep.subr.msk.bf16.mxu0 %vm1939_vm5, %v3421_v22  ;;  %v4193_v23 = vsel %vm1939_vm5, %v3421_v22, 0  ;;  %3404 = vmatprep.subr.msk.bf16.mxu1 %vm1939_vm5, %v3422_v15  ;;  %v1941_v16 = vsel %vm1939_vm5, %v3422_v15, 0 }
  0x6c   : > { %3271 = vmatpush3.bf16.msra.mxu0 %v4193_v23  ;;  %3237 = vmatpush3.bf16.msra.mxu1 %v1941_v16  ;;  %v1022_v24 = vrot.slane %v3696_v7, 7  ;;  %v1023_v5 = vrot.slane %v3736_v48, 7  ;;  %v1017_v39 = vrot.slane %v3626_v33, 7  ;;  %v1024_v42 = vrot.slane %v3770_v9, 7 }
  0x6d   : > { %1749 = vrot.lane.b32.xlu0 %v974_v43, %s3434_s28  ;;  %v1696_v46 = vsel %vm1678_vm1, 0, %v1462_v57  ;;  %3406 = vmatprep.subr.msk.bf16.mxu1 %vm1939_vm5, %v3421_v22  ;;  %v4209_v61 = vsel %vm1047_vm11, %v1019_v3, %v1020_v36  ;;  %v4213_v7 = vsel %vm1047_vm11, %v1018_v45, %v1019_v3  ;;  %v1021_v8 = vrot.slane %v3694_v6, 7 }
  0x6e   : > { %1801 = vrot.lane.b32.xlu1 %v1695_v63, %s3436_s29  ;;  %3407 = vmatprep.subr.msk.bf16.mxu0 %vm1939_vm5, %v4187_v31  ;;  %v4217_v48 = vsel %vm1047_vm11, %v1017_v39, %v1018_v45  ;;  %v4223_v33 = vsel %vm1047_vm11, %v1016_v38, %v1017_v39  ;;  %v1088_v1 = vpack.c.bf16 %v4209_v61, %v4213_v7  ;;  %v1026_v58 = vrot.slane %v3806_v49, 7 }
  0x6f   : > { %v1087_v9 = vpack.c.bf16 %v4217_v48, %v4223_v33  ;;  %v4233_v20 = vsel %vm1047_vm11, %v1023_v5, %v1024_v42  ;;  %v4237_v19 = vsel %vm1047_vm11, %v1022_v24, %v1023_v5  ;;  %v4241_v38 = vsel %vm1047_vm11, %v1021_v8, %v1022_v24 }
  0x70   : > { %v4246_v22 = vsel %vm1047_vm11, %v1020_v36, %v1021_v8  ;;  %v1027_v6 = vrot.slane %v3836_v11, 7  ;;  %v1028_v15 = vrot.slane %v3838_v13, 7  ;;  %v491_v45 = vadd.s32 16, %v3481_v2 }
  0x71   : > { %v1089_v3 = vpack.c.bf16 %v4241_v38, %v4246_v22  ;;  %v1025_v43 = vrot.slane %v3795_v40, 7  ;;  %v493_v49 = vadd.s32 32, %v3481_v2  ;;  %v1030_v63 = vrot.slane %v3874_v54, 7 }
  0x72   : > { %1803 = vrot.lane.b32.xlu1 %v1696_v46, %s3436_s29  ;;  %v543_v57 = vand.u32 15, %v491_v45  ;;  %v4267_v13 = vsel %vm1047_vm11, %v1027_v6, %v1028_v15  ;;  %v529_v16 = vand.u32 15, %v3481_v2  ;;  %v4275_v5 = vsel %vm1047_vm11, %v1026_v58, %v1027_v6 }
  0x73   : > { %v4259_v36 = vsel %vm1047_vm11, %v1025_v43, %v1026_v58  ;;  %v4263_v11 = vsel %vm1047_vm11, %v1024_v42, %v1025_v43  ;;  %v557_v24 = vand.u32 15, %v493_v49  ;;  %v1031_v39 = vrot.slane %v3884_v60, 7 }
  0x74   : > { %v1032_v42 = vrot.slane %v3889_v4, 7  ;;  %v1029_v8 = vrot.slane %v3863_v41, 7  ;;  %vm4282_vm2 = vcmp.eq.s32.totalorder %v543_v57, 0  ;;  %v495_v45 = vadd.s32 48, %v3481_v2 }
  0x75   : > { %vm4287_vm3 = vcmp.eq.s32.totalorder %v529_v16, 0  ;;  %v1034_v41 = vrot.slane %v3932_v59, 7  ;;  %vm4300_vm4 = vcmp.eq.s32.totalorder %v557_v24, 0  ;;  %v1035_v49 = vrot.slane %v3951_v25, 7  ;;  %vm1176_vm6 = vmpackc.low %vm4282_vm2, %vm4282_vm2 }
  0x76   : > { %v4293_v60 = vsel %vm1047_vm11, %v1029_v8, %v1030_v63  ;;  %v4297_v4 = vsel %vm1047_vm11, %v1028_v15, %v1029_v8  ;;  %v4312_v57 = vsel %vm1047_vm11, %v1031_v39, %v1032_v42  ;;  %v1036_v15 = vrot.slane %v3963_v37, 7  ;;  %vm1174_vm7 = vmpackc.low %vm4287_vm3, %vm4287_vm3 }
  0x77   : > { %v571_v59 = vand.u32 15, %v495_v45  ;;  %v4320_v16 = vsel %vm1047_vm11, %v1030_v63, %v1031_v39  ;;  %v1033_v25 = vrot.slane %v3922_v51, 7  ;;  %v1038_v24 = vrot.slane %v3998_v29, 7  ;;  %vm1178_vm8 = vmpackc.low %vm4300_vm4, %vm4300_vm4 }
  0x78   : > { %v1212_v8 = vsel %vm1176_vm6, 65537, %v3435_v27  ;;  %v497_v54 = vadd.s32 64, %v3481_v2  ;;  %v1039_v29 = vrot.slane %v4018_v44, 7  ;;  %v1040_v63 = vrot.slane %v4026_v56, 7 }
  0x79   : > { %v4333_v45 = vsel %vm1047_vm11, %v1033_v25, %v1034_v41  ;;  %v4337_v51 = vsel %vm1047_vm11, %v1032_v42, %v1033_v25  ;;  %v1210_v39 = vsel %vm1174_vm7, 65537, %v3435_v27  ;;  %v1214_v58 = vsel %vm1178_vm8, 65537, %v3435_v27 }
  0x7a   : > { %vm4345_vm9 = vcmp.eq.s32.totalorder %v571_v59, 0  ;;  %v499_v6 = vadd.s32 80, %v3481_v2  ;;  %v4352_v42 = vsel %vm1047_vm11, %v1035_v49, %v1036_v15  ;;  %v2948_v44 = vcombine.low %v1212_v8, %v3526_v28 }
  0x7b   : > { %v4357_v56 = vsel %vm1047_vm11, %v1034_v41, %v1035_v49  ;;  %v1037_v25 = vrot.slane %v3990_v17, 7  ;;  %v2947_v43 = vcombine.low %v1210_v39, %v3526_v28  ;;  %v585_v46 = vand.u32 15, %v497_v54  ;;  %vm1180_vm10 = vmpackc.low %vm4345_vm9, %vm4345_vm9 }
  0x7c   : > { %v2949_v14 = vcombine.low %v1214_v58, %v3526_v28  ;;  %v599_v8 = vand.u32 15, %v499_v6  ;;  %v4377_v49 = vsel %vm1047_vm11, %v1039_v29, %v1040_v63  ;;  %v1042_v54 = vrot.slane %v4077_v47, 7 }
  0x7d   : > { %v4369_v41 = vsel %vm1047_vm11, %v1037_v25, %v1038_v24  ;;  %v4373_v17 = vsel %vm1047_vm11, %v1036_v15, %v1037_v25  ;;  %vm1301_vm12 = vcmp.ne.s16.totalorder %v2948_v44, 0  ;;  %vm1300_vm13 = vcmp.ne.s16.totalorder %v2947_v43, 0 }
  0x7e   : > { %v1216_v6 = vsel %vm1180_vm10, 65537, %v3435_v27  ;;  %vm4383_vm14 = vcmp.eq.s32.totalorder %v585_v46, 0  ;;  %v4389_v15 = vsel %vm1047_vm11, %v1038_v24, %v1039_v29  ;;  %v1043_v58 = vrot.slane %v4089_v55, 7 }
  0x7f   : > { %v1044_v25 = vrot.slane %v4110_v26, 7  ;;  %v1098_v44 = vpack.c.bf16 %v4377_v49, %v4389_v15  ;;  %v1041_v43 = vrot.slane %v4062_v32, 7  ;;  %vm1302_vm15 = vcmp.ne.s16.totalorder %v2949_v14, 0  ;;  %vm1182_vm2 = vmpackc.low %vm4383_vm14, %vm4383_vm14 }
  0x80   : > { %v1319_v46 = vsel %vm1301_vm12, 0, %v1085_v18  ;;  %vm4399_vm1 = vcmp.eq.s32.totalorder %v599_v8, 0  ;;  %v501_v55 = vadd.s32 96, %v3481_v2  ;;  %v1318_v26 = vsel %vm1300_vm13, 0, %v1084_v50 }
  0x81   : > { %v2950_v24 = vcombine.low %v1216_v6, %v3526_v28  ;;  %vm1859_vm3 = vcmask 64512   ;;  %vm1906_vm4 = vcmask 97280   ;;  %v4413_v32 = vsel %vm1047_vm11, %v1041_v43, %v1042_v54  ;;  %vm1184_vm6 = vmpackc.low %vm4399_vm1, %vm4399_vm1 }
  0x82   : > { %v1716_v59 = vpop.permute.xlu0 %1715  ;;  %v4417_v30 = vsel %vm1047_vm11, %v1040_v63, %v1041_v43  ;;  %v1320_v10 = vsel %vm1302_vm15, 0, %v1086_v62  ;;  %v2286_v50 = vsel %vm1939_vm5, %v4187_v31, 0  ;;  %v1218_v18 = vsel %vm1182_vm2, 65537, %v3435_v27 }
  0x83   : > { %v1099_v0 = vpack.c.bf16 %v4413_v32, %v4417_v30  ;;  %v613_v14 = vand.u32 15, %v501_v55  ;;  %v4433_v29 = vsel %vm1047_vm11, %v1043_v58, %v1044_v25  ;;  %v4437_v34 = vsel %vm1047_vm11, %v1042_v54, %v1043_v58 }
  0x84   : > { %v1807_v21 = vsel %vm413_vm0, %v1318_v26, %v1716_v59  ;;  %vm1303_vm5 = vcmp.ne.s16.totalorder %v2950_v24, 0  ;;  %v1100_v40 = vpack.c.bf16 %v4433_v29, %v4437_v34  ;;  %v1045_v63 = vrot.slane %v4079_v53, 7 }
  0x85   : > { %v1220_v6 = vsel %vm1184_vm6, 65537, %v3435_v27  ;;  %v503_v39 = vadd.s32 112, %v3481_v2  ;;  %v2951_v59 = vcombine.low %v1218_v18, %v3526_v28  ;;  %v1321_v58 = vsel %vm1303_vm5, 0, %v1087_v9 }
  0x86   : > { %v4454_v54 = vsel %vm1047_vm11, %v1045_v63, %v1046_v52  ;;  %v4458_v53 = vsel %vm1047_vm11, %v1044_v25, %v1045_v63  ;;  %v2952_v52 = vcombine.low %v1220_v6, %v3526_v28  ;;  %vm4471_vm11 = vcmp.eq.s32.totalorder %v613_v14, 0 }
  0x87   : > { %v1101_v43 = vpack.c.bf16 %v4454_v54, %v4458_v53  ;;  %v627_v24 = vand.u32 15, %v503_v39  ;;  %vm1304_vm7 = vcmp.ne.s16.totalorder %v2951_v59, 0  ;;  %v505_v33 = vadd.s32 128, %v3481_v2  ;;  %vm1186_vm9 = vmpackc.low %vm4471_vm11, %vm4471_vm11 }
  0x88   : > { %vm1305_vm8 = vcmp.ne.s16.totalorder %v2952_v52, 0  ;;  %v1222_v7 = vsel %vm1186_vm9, 65537, %v3435_v27  ;;  %v509_v39 = vadd.s32 160, %v3481_v2  ;;  %v5205_v59 = vpack.c.bf16 %v4233_v20, %v4237_v19 }
  0x89   : > { %vm4491_vm10 = vcmp.eq.s32.totalorder %v627_v24, 0  ;;  %v1323_v61 = vsel %vm1305_vm8, 0, %v1089_v3  ;;  %v2953_v38 = vcombine.low %v1222_v7, %v3526_v28  ;;  %v5206_v20 = vpack.c.bf16 %v4259_v36, %v4263_v11 }
  0x8a   : > { %vm1188_vm12 = vmpackc.low %vm4491_vm10, %vm4491_vm10  ;;  %v5209_v11 = vpack.c.bf16 %v4267_v13, %v4275_v5  ;;  %v5210_v13 = vpack.c.bf16 %v4293_v60, %v4297_v4 }
  0x8b   : > { %v1224_v22 = vsel %vm1188_vm12, 65537, %v3435_v27  ;;  %vm1306_vm15 = vcmp.ne.s16.totalorder %v2953_v38, 0 }
  0x8c   : > { %v2954_v6 = vcombine.low %v1224_v22, %v3526_v28 }
  0x8e   : > { %vm1307_vm6 = vcmp.ne.s16.totalorder %v2954_v6, 0 }
  0x8f   : > { %v1325_v19 = vsel %vm1307_vm6, 0, %v5206_v20 }
  0x95   : > { %v1720_v47 = vpop.permute.xlu1 %1719 }
  0x96   : > { %v1718_v37 = vpop.permute.xlu0 %1717 }
  0x97   : > { %v1810_v35 = vsel %vm413_vm0, %v1319_v46, %v1718_v37  ;;  %v1813_v46 = vsel %vm413_vm0, %v1320_v10, %v1720_v47  ;;  %v1322_v10 = vsel %vm1304_vm7, 0, %v1088_v1  ;;  %v641_v1 = vand.u32 15, %v505_v33 }
  0x99   : > { %vm991_vm13 = vcmp.eq.s32.totalorder %v641_v1, 0 }
  0x9a   : > { %v1770_v62 = vpop.permute.xlu1 %1769  ;;  %v1772_v31 = vpop.permute.xlu0 %1771  ;;  %vm1190_vm1 = vmpackc.low %vm991_vm13, %vm991_vm13 }
  0x9b   : > { %v1863_v8 = vsel %vm1859_vm3, %v1810_v35, %v1772_v31  ;;  %v1861_v37 = vsel %vm1859_vm3, %v1807_v21, %v1770_v62 }
  0x9c   : > { %3238 = vmatprep.mubr.msk.bf16.mxu1 %vm1906_vm4, %v1863_v8  ;;  %3272 = vmatprep.mubr.msk.bf16.mxu0 %vm1906_vm4, %v1861_v37 }
  0x9d   : > { %3273 = vmatmul.mubr.msk.bf16.vlgmr.msra.gmra.mrb[0].mxu0 %vm1906_vm4, %v1863_v8 }
  0x9e   : > { %v1774_v12 = vpop.permute.xlu1 %1773  ;;  %v1722_v55 = vpop.permute.xlu0 %1721  ;;  %3305 = vmatpush3.bf16.msra.mxu0 %v2286_v50 }
  0x9f   : > { %v4469_v26 = vsel %vm1859_vm3, %v1813_v46, %v1774_v12  ;;  %v1816_v48 = vsel %vm413_vm0, %v1321_v58, %v1722_v55  ;;  %v1324_v58 = vsel %vm1306_vm15, 0, %v5205_v59  ;;  %v1226_v46 = vsel %vm1190_vm1, 65537, %v3435_v27 }
  0xa0   : > { %3239 = vmatmul.mubr.msk.bf16.vlgmr.msra.gmra.mrb[0].mxu1 %vm1906_vm4, %v4469_v26  ;;  %3276 = vmatprep.mubr.msk.bf16.mxu0 %vm1906_vm4, %v4469_v26  ;;  %v511_v12 = vadd.s32 176, %v3481_v2  ;;  %v669_v55 = vand.u32 15, %v509_v39  ;;  %v2955_v33 = vcombine.low %v1226_v46, %v3526_v28 }
  0xa1   : > { %3339 = vmatpush3.bf16.msra.mxu1 %v4193_v23  ;;  %v507_v23 = vadd.s32 144, %v3481_v2 }
  0xa2   : > { %v1724_v9 = vpop.permute.xlu1 %1723  ;;  %v1776_v47 = vpop.permute.xlu0 %1775  ;;  %vm995_vm5 = vcmp.eq.s32.totalorder %v669_v55, 0  ;;  %vm1308_vm11 = vcmp.ne.s16.totalorder %v2955_v33, 0  ;;  %v5215_v55 = vpack.c.bf16 %v4312_v57, %v4320_v16  ;;  %v5216_v57 = vpack.c.bf16 %v4333_v45, %v4337_v51 }
  0xa3   : > { %v4489_v35 = vsel %vm1859_vm3, %v1816_v48, %v1776_v47  ;;  %v1819_v18 = vsel %vm413_vm0, %v1322_v10, %v1724_v9  ;;  %v655_v31 = vand.u32 15, %v507_v23  ;;  %v683_v47 = vand.u32 15, %v511_v12  ;;  %vm1194_vm7 = vmpackc.low %vm995_vm5, %vm995_vm5 }
  0xa4   : > { %3242 = vmatprep.mubr.msk.bf16.mxu1 %vm1906_vm4, %v4489_v35  ;;  %v1326_v7 = vsel %vm1308_vm11, 0, %v5209_v11 }
  0xa5   : > { %3277 = vmatmul.mubr.msk.bf16.gmra.mrb[4].mxu0 %vm1906_vm4, %v4489_v35  ;;  %vm993_vm14 = vcmp.eq.s32.totalorder %v655_v31, 0  ;;  %vm4547_vm8 = vcmp.eq.s32.totalorder %v683_v47, 0 }
  0xa6   : > { %v1778_v14 = vpop.permute.xlu1 %1777  ;;  %v1726_v21 = vpop.permute.xlu0 %1725  ;;  %vm1192_vm2 = vmpackc.low %vm993_vm14, %vm993_vm14 }
  0xa7   : > { %v4509_v62 = vsel %vm1859_vm3, %v1819_v18, %v1778_v14  ;;  %v1822_v63 = vsel %vm413_vm0, %v1323_v61, %v1726_v21  ;;  %v1228_v52 = vsel %vm1192_vm2, 65537, %v3435_v27  ;;  %v513_v18 = vadd.s32 192, %v3481_v2  ;;  %vm1196_vm10 = vmpackc.low %vm4547_vm8, %vm4547_vm8 }
  0xa8   : > { %3243 = vmatmul.mubr.msk.bf16.gmra.mrb[4].mxu1 %vm1906_vm4, %v4509_v62  ;;  %3280 = vmatprep.mubr.msk.bf16.mxu0 %vm1906_vm4, %v4509_v62  ;;  %v2956_v10 = vcombine.low %v1228_v52, %v3526_v28  ;;  %v1230_v14 = vsel %vm1194_vm7, 65537, %v3435_v27  ;;  %v515_v21 = vadd.s32 208, %v3481_v2  ;;  %v521_v61 = vadd.s32 256, %v3481_v2 }
  0xa9   : > { %v697_v6 = vand.u32 15, %v513_v18 }
  0xaa   : > { %v1780_v3 = vpop.permute.xlu0 %1779  ;;  %v1728_v37 = vpop.permute.xlu1 %1727  ;;  %vm1309_vm9 = vcmp.ne.s16.totalorder %v2956_v10, 0  ;;  %v711_v60 = vand.u32 15, %v515_v21 }
  0xab   : > { %v4519_v8 = vsel %vm1859_vm3, %v1822_v63, %v1780_v3  ;;  %v1825_v25 = vsel %vm413_vm0, %v1324_v58, %v1728_v37  ;;  %v1327_v5 = vsel %vm1309_vm9, 0, %v5210_v13  ;;  %v2957_v3 = vcombine.low %v1230_v14, %v3526_v28 }
  0xac   : > { %3246 = vmatprep.mubr.msk.bf16.mxu1 %vm1906_vm4, %v4519_v8  ;;  %v1232_v37 = vsel %vm1196_vm10, 65537, %v3435_v27  ;;  %vm4585_vm13 = vcmp.eq.s32.totalorder %v697_v6, 0  ;;  %vm4595_vm14 = vcmp.eq.s32.totalorder %v711_v60, 0  ;;  %v5218_v13 = vpack.c.bf16 %v4369_v41, %v4373_v17 }
  0xad   : > { %3281 = vmatmul.mubr.msk.bf16.gmra.mrb[8].mxu0 %vm1906_vm4, %v4519_v8  ;;  %v2958_v39 = vcombine.low %v1232_v37, %v3526_v28  ;;  %vm1310_vm12 = vcmp.ne.s16.totalorder %v2957_v3, 0  ;;  %vm1198_vm1 = vmpackc.low %vm4585_vm13, %vm4585_vm13  ;;  %v523_v37 = vadd.s32 272, %v3481_v2 }
  0xae   : > { %v1730_v48 = vpop.permute.xlu0 %1729  ;;  %v1328_v52 = vsel %vm1310_vm12, 0, %v5215_v55  ;;  %vm1200_vm2 = vmpackc.low %vm4595_vm14, %vm4595_vm14  ;;  %v1234_v33 = vsel %vm1198_vm1, 65537, %v3435_v27 }
  0xaf   : > { %v1828_v50 = vsel %vm413_vm0, %v1325_v19, %v1730_v48  ;;  %vm1311_vm15 = vcmp.ne.s16.totalorder %v2958_v39, 0  ;;  %v1236_v47 = vsel %vm1200_vm2, 65537, %v3435_v27  ;;  %v767_v39 = vand.u32 15, %v523_v37 }
  0xb0   : > { %v1782_v24 = vpop.permute.xlu1 %1781  ;;  %v1329_v16 = vsel %vm1311_vm15, 0, %v5216_v57 }
  0xb1   : > { %v4536_v9 = vsel %vm1859_vm3, %v1825_v25, %v1782_v24  ;;  %v517_v25 = vadd.s32 224, %v3481_v2  ;;  %vm1009_vm1 = vcmp.eq.s32.totalorder %v767_v39, 0 }
  0xb2   : > { %3247 = vmatmul.mubr.msk.bf16.gmra.mrb[8].mxu1 %vm1906_vm4, %v4536_v9  ;;  %3284 = vmatprep.mubr.msk.bf16.mxu0 %vm1906_vm4, %v4536_v9  ;;  %vm1208_vm2 = vmpackc.low %vm1009_vm1, %vm1009_vm1 }
  0xb3   : > { %v1784_v36 = vpop.permute.xlu0 %1783  ;;  %v725_v19 = vand.u32 15, %v517_v25 }
  0xb4   : > { %v1732_v23 = vpop.permute.xlu1 %1731  ;;  %v4555_v1 = vsel %vm1859_vm3, %v1828_v50, %v1784_v36  ;;  %v2959_v50 = vcombine.low %v1234_v33, %v3526_v28 }
  0xb5   : > { %3250 = vmatprep.mubr.msk.bf16.mxu1 %vm1906_vm4, %v4555_v1  ;;  %3285 = vmatmul.mubr.msk.bf16.gmra.mrb[12].mxu0 %vm1906_vm4, %v4555_v1  ;;  %v1831_v31 = vsel %vm413_vm0, %v1326_v7, %v1732_v23  ;;  %v2960_v23 = vcombine.low %v1236_v47, %v3526_v28  ;;  %vm1003_vm6 = vcmp.eq.s32.totalorder %v725_v19, 0 }
  0xb6   : > { %3306 = vmatprep.mubr.msk.bf16.mxu0 %vm1906_vm4, %v4469_v26  ;;  %vm1312_vm5 = vcmp.ne.s16.totalorder %v2959_v50, 0  ;;  %vm1202_vm7 = vmpackc.low %vm1003_vm6, %vm1003_vm6 }
  0xb7   : > { %v1734_v38 = vpop.permute.xlu0 %1733  ;;  %vm1313_vm8 = vcmp.ne.s16.totalorder %v2960_v23, 0  ;;  %v1238_v14 = vsel %vm1202_vm7, 65537, %v3435_v27 }
  0xb8   : > { %v1786_v63 = vpop.permute.xlu1 %1785  ;;  %v1834_v26 = vsel %vm413_vm0, %v1327_v5, %v1734_v38  ;;  %v1331_v5 = vsel %vm1313_vm8, 0, %v5218_v13 }
  0xb9   : > { %v4574_v22 = vsel %vm1859_vm3, %v1831_v31, %v1786_v63  ;;  %v2961_v63 = vcombine.low %v1238_v14, %v3526_v28 }
  0xba   : > { %3251 = vmatmul.mubr.msk.bf16.gmra.mrb[12].mxu1 %vm1906_vm4, %v4574_v22 }
  0xbb   : > { %v1788_v4 = vpop.permute.xlu0 %1787  ;;  %vm1314_vm13 = vcmp.ne.s16.totalorder %v2961_v63, 0 }
  0xbc   : > { %v1736_v59 = vpop.permute.xlu1 %1735  ;;  %v4583_v58 = vsel %vm1859_vm3, %v1834_v26, %v1788_v4  ;;  %v1332_v26 = vsel %vm1314_vm13, 0, %v1098_v44 }
  0xbd   : > { %3254 = vmatprep.mubr.msk.bf16.mxu1 %vm1906_vm4, %v4583_v58  ;;  %3307 = vmatmul.mubr.msk.bf16.vlgmr.msra.gmra.mrb[0].mxu0 %vm1906_vm4, %v4489_v35  ;;  %v519_v35 = vadd.s32 240, %v3481_v2 }
  0xbe   : > { %3310 = vmatprep.mubr.msk.bf16.mxu0 %vm1906_vm4, %v4509_v62  ;;  %v1837_v62 = vsel %vm413_vm0, %v1328_v52, %v1736_v59  ;;  %v1244_v52 = vsel %vm1208_vm2, 65537, %v3435_v27 }
  0xbf   : > { %v739_v45 = vand.u32 15, %v519_v35  ;;  %v2964_v29 = vcombine.low %v1244_v52, %v3526_v28 }
  0xc0   : > { %v1738_v24 = vpop.permute.xlu0 %1737 }
  0xc1   : > { %v1840_v10 = vsel %vm413_vm0, %v1329_v16, %v1738_v24  ;;  %vm1005_vm11 = vcmp.eq.s32.totalorder %v739_v45, 0  ;;  %vm1317_vm6 = vcmp.ne.s16.totalorder %v2964_v29, 0 }
  0xc2   : > { %v1790_v48 = vpop.permute.xlu1 %1789  ;;  %vm1204_vm9 = vmpackc.low %vm1005_vm11, %vm1005_vm11 }
  0xc3   : > { %v4616_v20 = vsel %vm1859_vm3, %v1837_v62, %v1790_v48 }
  0xc4   : > { %3255 = vmatmul.mubr.msk.bf16.gmra.mrb[16].mxu1 %vm1906_vm4, %v4616_v20 }
  0xc5   : > { %3311 = vmatmul.mubr.msk.bf16.gmra.mrb[4].mxu0 %vm1906_vm4, %v4519_v8  ;;  %v753_v8 = vand.u32 15, %v521_v61 }
  0xc6   : > { %3314 = vmatprep.mubr.msk.bf16.mxu0 %vm1906_vm4, %v4536_v9  ;;  %v1740_v11 = vpop.permute.xlu1 %1739  ;;  %v5217_v9 = vpack.c.bf16 %v4352_v42, %v4357_v56  ;;  %v1240_v42 = vsel %vm1204_vm9, 65537, %v3435_v27 }
  0xc7   : > { %v1792_v51 = vpop.permute.xlu0 %1791  ;;  %vm1007_vm10 = vcmp.eq.s32.totalorder %v753_v8, 0  ;;  %v2962_v41 = vcombine.low %v1240_v42, %v3526_v28 }
  0xc8   : > { %v4630_v36 = vsel %vm1859_vm3, %v1840_v10, %v1792_v51  ;;  %v1330_v7 = vsel %vm1312_vm5, 0, %v5217_v9  ;;  %vm1206_vm12 = vmpackc.low %vm1007_vm10, %vm1007_vm10 }
  0xc9   : > { %3258 = vmatprep.mubr.msk.bf16.mxu1 %vm1906_vm4, %v4630_v36  ;;  %v1843_v21 = vsel %vm413_vm0, %v1330_v7, %v1740_v11  ;;  %v1242_v6 = vsel %vm1206_vm12, 65537, %v3435_v27  ;;  %vm1315_vm14 = vcmp.ne.s16.totalorder %v2962_v41, 0  ;;  %v1335_v27 = vsel %vm1317_vm6, 0, %v1101_v43 }
  0xca   : > { %v2963_v4 = vcombine.low %v1242_v6, %v3526_v28  ;;  %v1333_v2 = vsel %vm1315_vm14, 0, %v1099_v0 }
  0xcb   : > { %v1742_v18 = vpop.permute.xlu0 %1741 }
  0xcc   : > { %v1846_v38 = vsel %vm413_vm0, %v1331_v5, %v1742_v18  ;;  %vm1316_vm15 = vcmp.ne.s16.totalorder %v2963_v4, 0 }
  0xcd   : > { %3315 = vmatmul.mubr.msk.bf16.gmra.mrb[8].mxu0 %vm1906_vm4, %v4555_v1  ;;  %v1334_v44 = vsel %vm1316_vm15, 0, %v1100_v40 }
  0xce   : > { %3318 = vmatprep.mubr.msk.bf16.mxu0 %vm1906_vm4, %v4574_v22 }
  0xcf   : > { %v1794_v31 = vpop.permute.xlu1 %1793 }
  0xd0   : > { %v1885_v56 = vsel %vm1859_vm3, %v1843_v21, %v1794_v31  ;;  %v1796_v17 = vpop.permute.xlu0 %1795 }
  0xd1   : > { %3259 = vmatmul.mubr.msk.bf16.gmra.mrb[20].mxu1 %vm1906_vm4, %v1885_v56  ;;  %v1887_v3 = vsel %vm1859_vm3, %v1846_v38, %v1796_v17 }
  0xd2   : > { %3262 = vmatprep.mubr.msk.bf16.mxu1 %vm1906_vm4, %v1887_v3 }
  0xd3   : > { %v1744_v1 = vpop.permute.xlu1 %1743 }
  0xd4   : > { %v1849_v59 = vsel %vm413_vm0, %v1332_v26, %v1744_v1 }
  0xd5   : > { %3319 = vmatmul.mubr.msk.bf16.gmra.mrb[12].mxu0 %vm1906_vm4, %v4583_v58  ;;  %v1746_v60 = vpop.permute.xlu0 %1745 }
  0xd6   : > { %3322 = vmatprep.mubr.msk.bf16.mxu0 %vm1906_vm4, %v4616_v20  ;;  %v1852_v55 = vsel %vm413_vm0, %v1333_v2, %v1746_v60 }
  0xd8   : > { %v1798_v46 = vpop.permute.xlu1 %1797 }
  0xd9   : > { %v1889_v12 = vsel %vm1859_vm3, %v1849_v59, %v1798_v46 }
  0xda   : > { %3263 = vmatmul.mubr.msk.bf16.gmra.mrb[24].mxu1 %vm1906_vm4, %v1889_v12 }
  0xdb   : > { %v1800_v15 = vpop.permute.xlu0 %1799 }
  0xdc   : > { %v1748_v49 = vpop.permute.xlu1 %1747  ;;  %v1891_v32 = vsel %vm1859_vm3, %v1852_v55, %v1800_v15 }
  0xdd   : > { %3323 = vmatmul.mubr.msk.bf16.gmra.mrb[16].mxu0 %vm1906_vm4, %v4630_v36  ;;  %3266 = vmatprep.mubr.msk.bf16.mxu1 %vm1906_vm4, %v1891_v32  ;;  %v1855_v30 = vsel %vm413_vm0, %v1334_v44, %v1748_v49 }
  0xde   : > { %3326 = vmatprep.mubr.msk.bf16.mxu0 %vm1906_vm4, %v1885_v56 }
  0xdf   : > { %v1750_v34 = vpop.permute.xlu0 %1749 }
  0xe0   : > { %v1802_v0 = vpop.permute.xlu1 %1801  ;;  %v1858_v28 = vsel %vm413_vm0, %v1335_v27, %v1750_v34 }
  0xe1   : > { %v1893_v25 = vsel %vm1859_vm3, %v1855_v30, %v1802_v0 }
  0xe2   : > { %3267 = vmatmul.mubr.msk.bf16.gmra.mrb[28].mxu1 %vm1906_vm4, %v1893_v25 }
  0xe3   : > { %3288 = vmatprep.mubr.msk.bf16.mxu1 %vm1906_vm4, %v4574_v22 }
  0xe4   : > { %v1804_v40 = vpop.permute.xlu1 %1803 }
  0xe5   : > { %3327 = vmatmul.mubr.msk.bf16.gmra.mrb[20].mxu0 %vm1906_vm4, %v1887_v3  ;;  %v1895_v22 = vsel %vm1859_vm3, %v1858_v28, %v1804_v40  ;;  %vm2609_vm3 = vcmask 27648  }
  0xe6   : > { %3330 = vmatprep.mubr.msk.bf16.mxu0 %vm1906_vm4, %v1889_v12 }
  0xea   : > { %3289 = vmatmul.mubr.msk.bf16.vlgmr.msra.gmra.mrb[16].mxu1 %vm1906_vm4, %v4583_v58 }
  0xeb   : > { %3292 = vmatprep.mubr.msk.bf16.mxu1 %vm1906_vm4, %v4616_v20 }
  0xed   : > { %3331 = vmatmul.mubr.msk.bf16.gmra.mrb[24].mxu0 %vm1906_vm4, %v1891_v32 }
  0xee   : > { %3334 = vmatprep.mubr.msk.bf16.mxu0 %vm1906_vm4, %v1893_v25 }
  0xf2   : > { %3293 = vmatmul.mubr.msk.bf16.gmra.mrb[20].mxu1 %vm1906_vm4, %v4630_v36 }
  0xf3   : > { %3296 = vmatprep.mubr.msk.bf16.mxu1 %vm1906_vm4, %v1885_v56 }
  0xf5   : > { %3335 = vmatmul.mubr.msk.bf16.gmra.mrb[28].mxu0 %vm1906_vm4, %v1895_v22 }
  0xfa   : > { %3297 = vmatmul.mubr.msk.bf16.gmra.mrb[24].mxu1 %vm1906_vm4, %v1887_v3 }
  0xfb   : > { %3300 = vmatprep.mubr.msk.bf16.mxu1 %vm1906_vm4, %v1889_v12 }
 0x102   : > { %3301 = vmatmul.mubr.msk.bf16.gmra.mrb[28].mxu1 %vm1906_vm4, %v1891_v32  ;;  %vm2846_vm4 = vcmask 24576  }
 0x173   : > { %v3240_v54 = vpop.f32.mrb[0].mxu1 }
 0x174   : > { %v1977_v53 = vpop.f32.mrb[1].mxu1 }
 0x175   : > { %v3241_v43 = vpop.f32.mrb[2].mxu1 }
 0x176   : > { %v1980_v58 = vpop.f32.mrb[3].mxu1 }
 0x17b   : > { %v3244_v24 = vpop.f32.mrb[4].mxu1 }
 0x17c   : > { %v1993_v35 = vpop.f32.mrb[5].mxu1 }
 0x17d   : > { %v3245_v62 = vpop.f32.mrb[6].mxu1 }
 0x17e   : > { %v1996_v48 = vpop.f32.mrb[7].mxu1 }
 0x185   : > { %v3248_v57 = vpop.f32.mrb[8].mxu1 }
 0x186   : > { %v2009_v16 = vpop.f32.mrb[9].mxu1 }
 0x187   : > { %v3249_v33 = vpop.f32.mrb[10].mxu1 }
 0x188   : > { %v4706_v20 = vpop.f32.mrb[11].mxu1 }
 0x18d   : > { %v4708_v19 = vpop.f32.mrb[12].mxu1 }
 0x18e   : > { %v4710_v47 = vpop.f32.mrb[13].mxu1 }
 0x18f   : > { %v4712_v10 = vpop.f32.mrb[14].mxu1 }
 0x190   : > { %v4714_v50 = vpop.f32.mrb[15].mxu1  ;;  %v3308_v45 = vpop.f32.mrb[0].mxu0 }
 0x191   : > { %v4716_v51 = vadd.f32 %v3308_v45, %v3240_v54  ;;  %v2322_v23 = vpop.f32.mrb[1].mxu0 }
 0x192   : > { %v4725_v61 = vadd.f32 %v2322_v23, %v1977_v53  ;;  %v3309_v36 = vpop.f32.mrb[2].mxu0 }
 0x193   : > { %v3076_v11 = vpack.c.bf16 %v4716_v51, %v4716_v51  ;;  %v4729_v8 = vadd.f32 %v3309_v36, %v3241_v43  ;;  %v2325_v9 = vpop.f32.mrb[3].mxu0  ;;  %v2645_v42 = vsel %vm413_vm0, %v4716_v51, 0.0 }
 0x194   : > { %v3074_v7 = vpack.c.bf16 %v4725_v61, %v4725_v61  ;;  %v4733_v18 = vadd.f32 %v2325_v9, %v1980_v58  ;;  %v2642_v13 = vsel %vm413_vm0, %v4725_v61, 0.0 }
 0x195   : > { %2612 = vst.msk [vmem:[%s4723_s13 + $0x8] sm:$0xf] %vm2609_vm3, %v3076_v11  ;;  %v3077_v14 = vpack.c.bf16 %v4729_v8, %v4729_v8  ;;  %v2647_v17 = vsel %vm413_vm0, %v4729_v8, 0.0 }
 0x196   : > { %2610 = vst.msk [vmem:[%s4723_s13] sm:$0xf] %vm2609_vm3, %v3074_v7  ;;  %v3075_v5 = vpack.c.bf16 %v4733_v18, %v4733_v18  ;;  %v2643_v21 = vsel %vm413_vm0, %v4733_v18, 0.0 }
 0x197   : > { %2613 = vst.msk [vmem:[%s4723_s13 + $0xc] sm:$0xf] %vm2609_vm3, %v3077_v14  ;;  %v2644_v31 = vadd.f32 %v2643_v21, %v2642_v13 }
 0x198   : > { %2611 = vst.msk [vmem:[%s4723_s13 + $0x4] sm:$0xf] %vm2609_vm3, %v3075_v5  ;;  %v3312_v56 = vpop.f32.mrb[4].mxu0 }
 0x199   : > { %v2646_v63 = vadd.f32 %v2645_v42, %v2644_v31  ;;  %v4753_v38 = vadd.f32 %v3312_v56, %v3244_v24  ;;  %v2338_v41 = vpop.f32.mrb[5].mxu0 }
 0x19a   : > { %v4757_v1 = vadd.f32 %v2338_v41, %v1993_v35  ;;  %v3313_v3 = vpop.f32.mrb[6].mxu0 }
 0x19b   : > { %v3080_v37 = vpack.c.bf16 %v4753_v38, %v4753_v38  ;;  %v2648_v6 = vadd.f32 %v2647_v17, %v2646_v63  ;;  %v4761_v26 = vadd.f32 %v3313_v3, %v3245_v62  ;;  %v2341_v60 = vpop.f32.mrb[7].mxu0  ;;  %v2653_v15 = vsel %vm413_vm0, %v4753_v38, 0.0 }
 0x19c   : > { %v3078_v4 = vpack.c.bf16 %v4757_v1, %v4757_v1  ;;  %v2649_v39 = vsel %vm413_vm0, %v4757_v1, 0.0  ;;  %v4767_v2 = vadd.f32 %v2341_v60, %v1996_v48 }
 0x19d   : > { %2616 = vst.msk [vmem:[%s4723_s13 + $0x18] sm:$0xf] %vm2609_vm3, %v3080_v37  ;;  %v2650_v59 = vadd.f32 %v2649_v39, %v2648_v6  ;;  %v3081_v46 = vpack.c.bf16 %v4761_v26, %v4761_v26  ;;  %v2655_v52 = vsel %vm413_vm0, %v4761_v26, 0.0 }
 0x19e   : > { %2614 = vst.msk [vmem:[%s4723_s13 + $0x10] sm:$0xf] %vm2609_vm3, %v3078_v4  ;;  %v3079_v12 = vpack.c.bf16 %v4767_v2, %v4767_v2  ;;  %v2651_v55 = vsel %vm413_vm0, %v4767_v2, 0.0 }
 0x19f   : > { %2617 = vst.msk [vmem:[%s4723_s13 + $0x1c] sm:$0xf] %vm2609_vm3, %v3081_v46  ;;  %v2652_v49 = vadd.f32 %v2651_v55, %v2650_v59 }
 0x1a0   : > { %2615 = vst.msk [vmem:[%s4723_s13 + $0x14] sm:$0xf] %vm2609_vm3, %v3079_v12  ;;  %v3316_v44 = vpop.f32.mrb[8].mxu0 }
 0x1a1   : > { %v2654_v32 = vadd.f32 %v2653_v15, %v2652_v49  ;;  %v4785_v30 = vadd.f32 %v3316_v44, %v3248_v57  ;;  %v2354_v0 = vpop.f32.mrb[9].mxu0 }
 0x1a2   : > { %v4789_v25 = vadd.f32 %v2354_v0, %v2009_v16  ;;  %v3317_v29 = vpop.f32.mrb[10].mxu0 }
 0x1a3   : > { %v3084_v27 = vpack.c.bf16 %v4785_v30, %v4785_v30  ;;  %v2656_v34 = vadd.f32 %v2655_v52, %v2654_v32  ;;  %v4793_v28 = vadd.f32 %v3317_v29, %v3249_v33  ;;  %v2357_v40 = vpop.f32.mrb[11].mxu0  ;;  %v2661_v9 = vsel %vm413_vm0, %v4785_v30, 0.0 }
 0x1a4   : > { %v3082_v22 = vpack.c.bf16 %v4789_v25, %v4789_v25  ;;  %v2657_v54 = vsel %vm413_vm0, %v4789_v25, 0.0  ;;  %v4800_v53 = vadd.f32 %v2357_v40, %v4706_v20 }
 0x1a5   : > { %2620 = vst.msk [vmem:[%s4723_s13 + $0x28] sm:$0xf] %vm2609_vm3, %v3084_v27  ;;  %v3085_v43 = vpack.c.bf16 %v4793_v28, %v4793_v28  ;;  %v2658_v58 = vadd.f32 %v2657_v54, %v2656_v34  ;;  %v2663_v14 = vsel %vm413_vm0, %v4793_v28, 0.0 }
 0x1a6   : > { %2618 = vst.msk [vmem:[%s4723_s13 + $0x20] sm:$0xf] %vm2609_vm3, %v3082_v22  ;;  %v3083_v24 = vpack.c.bf16 %v4800_v53, %v4800_v53  ;;  %v2659_v35 = vsel %vm413_vm0, %v4800_v53, 0.0 }
 0x1a7   : > { %2621 = vst.msk [vmem:[%s4723_s13 + $0x2c] sm:$0xf] %vm2609_vm3, %v3085_v43  ;;  %v2660_v16 = vadd.f32 %v2659_v35, %v2658_v58 }
 0x1a8   : > { %2619 = vst.msk [vmem:[%s4723_s13 + $0x24] sm:$0xf] %vm2609_vm3, %v3083_v24  ;;  %v3320_v62 = vpop.f32.mrb[12].mxu0 }
 0x1a9   : > { %v4817_v48 = vadd.f32 %v3320_v62, %v4708_v19  ;;  %v2370_v57 = vpop.f32.mrb[13].mxu0  ;;  %v2662_v7 = vadd.f32 %v2661_v9, %v2660_v16 }
 0x1aa   : > { %v4820_v33 = vadd.f32 %v2370_v57, %v4710_v47  ;;  %v3321_v20 = vpop.f32.mrb[14].mxu0 }
 0x1ab   : > { %v3088_v45 = vpack.c.bf16 %v4817_v48, %v4817_v48  ;;  %v4825_v23 = vadd.f32 %v3321_v20, %v4712_v10  ;;  %v2373_v36 = vpop.f32.mrb[15].mxu0  ;;  %v2664_v5 = vadd.f32 %v2663_v14, %v2662_v7  ;;  %v2669_v60 = vsel %vm413_vm0, %v4817_v48, 0.0 }
 0x1ac   : > { %v3086_v11 = vpack.c.bf16 %v4820_v33, %v4820_v33  ;;  %v4830_v19 = vadd.f32 %v2373_v36, %v4714_v50  ;;  %v2665_v31 = vsel %vm413_vm0, %v4820_v33, 0.0 }
 0x1ad   : > { %2624 = vst.msk [vmem:[%s4723_s13 + $0x38] sm:$0xf] %vm2609_vm3, %v3088_v45  ;;  %v3089_v47 = vpack.c.bf16 %v4825_v23, %v4825_v23  ;;  %v2666_v56 = vadd.f32 %v2665_v31, %v2664_v5  ;;  %v2671_v55 = vsel %vm413_vm0, %v4825_v23, 0.0 }
 0x1ae   : > { %2622 = vst.msk [vmem:[%s4723_s13 + $0x30] sm:$0xf] %vm2609_vm3, %v3086_v11  ;;  %v3087_v10 = vpack.c.bf16 %v4830_v19, %v4830_v19  ;;  %v2667_v63 = vsel %vm413_vm0, %v4830_v19, 0.0 }
 0x1af   : > { %2625 = vst.msk [vmem:[%s4723_s13 + $0x3c] sm:$0xf] %vm2609_vm3, %v3089_v47  ;;  %v2668_v3 = vadd.f32 %v2667_v63, %v2666_v56 }
 0x1b0   : > { %2623 = vst.msk [vmem:[%s4723_s13 + $0x34] sm:$0xf] %vm2609_vm3, %v3087_v10  ;;  %v3324_v50 = vpop.f32.mrb[16].mxu0 }
 0x1b1   : > { %v2386_v13 = vpop.f32.mrb[17].mxu0  ;;  %v2670_v4 = vadd.f32 %v2669_v60, %v2668_v3 }
 0x1b2   : > { %v3325_v21 = vpop.f32.mrb[18].mxu0 }
 0x1b3   : > { %v2389_v42 = vpop.f32.mrb[19].mxu0  ;;  %v2672_v0 = vadd.f32 %v2671_v55, %v2670_v4 }
 0x1b8   : > { %v3328_v41 = vpop.f32.mrb[20].mxu0 }
 0x1b9   : > { %v2402_v17 = vpop.f32.mrb[21].mxu0 }
 0x1ba   : > { %v3329_v37 = vpop.f32.mrb[22].mxu0 }
 0x1bb   : > { %v2405_v6 = vpop.f32.mrb[23].mxu0 }
 0x1bd   : > { %v3290_v39 = vpop.f32.mrb[16].mxu1 }
 0x1be   : > { %v4854_v59 = vadd.f32 %v3324_v50, %v3290_v39  ;;  %v2212_v46 = vpop.f32.mrb[17].mxu1 }
 0x1bf   : > { %v4858_v49 = vadd.f32 %v2386_v13, %v2212_v46  ;;  %v3291_v15 = vpop.f32.mrb[18].mxu1 }
 0x1c0   : > { %v3332_v12 = vpop.f32.mrb[24].mxu0  ;;  %v3092_v32 = vpack.c.bf16 %v4854_v59, %v4854_v59  ;;  %v4862_v52 = vadd.f32 %v3325_v21, %v3291_v15  ;;  %v2215_v29 = vpop.f32.mrb[19].mxu1  ;;  %v2677_v57 = vsel %vm413_vm0, %v4854_v59, 0.0 }
 0x1c1   : > { %v2418_v44 = vpop.f32.mrb[25].mxu0  ;;  %v3090_v34 = vpack.c.bf16 %v4858_v49, %v4858_v49  ;;  %v2673_v40 = vsel %vm413_vm0, %v4858_v49, 0.0  ;;  %v4868_v22 = vadd.f32 %v2389_v42, %v2215_v29 }
 0x1c2   : > { %v3333_v27 = vpop.f32.mrb[26].mxu0  ;;  %2628 = vst.msk [vmem:[%s4723_s13 + $0x48] sm:$0xf] %vm2609_vm3, %v3092_v32  ;;  %v2674_v43 = vadd.f32 %v2673_v40, %v2672_v0  ;;  %v3093_v58 = vpack.c.bf16 %v4862_v52, %v4862_v52  ;;  %v2679_v9 = vsel %vm413_vm0, %v4862_v52, 0.0 }
 0x1c3   : > { %v2421_v54 = vpop.f32.mrb[27].mxu0  ;;  %2626 = vst.msk [vmem:[%s4723_s13 + $0x40] sm:$0xf] %vm2609_vm3, %v3090_v34  ;;  %v3091_v24 = vpack.c.bf16 %v4868_v22, %v4868_v22  ;;  %v2675_v35 = vsel %vm413_vm0, %v4868_v22, 0.0 }
 0x1c4   : > { %2629 = vst.msk [vmem:[%s4723_s13 + $0x4c] sm:$0xf] %vm2609_vm3, %v3093_v58  ;;  %v2676_v62 = vadd.f32 %v2675_v35, %v2674_v43 }
 0x1c5   : > { %2627 = vst.msk [vmem:[%s4723_s13 + $0x44] sm:$0xf] %vm2609_vm3, %v3091_v24  ;;  %v3294_v16 = vpop.f32.mrb[20].mxu1 }
 0x1c6   : > { %v2678_v20 = vadd.f32 %v2677_v57, %v2676_v62  ;;  %v4886_v45 = vadd.f32 %v3328_v41, %v3294_v16  ;;  %v2228_v36 = vpop.f32.mrb[21].mxu1 }
 0x1c7   : > { %v4890_v47 = vadd.f32 %v2402_v17, %v2228_v36  ;;  %v3295_v7 = vpop.f32.mrb[22].mxu1 }
 0x1c8   : > { %v3336_v11 = vpop.f32.mrb[28].mxu0  ;;  %v3096_v50 = vpack.c.bf16 %v4886_v45, %v4886_v45  ;;  %v2680_v14 = vadd.f32 %v2679_v9, %v2678_v20  ;;  %v4894_v13 = vadd.f32 %v3329_v37, %v3295_v7  ;;  %v2231_v5 = vpop.f32.mrb[23].mxu1 }
 0x1c9   : > { %v2434_v10 = vpop.f32.mrb[29].mxu0  ;;  %v3094_v31 = vpack.c.bf16 %v4890_v47, %v4890_v47  ;;  %v2681_v42 = vsel %vm413_vm0, %v4890_v47, 0.0  ;;  %v4900_v56 = vadd.f32 %v2405_v6, %v2231_v5  ;;  %v2685_v6 = vsel %vm413_vm0, %v4886_v45, 0.0 }
 0x1ca   : > { %v3337_v21 = vpop.f32.mrb[30].mxu0  ;;  %2632 = vst.msk [vmem:[%s4723_s13 + $0x58] sm:$0xf] %vm2609_vm3, %v3096_v50  ;;  %v2682_v41 = vadd.f32 %v2681_v42, %v2680_v14  ;;  %v3097_v17 = vpack.c.bf16 %v4894_v13, %v4894_v13  ;;  %v2687_v15 = vsel %vm413_vm0, %v4894_v13, 0.0 }
 0x1cb   : > { %v2437_v63 = vpop.f32.mrb[31].mxu0  ;;  %2630 = vst.msk [vmem:[%s4723_s13 + $0x50] sm:$0xf] %vm2609_vm3, %v3094_v31  ;;  %v3095_v3 = vpack.c.bf16 %v4900_v56, %v4900_v56  ;;  %v2683_v37 = vsel %vm413_vm0, %v4900_v56, 0.0 }
 0x1cc   : > { %2633 = vst.msk [vmem:[%s4723_s13 + $0x5c] sm:$0xf] %vm2609_vm3, %v3097_v17  ;;  %v2684_v60 = vadd.f32 %v2683_v37, %v2682_v41 }
 0x1cd   : > { %2631 = vst.msk [vmem:[%s4723_s13 + $0x54] sm:$0xf] %vm2609_vm3, %v3095_v3  ;;  %v3298_v4 = vpop.f32.mrb[24].mxu1 }
 0x1ce   : > { %v2686_v39 = vadd.f32 %v2685_v6, %v2684_v60  ;;  %v4918_v46 = vadd.f32 %v3332_v12, %v3298_v4  ;;  %v2244_v55 = vpop.f32.mrb[25].mxu1 }
 0x1cf   : > { %v4922_v32 = vadd.f32 %v2418_v44, %v2244_v55  ;;  %v3299_v0 = vpop.f32.mrb[26].mxu1 }
 0x1d0   : > { %v3100_v29 = vpack.c.bf16 %v4918_v46, %v4918_v46  ;;  %v2688_v34 = vadd.f32 %v2687_v15, %v2686_v39  ;;  %v4926_v40 = vadd.f32 %v3333_v27, %v3299_v0  ;;  %v2247_v43 = vpop.f32.mrb[27].mxu1  ;;  %v2693_v16 = vsel %vm413_vm0, %v4918_v46, 0.0 }
 0x1d1   : > { %v3098_v12 = vpack.c.bf16 %v4922_v32, %v4922_v32  ;;  %v2689_v58 = vsel %vm413_vm0, %v4922_v32, 0.0  ;;  %v3367_v24 = vadd.f32 %v2421_v54, %v2247_v43 }
 0x1d2   : > { %2636 = vst.msk [vmem:[%s4723_s13 + $0x68] sm:$0xf] %vm2609_vm3, %v3100_v29  ;;  %v2690_v44 = vadd.f32 %v2689_v58, %v2688_v34  ;;  %v3101_v35 = vpack.c.bf16 %v4926_v40, %v4926_v40  ;;  %v2695_v7 = vsel %vm413_vm0, %v4926_v40, 0.0 }
 0x1d3   : > { %2634 = vst.msk [vmem:[%s4723_s13 + $0x60] sm:$0xf] %vm2609_vm3, %v3098_v12  ;;  %v3099_v62 = vpack.c.bf16 %v3367_v24, %v3367_v24  ;;  %v2691_v27 = vsel %vm413_vm0, %v3367_v24, 0.0 }
 0x1d4   : > { %2637 = vst.msk [vmem:[%s4723_s13 + $0x6c] sm:$0xf] %vm2609_vm3, %v3101_v35  ;;  %v2692_v57 = vadd.f32 %v2691_v27, %v2690_v44 }
 0x1d5   : > { %2635 = vst.msk [vmem:[%s4723_s13 + $0x64] sm:$0xf] %vm2609_vm3, %v3099_v62  ;;  %v3302_v54 = vpop.f32.mrb[28].mxu1 }
 0x1d6   : > { %v2694_v20 = vadd.f32 %v2693_v16, %v2692_v57  ;;  %v3368_v36 = vadd.f32 %v3336_v11, %v3302_v54  ;;  %v2260_v9 = vpop.f32.mrb[29].mxu1 }
 0x1d7   : > { %v3369_v50 = vadd.f32 %v2434_v10, %v2260_v9  ;;  %v3303_v14 = vpop.f32.mrb[30].mxu1 }
 0x1d8   : > { %v3104_v5 = vpack.c.bf16 %v3368_v36, %v3368_v36  ;;  %v2696_v31 = vadd.f32 %v2695_v7, %v2694_v20  ;;  %v3370_v42 = vadd.f32 %v3337_v21, %v3303_v14  ;;  %v2263_v41 = vpop.f32.mrb[31].mxu1  ;;  %v2701_v21 = vsel %vm413_vm0, %v3368_v36, 0.0 }
 0x1d9   : > { %v3102_v17 = vpack.c.bf16 %v3369_v50, %v3369_v50  ;;  %v2697_v3 = vsel %vm413_vm0, %v3369_v50, 0.0  ;;  %v3371_v37 = vadd.f32 %v2437_v63, %v2263_v41 }
 0x1da   : > { %2640 = vst.msk [vmem:[%s4723_s13 + $0x78] sm:$0xf] %vm2609_vm3, %v3104_v5  ;;  %v2698_v11 = vadd.f32 %v2697_v3, %v2696_v31  ;;  %v3105_v60 = vpack.c.bf16 %v3370_v42, %v3370_v42  ;;  %v2703_v63 = vsel %vm413_vm0, %v3370_v42, 0.0 }
 0x1db   : > { %2638 = vst.msk [vmem:[%s4723_s13 + $0x70] sm:$0xf] %vm2609_vm3, %v3102_v17  ;;  %v3103_v6 = vpack.c.bf16 %v3371_v37, %v3371_v37  ;;  %v2699_v10 = vsel %vm413_vm0, %v3371_v37, 0.0 }
 0x1dc   : > { %2641 = vst.msk [vmem:[%s4723_s13 + $0x7c] sm:$0xf] %vm2609_vm3, %v3105_v60  ;;  %v2700_v4 = vadd.f32 %v2699_v10, %v2698_v11 }
 0x1dd   : > { %2639 = vst.msk [vmem:[%s4723_s13 + $0x74] sm:$0xf] %vm2609_vm3, %v3103_v6 }
 0x1de   : > { %v2702_v39 = vadd.f32 %v2701_v21, %v2700_v4 }
 0x1e0   : > { %v2704_v55 = vadd.f32 %v2703_v63, %v2702_v39 }
 0x1e2   : > { %v2705_v15 = vrot.slane %v2704_v55, 4 }
 0x1e4   : > { %v2706_v0 = vadd.f32 %v2705_v15, %v2704_v55 }
 0x1e6   : > { %v2707_v29 = vrot.slane %v2706_v0, 2 }
 0x1e8   : > { %v2708_v34 = vadd.f32 %v2707_v29, %v2706_v0 }
 0x1ea   : > { %v2709_v43 = vrot.slane %v2708_v34, 1 }
 0x1ec   : > { %v2710_v12 = vadd.f32 %v2709_v43, %v2708_v34 }
 0x1ee   : > { %2847 = vst.msk [vmem:[%s4963_s17] sm:$0x1] %vm2846_vm4, %v2710_v12  ;;  %v4967_v58 = vmul.f32 0.00390625, %v2710_v12 }
 0x1f0   : > { %v4971_v44 = vsub.f32 %v4858_v49, %v4967_v58  ;;  %v4975_v35 = vsub.f32 %v4868_v22, %v4967_v58  ;;  %v4979_v62 = vsub.f32 %v4854_v59, %v4967_v58  ;;  %v4983_v27 = vsub.f32 %v4862_v52, %v4967_v58 }
 0x1f1   : > { %v4987_v57 = vsub.f32 %v4890_v47, %v4967_v58  ;;  %v4991_v49 = vsub.f32 %v4900_v56, %v4967_v58  ;;  %v4995_v22 = vsub.f32 %v4886_v45, %v4967_v58  ;;  %v4999_v59 = vsub.f32 %v4894_v13, %v4967_v58 }
 0x1f2   : > { %v5003_v52 = vsub.f32 %v4922_v32, %v4967_v58  ;;  %v5006_v16 = vsub.f32 %v3367_v24, %v4967_v58  ;;  %v5010_v47 = vsub.f32 %v4918_v46, %v4967_v58  ;;  %v5014_v56 = vsub.f32 %v4926_v40, %v4967_v58 }
 0x1f3   : > { %v5017_v45 = vsub.f32 %v3369_v50, %v4967_v58  ;;  %v5020_v13 = vsub.f32 %v3371_v37, %v4967_v58  ;;  %v5023_v32 = vsub.f32 %v3368_v36, %v4967_v58  ;;  %v5026_v24 = vsub.f32 %v3370_v42, %v4967_v58 }
 0x1f4   : > { %v2713_v46 = vsub.f32 %v4725_v61, %v4967_v58  ;;  %v2714_v54 = vsub.f32 %v4733_v18, %v4967_v58  ;;  %v2715_v40 = vsub.f32 %v4716_v51, %v4967_v58  ;;  %v2716_v20 = vsub.f32 %v4729_v8, %v4967_v58 }
 0x1f5   : > { %v2717_v36 = vsub.f32 %v4757_v1, %v4967_v58  ;;  %v2718_v14 = vsub.f32 %v4767_v2, %v4967_v58  ;;  %v2719_v51 = vsub.f32 %v4753_v38, %v4967_v58  ;;  %v2720_v1 = vsub.f32 %v4761_v26, %v4967_v58 }
 0x1f6   : > { %v2745_v9 = vmul.f32 %v2713_v46, %v2713_v46  ;;  %v2746_v7 = vmul.f32 %v2714_v54, %v2714_v54  ;;  %v2747_v50 = vmul.f32 %v2715_v40, %v2715_v40  ;;  %v2748_v5 = vmul.f32 %v2716_v20, %v2716_v20 }
 0x1f7   : > { %v2749_v42 = vmul.f32 %v2717_v36, %v2717_v36  ;;  %v2750_v17 = vmul.f32 %v2718_v14, %v2718_v14  ;;  %v2721_v37 = vsub.f32 %v4789_v25, %v4967_v58  ;;  %v2751_v11 = vmul.f32 %v2719_v51, %v2719_v51 }
 0x1f8   : > { %v2777_v61 = vsel %vm413_vm0, %v2745_v9, 0.0  ;;  %v2778_v18 = vsel %vm413_vm0, %v2746_v7, 0.0  ;;  %v2780_v8 = vsel %vm413_vm0, %v2747_v50, 0.0  ;;  %v2782_v3 = vsel %vm413_vm0, %v2748_v5, 0.0 }
 0x1f9   : > { %v2779_v31 = vadd.f32 %v2778_v18, %v2777_v61  ;;  %v2784_v60 = vsel %vm413_vm0, %v2749_v42, 0.0  ;;  %v2722_v38 = vsub.f32 %v4800_v53, %v4967_v58  ;;  %v2752_v10 = vmul.f32 %v2720_v1, %v2720_v1 }
 0x1fa   : > { %v2786_v4 = vsel %vm413_vm0, %v2750_v17, 0.0  ;;  %v2723_v26 = vsub.f32 %v4785_v30, %v4967_v58  ;;  %v2753_v39 = vmul.f32 %v2721_v37, %v2721_v37  ;;  %v2788_v63 = vsel %vm413_vm0, %v2751_v11, 0.0 }
 0x1fb   : > { %v2781_v41 = vadd.f32 %v2780_v8, %v2779_v31  ;;  %v2724_v25 = vsub.f32 %v4793_v28, %v4967_v58  ;;  %v2754_v15 = vmul.f32 %v2722_v38, %v2722_v38  ;;  %v2790_v0 = vsel %vm413_vm0, %v2752_v10, 0.0 }
 0x1fc   : > { %v2725_v53 = vsub.f32 %v4820_v33, %v4967_v58  ;;  %v2755_v34 = vmul.f32 %v2723_v26, %v2723_v26  ;;  %v2792_v43 = vsel %vm413_vm0, %v2753_v39, 0.0  ;;  %v2726_v30 = vsub.f32 %v4830_v19, %v4967_v58 }
 0x1fd   : > { %v2783_v2 = vadd.f32 %v2782_v3, %v2781_v41  ;;  %v2756_v46 = vmul.f32 %v2724_v25, %v2724_v25  ;;  %v2794_v54 = vsel %vm413_vm0, %v2754_v15, 0.0  ;;  %v2727_v28 = vsub.f32 %v4817_v48, %v4967_v58 }
 0x1fe   : > { %v2757_v20 = vmul.f32 %v2725_v53, %v2725_v53  ;;  %v2796_v9 = vsel %vm413_vm0, %v2755_v34, 0.0  ;;  %v2728_v33 = vsub.f32 %v4825_v23, %v4967_v58  ;;  %v2758_v36 = vmul.f32 %v2726_v30, %v2726_v30 }
 0x1ff   : > { %v2785_v6 = vadd.f32 %v2784_v60, %v2783_v2  ;;  %v2798_v50 = vsel %vm413_vm0, %v2756_v46, 0.0  ;;  %v2759_v5 = vmul.f32 %v2727_v28, %v2727_v28  ;;  %v2761_v48 = vmul.f32 %v4971_v44, %v4971_v44 }
 0x200   : > { %v2800_v19 = vsel %vm413_vm0, %v2757_v20, 0.0  ;;  %v2760_v18 = vmul.f32 %v2728_v33, %v2728_v33  ;;  %v2802_v31 = vsel %vm413_vm0, %v2758_v36, 0.0  ;;  %v2762_v23 = vmul.f32 %v4975_v35, %v4975_v35 }
 0x201   : > { %v2787_v21 = vadd.f32 %v2786_v4, %v2785_v6  ;;  %v2804_v42 = vsel %vm413_vm0, %v2759_v5, 0.0  ;;  %v2763_v1 = vmul.f32 %v4979_v62, %v4979_v62  ;;  %v2808_v17 = vsel %vm413_vm0, %v2761_v48, 0.0 }
 0x202   : > { %v2806_v58 = vsel %vm413_vm0, %v2760_v18, 0.0  ;;  %v2764_v2 = vmul.f32 %v4983_v27, %v4983_v27  ;;  %v2810_v44 = vsel %vm413_vm0, %v2762_v23, 0.0  ;;  %v2765_v11 = vmul.f32 %v4987_v57, %v4987_v57 }
 0x203   : > { %v2789_v55 = vadd.f32 %v2788_v63, %v2787_v21  ;;  %v2812_v35 = vsel %vm413_vm0, %v2763_v1, 0.0  ;;  %v2766_v6 = vmul.f32 %v4991_v49, %v4991_v49  ;;  %v2767_v10 = vmul.f32 %v4995_v22, %v4995_v22 }
 0x204   : > { %v2814_v62 = vsel %vm413_vm0, %v2764_v2, 0.0  ;;  %v2816_v27 = vsel %vm413_vm0, %v2765_v11, 0.0  ;;  %v2768_v21 = vmul.f32 %v4999_v59, %v4999_v59  ;;  %v2769_v39 = vmul.f32 %v5003_v52, %v5003_v52 }
 0x205   : > { %v2791_v29 = vadd.f32 %v2790_v0, %v2789_v55  ;;  %v2818_v57 = vsel %vm413_vm0, %v2766_v6, 0.0  ;;  %v2820_v49 = vsel %vm413_vm0, %v2767_v10, 0.0  ;;  %v2770_v55 = vmul.f32 %v5006_v16, %v5006_v16 }
 0x206   : > { %v2822_v22 = vsel %vm413_vm0, %v2768_v21, 0.0  ;;  %v2771_v15 = vmul.f32 %v5010_v47, %v5010_v47  ;;  %v2824_v59 = vsel %vm413_vm0, %v2769_v39, 0.0  ;;  %v2773_v34 = vmul.f32 %v5017_v45, %v5017_v45 }
 0x207   : > { %v2793_v12 = vadd.f32 %v2792_v43, %v2791_v29  ;;  %v2772_v29 = vmul.f32 %v5014_v56, %v5014_v56  ;;  %v2826_v52 = vsel %vm413_vm0, %v2770_v55, 0.0  ;;  %v2775_v46 = vmul.f32 %v5023_v32, %v5023_v32 }
 0x208   : > { %v2828_v16 = vsel %vm413_vm0, %v2771_v15, 0.0  ;;  %v2832_v56 = vsel %vm413_vm0, %v2773_v34, 0.0 }
 0x209   : > { %v2795_v40 = vadd.f32 %v2794_v54, %v2793_v12  ;;  %v2774_v12 = vmul.f32 %v5020_v13, %v5020_v13  ;;  %v2830_v47 = vsel %vm413_vm0, %v2772_v29, 0.0  ;;  %v2836_v20 = vsel %vm413_vm0, %v2775_v46, 0.0 }
 0x20b   : > { %v2797_v7 = vadd.f32 %v2796_v9, %v2795_v40  ;;  %v2776_v40 = vmul.f32 %v5026_v24, %v5026_v24  ;;  %v2834_v45 = vsel %vm413_vm0, %v2774_v12, 0.0 }
 0x20d   : > { %v2799_v14 = vadd.f32 %v2798_v50, %v2797_v7  ;;  %v2838_v13 = vsel %vm413_vm0, %v2776_v40, 0.0 }
 0x20f   : > { %v2801_v61 = vadd.f32 %v2800_v19, %v2799_v14 }
 0x211   : > { %v2803_v51 = vadd.f32 %v2802_v31, %v2801_v61 }
 0x213   : > { %v2805_v8 = vadd.f32 %v2804_v42, %v2803_v51 }
 0x215   : > { %v2807_v41 = vadd.f32 %v2806_v58, %v2805_v8 }
 0x217   : > { %v2809_v3 = vadd.f32 %v2808_v17, %v2807_v41 }
 0x219   : > { %v2811_v37 = vadd.f32 %v2810_v44, %v2809_v3 }
 0x21b   : > { %v2813_v60 = vadd.f32 %v2812_v35, %v2811_v37 }
 0x21d   : > { %v2815_v38 = vadd.f32 %v2814_v62, %v2813_v60 }
 0x21f   : > { %v2817_v4 = vadd.f32 %v2816_v27, %v2815_v38 }
 0x221   : > { %v2819_v26 = vadd.f32 %v2818_v57, %v2817_v4 }
 0x223   : > { %v2821_v63 = vadd.f32 %v2820_v49, %v2819_v26 }
 0x225   : > { %v2823_v25 = vadd.f32 %v2822_v22, %v2821_v63 }
 0x227   : > { %v2825_v0 = vadd.f32 %v2824_v59, %v2823_v25 }
 0x229   : > { %v2827_v53 = vadd.f32 %v2826_v52, %v2825_v0 }
 0x22b   : > { %v2829_v43 = vadd.f32 %v2828_v16, %v2827_v53 }
 0x22d   : > { %v2831_v30 = vadd.f32 %v2830_v47, %v2829_v43 }
 0x22f   : > { %v2833_v54 = vadd.f32 %v2832_v56, %v2831_v30 }
 0x231   : > { %v2835_v28 = vadd.f32 %v2834_v45, %v2833_v54 }
 0x233   : > { %v2837_v9 = vadd.f32 %v2836_v20, %v2835_v28 }
 0x235   : > { %v2839_v7 = vadd.f32 %v2838_v13, %v2837_v9 }
 0x237   : > { %v2840_v33 = vrot.slane %v2839_v7, 4 }
 0x239   : > { %v2841_v36 = vadd.f32 %v2840_v33, %v2839_v7 }
 0x23b   : > { %v2842_v50 = vrot.slane %v2841_v36, 2 }
 0x23d   : > { %v2843_v32 = vadd.f32 %v2842_v50, %v2841_v36 }
 0x23f   : > { %v2844_v14 = vrot.slane %v2843_v32, 1 }
 0x241   : > { %v2845_v5 = vadd.f32 %v2844_v14, %v2843_v32 }
 0x243   : > { %2848 = vst.msk [vmem:[%s4963_s17 + $0x1] sm:$0x1] %vm2846_vm4, %v2845_v5 }
 0x244 PF: > { %s16_s18 = sadd.s32 1, %s3430_s18  }
 0x245   : > { %p13_p4 = scmp.ge.s32.totalorder %s16_s18, 4  }
 0x247   :  { %15 = sbr.rel (!%p13_p4) target bundleno = 1 (0x1), region = 82 }

</bundles_post_ra>
